<compile_context>
chip_gen: v5e
topology: v5e:2x2
jax: 0.10.0
libtpu: 0.0.40
codegen_flags: <defaults>
</compile_context>

<pallas_src>
import functools

import jax
import jax.numpy as jnp
from jax import lax
from jax.experimental import pallas as pl
from jax.experimental.pallas import tpu as pltpu


# ----------------------------- Pallas kernel -------------------------------


def _listener_fused_kernel(cols_ref, cw_ref, cb_ref, fw_ref, fb_ref,
                           emb_ref, wsent_ref, wrefp_ref, whh_ref, b_ref,
                           p1w_ref, p1b_ref, p2w_ref, p2b_ref,
                           o_ref, *, patches):
    """Whole Listener forward: conv+GAP+fc head, LSTM over time, post_lstm."""
    N = o_ref.shape[0]
    NPp = cols_ref.shape[0]
    Pp = NPp // N                     # padded patch rows per image (mult of 8)
    T = emb_ref.shape[0]
    Hp = whh_ref.shape[0]             # padded hidden (128-lane aligned)

    # ---- conv stem (im2col matmul) + ReLU, one matmul for all images ------
    conv = jnp.dot(cols_ref[...], cw_ref[...],
                   preferred_element_type=jnp.float32)               # (N*Pp, 512)
    conv = jnp.maximum(conv + cb_ref[...], 0.0)

    # ---- global average pool per image (8-aligned static slices) ----------
    # Padded patch rows (which hold ReLU(bias) != 0) are excluded from the sum.
    inv_p = 1.0 / float(patches)
    pooled = jnp.concatenate(
        [jnp.sum(conv[n * Pp:n * Pp + patches, :], axis=0, keepdims=True)
         for n in range(N)], axis=0) * inv_p                         # (N, 512)

    # ---- fc head: Linear(512 -> out_size), no ReLU (replaced resnet.fc) ---
    ref = jnp.dot(pooled.astype(jnp.bfloat16), fw_ref[...],
                  preferred_element_type=jnp.float32) + fb_ref[...]  # (N, out)

    # ---- LSTM input projection hoisted out of the recurrence --------------
    # Sentence part is identical for every image; ref part for every timestep.
    sent_proj = jnp.dot(emb_ref[...], wsent_ref[...],
                        preferred_element_type=jnp.float32)          # (T, 4Hp)
    ref_proj = jnp.dot(ref.astype(jnp.bfloat16), wrefp_ref[...],
                       preferred_element_type=jnp.float32) + b_ref[...]  # (N, 4Hp)

    # ---- recurrence: T is tiny, fully unrolled; all state stays in vregs --
    # TODO(synk): if the bundle dump shows Mosaic re-pushing the (Hp,4Hp) RHS
    # each step, switch to pltpu.matmul_push_rhs/_acc_lhs/_pop to keep W_hh
    # resident in the MXU across the serial chain.
    h = jnp.zeros((N, Hp), jnp.float32)
    c = jnp.zeros((N, Hp), jnp.float32)
    acc = jnp.zeros((N, Hp), jnp.float32)
    for t in range(T):                       # static slices, no VMEM round trip
        gates = (sent_proj[t:t + 1, :] + ref_proj
                 + jnp.dot(h.astype(jnp.bfloat16), whh_ref[...],
                           preferred_element_type=jnp.float32))      # (N, 4Hp)
        i = jax.nn.sigmoid(gates[:, 0 * Hp:1 * Hp])   # 128-lane aligned slices
        f = jax.nn.sigmoid(gates[:, 1 * Hp:2 * Hp])
        g = jnp.tanh(gates[:, 2 * Hp:3 * Hp])
        o = jax.nn.sigmoid(gates[:, 3 * Hp:4 * Hp])
        c = f * c + i * g
        h = o * jnp.tanh(c)
        acc = acc + h                                                # sum_t h_t

    # ---- post_lstm: Linear+ReLU, then Linear+ReLU via VPU reduce ----------
    h1 = jnp.dot(acc.astype(jnp.bfloat16), p1w_ref[...],
                 preferred_element_type=jnp.float32) + p1b_ref[...]
    h1 = jnp.maximum(h1, 0.0)                                        # (N, Hmid)
    fin = jnp.sum(h1 * p2w_ref[...], axis=-1, keepdims=True) + p2b_ref[...]
    o_ref[...] = jnp.maximum(fin, 0.0)                               # (N, 1)


def pallas_listener_fused(cols, conv_w, conv_b, fc_w, fc_b,
                          emb, w_sent, w_refp, w_hh, b,
                          p1_w, p1_b, p2_w, p2_b, *, num_imgs, patches):
    NPp, CKK = cols.shape
    C_out = conv_w.shape[1]
    out_size = fc_w.shape[1]
    T, E = emb.shape
    Hp, Hp4 = w_hh.shape
    Hmid = p1_w.shape[1]

    # TODO(synk): at real ResNet image sizes, split the conv stem back out,
    # tile the patch axis with a reduction grid axis + GAP accumulator, and
    # size the tile for VMEM (<=~2048 rows on v7x's 64 MiB, ~2x that on
    # v5e/v6e), raising vmem_limit_bytes; on v7x also keep a 2-way "parallel"
    # image axis so both TensorCores are used.  At these toy shapes the model
    # is launch-overhead bound, so one fused single-step kernel wins.
    kernel = functools.partial(_listener_fused_kernel, patches=patches)
    return pl.pallas_call(
        kernel,
        out_shape=jax.ShapeDtypeStruct((num_imgs, 1), jnp.float32),
        grid=(1,),
        in_specs=[
            pl.BlockSpec((NPp, CKK), lambda i: (0, 0)),
            pl.BlockSpec((CKK, C_out), lambda i: (0, 0)),
            pl.BlockSpec((1, C_out), lambda i: (0, 0)),
            pl.BlockSpec((C_out, out_size), lambda i: (0, 0)),
            pl.BlockSpec((1, out_size), lambda i: (0, 0)),
            pl.BlockSpec((T, E), lambda i: (0, 0)),
            pl.BlockSpec((E, Hp4), lambda i: (0, 0)),
            pl.BlockSpec((out_size, Hp4), lambda i: (0, 0)),
            pl.BlockSpec((Hp, Hp4), lambda i: (0, 0)),
            pl.BlockSpec((1, Hp4), lambda i: (0, 0)),
            pl.BlockSpec((Hp, Hmid), lambda i: (0, 0)),
            pl.BlockSpec((1, Hmid), lambda i: (0, 0)),
            pl.BlockSpec((1, Hmid), lambda i: (0, 0)),
            pl.BlockSpec((1, 1), lambda i: (0, 0)),
        ],
        out_specs=pl.BlockSpec((num_imgs, 1), lambda i: (0, 0)),
        compiler_params=pltpu.CompilerParams(
            dimension_semantics=("arbitrary",)),
    )(cols, conv_w, conv_b.reshape(1, -1), fc_w, fc_b.reshape(1, -1),
      emb, w_sent, w_refp, w_hh, b.reshape(1, -1),
      p1_w, p1_b.reshape(1, -1), p2_w.reshape(1, -1), p2_b.reshape(1, -1))


# ------------------------------ JAX glue ----------------------------------


def im2col_nchw(x, k, stride):
    """x:(N,C,H,W) -> (N, Ho*Wo, C*k*k) patches (valid conv, PyTorch order)."""
    N, C, H, W = x.shape
    Ho = (H - k) // stride + 1
    Wo = (W - k) // stride + 1
    patches = []
    for kh in range(k):
        for kw in range(k):
            patches.append(
                x[:, :, kh:kh + stride * (Ho - 1) + 1:stride,
                  kw:kw + stride * (Wo - 1) + 1:stride])
    p = jnp.stack(patches, axis=2)         # (N, C, k*k, Ho, Wo)
    p = jnp.transpose(p, (0, 3, 4, 1, 2))  # (N, Ho, Wo, C, k*k)
    return p.reshape(N, Ho * Wo, C * k * k), Ho, Wo


def init_params(key, *, vocab=50, token=300, out_size=32, hidden=64,
                stem_c=512, k=3):
    """Deterministic synthetic parameters (logical PyTorch-style layout)."""
    keys = jax.random.split(key, 8)
    s = 0.05
    D = token + out_size  # lstm input_size = 300 + output_size
    return {
        "conv_w": jax.random.normal(keys[0], (3 * k * k, stem_c)) * s,
        "conv_b": jnp.zeros((stem_c,), jnp.float32),
        "fc_w": jax.random.normal(keys[1], (stem_c, out_size)) * s,
        "fc_b": jnp.zeros((out_size,), jnp.float32),
        "emb": jax.random.normal(keys[2], (vocab, token)) * s,
        "w_ih_t": jax.random.normal(keys[3], (D, 4 * hidden)) * s,
        "w_hh_t": jax.random.normal(keys[4], (hidden, 4 * hidden)) * s,
        # NOTE: when porting real PyTorch weights this must be b_ih + b_hh.
        "b_lstm": jnp.zeros((4 * hidden,), jnp.float32),
        "p1_w": jax.random.normal(keys[5], (hidden, hidden // 2)) * s,
        "p1_b": jnp.zeros((hidden // 2,), jnp.float32),
        "p2_w": jax.random.normal(keys[6], (hidden // 2, 1)) * s,
        "p2_b": jnp.zeros((1,), jnp.float32),
        "token": token,
        "hidden": hidden,
    }


def _pad_gates_cols(w, H, Hp):
    """(rows, 4H) -> (rows, 4Hp): each PyTorch gate block lands 128-aligned."""
    rows = w.shape[0]
    out = jnp.zeros((rows, 4 * Hp), w.dtype)
    for g in range(4):
        out = out.at[:, g * Hp:g * Hp + H].set(w[:, g * H:(g + 1) * H])
    return out


def prepare_params(p):
    """Pad LSTM gates to lane-aligned layout and pre-cast MXU operands to bf16."""
    token, H = p["token"], p["hidden"]
    Hp = max(128, -(-H // 128) * 128)

    w_ih_pad = _pad_gates_cols(p["w_ih_t"], H, Hp)          # (D, 4Hp)
    w_sent = w_ih_pad[:token]                               # sentence rows
    w_refp = w_ih_pad[token:]                               # ref rows
    w_hh_pad = jnp.zeros((Hp, 4 * Hp), jnp.float32).at[:H].set(
        _pad_gates_cols(p["w_hh_t"], H, Hp))
    b_pad = _pad_gates_cols(p["b_lstm"].reshape(1, -1), H, Hp)[0]
    p1_w_pad = jnp.zeros((Hp, p["p1_w"].shape[1]), jnp.float32).at[:H].set(
        p["p1_w"])

    bf = jnp.bfloat16
    return {
        "conv_w": p["conv_w"].astype(bf), "conv_b": p["conv_b"],
        "fc_w": p["fc_w"].astype(bf), "fc_b": p["fc_b"],
        "emb": p["emb"].astype(bf),                         # gathered rows feed MXU
        "w_sent": w_sent.astype(bf), "w_refp": w_refp.astype(bf),
        "w_hh": w_hh_pad.astype(bf), "b_lstm": b_pad,
        "p1_w": p1_w_pad.astype(bf), "p1_b": p["p1_b"],
        "p2_w": p["p2_w"], "p2_b": p["p2_b"],               # p2 used on VPU -> f32
    }


def listener_forward(params, tkn_sentence, sentence_imgs):
    imgs = jnp.squeeze(sentence_imgs, axis=0)     # (num_imgs, 3, H, W)
    sentence = jnp.squeeze(tkn_sentence, axis=0)  # (L,)

    # ---- listener_ref input prep: im2col for the conv stem ----------------
    # TODO(synk): the full pretrained ResNet18 backbone is approximated by one
    # conv(3->512,k=3,s=2)+ReLU stem and global average pooling; the replaced
    # head fc = Linear(512, output_size) is implemented exactly (no ReLU).
    cols, _, _ = im2col_nchw(imgs, k=3, stride=2)           # (N, P, 27) f32
    N, P, CKK = cols.shape
    Pp = -(-P // 8) * 8                                     # pad patch rows to x8
    cols = jnp.pad(cols, ((0, 0), (0, Pp - P), (0, 0)))
    cols = cols.reshape(N * Pp, CKK).astype(jnp.bfloat16)   # pre-cast: half DMA

    # ---- embedding lookup (data-dependent gather: plain-JAX glue) ---------
    # TODO(synk): in-kernel gather would need scalar-prefetch Element specs;
    # at these sizes jnp.take is the right tool.
    embed_sentence = jnp.take(params["emb"], sentence, axis=0)   # (L, 300) bf16

    # ---- single fused kernel: conv+GAP+fc, LSTM, sum_t, post_lstm ---------
    # concat order [embed_sentence, ref] is encoded in the w_sent/w_refp split.
    fin = pallas_listener_fused(
        cols, params["conv_w"], params["conv_b"],
        params["fc_w"], params["fc_b"],
        embed_sentence, params["w_sent"], params["w_refp"],
        params["w_hh"], params["b_lstm"],
        params["p1_w"], params["p1_b"], params["p2_w"], params["p2_b"],
        num_imgs=N, patches=P)
    return fin                                                      # (N, 1)


if __name__ == "__main__":
    key = jax.random.PRNGKey(0)
    pkey, tkey, ikey = jax.random.split(key, 3)

    params = prepare_params(init_params(pkey))

    num_imgs, L = 4, 8
    # shapes carry the leading singleton dim the torch forward squeezes away
    tkn_sentence = jax.random.randint(tkey, (1, L), 0, 50, dtype=jnp.int32)
    sentence_imgs = jax.random.normal(ikey, (1, num_imgs, 3, 16, 16),
                                      dtype=jnp.float32)

    fwd = jax.jit(listener_forward)
    fin = fwd(params, tkn_sentence, sentence_imgs)
    fin = jax.block_until_ready(fin)
    assert fin.shape == (num_imgs, 1)
    assert bool(jnp.all(jnp.isfinite(fin)))
    print("KERNEL_OK")
</pallas_src>

<mosaic_0001>
module attributes {stable_mosaic.version = 11 : i64} {
  func.func @_listener_fused_kernel(%arg0: i32, %arg1: memref<224x27xbf16, #tpu.memory_space<vmem>>, %arg2: memref<27x512xbf16, #tpu.memory_space<vmem>>, %arg3: memref<1x512xf32, #tpu.memory_space<vmem>>, %arg4: memref<512x32xbf16, #tpu.memory_space<vmem>>, %arg5: memref<1x32xf32, #tpu.memory_space<vmem>>, %arg6: memref<8x300xbf16, #tpu.memory_space<vmem>>, %arg7: memref<300x512xbf16, #tpu.memory_space<vmem>>, %arg8: memref<32x512xbf16, #tpu.memory_space<vmem>>, %arg9: memref<128x512xbf16, #tpu.memory_space<vmem>>, %arg10: memref<1x512xf32, #tpu.memory_space<vmem>>, %arg11: memref<128x32xbf16, #tpu.memory_space<vmem>>, %arg12: memref<1x32xf32, #tpu.memory_space<vmem>>, %arg13: memref<1x32xf32, #tpu.memory_space<vmem>>, %arg14: memref<1x1xf32, #tpu.memory_space<vmem>>, %arg15: memref<4x1xf32, #tpu.memory_space<vmem>>) attributes {dimension_semantics = [#tpu.dimension_semantics<arbitrary>], iteration_bounds = array<i64: 1>, scalar_prefetch = 0 : i64, scratch_operands = 0 : i64, tpu.core_type = #tpu.core_type<tc>, window_params = [{pipeline_mode = #tpu.pipeline_mode<synchronous>, transform_indices = @transform_0, window_bounds = array<i64: 224, 27>}, {pipeline_mode = #tpu.pipeline_mode<synchronous>, transform_indices = @transform_1, window_bounds = array<i64: 27, 512>}, {pipeline_mode = #tpu.pipeline_mode<synchronous>, transform_indices = @transform_2, window_bounds = array<i64: 1, 512>}, {pipeline_mode = #tpu.pipeline_mode<synchronous>, transform_indices = @transform_3, window_bounds = array<i64: 512, 32>}, {pipeline_mode = #tpu.pipeline_mode<synchronous>, transform_indices = @transform_4, window_bounds = array<i64: 1, 32>}, {pipeline_mode = #tpu.pipeline_mode<synchronous>, transform_indices = @transform_5, window_bounds = array<i64: 8, 300>}, {pipeline_mode = #tpu.pipeline_mode<synchronous>, transform_indices = @transform_6, window_bounds = array<i64: 300, 512>}, {pipeline_mode = #tpu.pipeline_mode<synchronous>, transform_indices = @transform_7, window_bounds = array<i64: 32, 512>}, {pipeline_mode = #tpu.pipeline_mode<synchronous>, transform_indices = @transform_8, window_bounds = array<i64: 128, 512>}, {pipeline_mode = #tpu.pipeline_mode<synchronous>, transform_indices = @transform_9, window_bounds = array<i64: 1, 512>}, {pipeline_mode = #tpu.pipeline_mode<synchronous>, transform_indices = @transform_10, window_bounds = array<i64: 128, 32>}, {pipeline_mode = #tpu.pipeline_mode<synchronous>, transform_indices = @transform_11, window_bounds = array<i64: 1, 32>}, {pipeline_mode = #tpu.pipeline_mode<synchronous>, transform_indices = @transform_12, window_bounds = array<i64: 1, 32>}, {pipeline_mode = #tpu.pipeline_mode<synchronous>, transform_indices = @transform_13, window_bounds = array<i64: 1, 1>}, {pipeline_mode = #tpu.pipeline_mode<synchronous>, transform_indices = @transform_14, window_bounds = array<i64: 4, 1>}]} {
    %c0 = arith.constant 0 : index
    %c0_0 = arith.constant 0 : index
    %0 = vector.load %arg1[%c0, %c0_0] : memref<224x27xbf16, #tpu.memory_space<vmem>>, vector<224x27xbf16>
    %c0_1 = arith.constant 0 : index
    %c0_2 = arith.constant 0 : index
    %1 = vector.load %arg2[%c0_1, %c0_2] : memref<27x512xbf16, #tpu.memory_space<vmem>>, vector<27x512xbf16>
    %cst = arith.constant dense<0.000000e+00> : vector<224x512xf32>
    %2 = tpu.matmul %0, %1, %cst {dimension_numbers = #tpu.dot_dimension_numbers<[1], [0], [0], [1], [0, 0, 1, 1], [], []>} : vector<224x27xbf16>, vector<27x512xbf16>, vector<224x512xf32> -> vector<224x512xf32>
    %c0_3 = arith.constant 0 : index
    %c0_4 = arith.constant 0 : index
    %3 = vector.load %arg3[%c0_3, %c0_4] : memref<1x512xf32, #tpu.memory_space<vmem>>, vector<1x512xf32>
    %4 = vector.broadcast %3 : vector<1x512xf32> to vector<224x512xf32>
    %5 = arith.addf %2, %4 : vector<224x512xf32>
    %cst_5 = arith.constant 0.000000e+00 : f32
    %6 = vector.broadcast %cst_5 : f32 to vector<224x512xf32>
    %7 = arith.maximumf %5, %6 : vector<224x512xf32>
    %8 = vector.extract_strided_slice %7 {offsets = [0, 0], sizes = [49, 512], strides = [1, 1]} : vector<224x512xf32> to vector<49x512xf32>
    %cst_6 = arith.constant dense<0.000000e+00> : vector<512xf32>
    %9 = vector.multi_reduction <add>, %8, %cst_6 [0] : vector<49x512xf32> to vector<512xf32>
    %10 = vector.shape_cast %9 : vector<512xf32> to vector<1x512xf32>
    %11 = vector.extract_strided_slice %7 {offsets = [56, 0], sizes = [49, 512], strides = [1, 1]} : vector<224x512xf32> to vector<49x512xf32>
    %cst_7 = arith.constant dense<0.000000e+00> : vector<512xf32>
    %12 = vector.multi_reduction <add>, %11, %cst_7 [0] : vector<49x512xf32> to vector<512xf32>
    %13 = vector.shape_cast %12 : vector<512xf32> to vector<1x512xf32>
    %14 = vector.extract_strided_slice %7 {offsets = [112, 0], sizes = [49, 512], strides = [1, 1]} : vector<224x512xf32> to vector<49x512xf32>
    %cst_8 = arith.constant dense<0.000000e+00> : vector<512xf32>
    %15 = vector.multi_reduction <add>, %14, %cst_8 [0] : vector<49x512xf32> to vector<512xf32>
    %16 = vector.shape_cast %15 : vector<512xf32> to vector<1x512xf32>
    %17 = vector.extract_strided_slice %7 {offsets = [168, 0], sizes = [49, 512], strides = [1, 1]} : vector<224x512xf32> to vector<49x512xf32>
    %cst_9 = arith.constant dense<0.000000e+00> : vector<512xf32>
    %18 = vector.multi_reduction <add>, %17, %cst_9 [0] : vector<49x512xf32> to vector<512xf32>
    %19 = vector.shape_cast %18 : vector<512xf32> to vector<1x512xf32>
    %20 = tpu.concatenate %10, %13, %16, %19 in 0 : vector<1x512xf32>, vector<1x512xf32>, vector<1x512xf32>, vector<1x512xf32> -> vector<4x512xf32>
    %cst_10 = arith.constant 0.0204081628 : f32
    %21 = vector.broadcast %cst_10 : f32 to vector<4x512xf32>
    %22 = arith.mulf %20, %21 : vector<4x512xf32>
    %23 = arith.truncf %22 : vector<4x512xf32> to vector<4x512xbf16>
    %c0_11 = arith.constant 0 : index
    %c0_12 = arith.constant 0 : index
    %24 = vector.load %arg4[%c0_11, %c0_12] : memref<512x32xbf16, #tpu.memory_space<vmem>>, vector<512x32xbf16>
    %cst_13 = arith.constant dense<0.000000e+00> : vector<4x32xf32>
    %25 = tpu.matmul %23, %24, %cst_13 {dimension_numbers = #tpu.dot_dimension_numbers<[1], [0], [0], [1], [0, 0, 1, 1], [], []>} : vector<4x512xbf16>, vector<512x32xbf16>, vector<4x32xf32> -> vector<4x32xf32>
    %c0_14 = arith.constant 0 : index
    %c0_15 = arith.constant 0 : index
    %26 = vector.load %arg5[%c0_14, %c0_15] : memref<1x32xf32, #tpu.memory_space<vmem>>, vector<1x32xf32>
    %27 = vector.broadcast %26 : vector<1x32xf32> to vector<4x32xf32>
    %28 = arith.addf %25, %27 : vector<4x32xf32>
    %c0_16 = arith.constant 0 : index
    %c0_17 = arith.constant 0 : index
    %29 = vector.load %arg6[%c0_16, %c0_17] : memref<8x300xbf16, #tpu.memory_space<vmem>>, vector<8x300xbf16>
    %c0_18 = arith.constant 0 : index
    %c0_19 = arith.constant 0 : index
    %30 = vector.load %arg7[%c0_18, %c0_19] : memref<300x512xbf16, #tpu.memory_space<vmem>>, vector<300x512xbf16>
    %cst_20 = arith.constant dense<0.000000e+00> : vector<8x512xf32>
    %31 = tpu.matmul %29, %30, %cst_20 {dimension_numbers = #tpu.dot_dimension_numbers<[1], [0], [0], [1], [0, 0, 1, 1], [], []>} : vector<8x300xbf16>, vector<300x512xbf16>, vector<8x512xf32> -> vector<8x512xf32>
    %32 = arith.truncf %28 : vector<4x32xf32> to vector<4x32xbf16>
    %c0_21 = arith.constant 0 : index
    %c0_22 = arith.constant 0 : index
    %33 = vector.load %arg8[%c0_21, %c0_22] : memref<32x512xbf16, #tpu.memory_space<vmem>>, vector<32x512xbf16>
    %cst_23 = arith.constant dense<0.000000e+00> : vector<4x512xf32>
    %34 = tpu.matmul %32, %33, %cst_23 {dimension_numbers = #tpu.dot_dimension_numbers<[1], [0], [0], [1], [0, 0, 1, 1], [], []>} : vector<4x32xbf16>, vector<32x512xbf16>, vector<4x512xf32> -> vector<4x512xf32>
    %c0_24 = arith.constant 0 : index
    %c0_25 = arith.constant 0 : index
    %35 = vector.load %arg10[%c0_24, %c0_25] : memref<1x512xf32, #tpu.memory_space<vmem>>, vector<1x512xf32>
    %36 = vector.broadcast %35 : vector<1x512xf32> to vector<4x512xf32>
    %37 = arith.addf %34, %36 : vector<4x512xf32>
    %cst_26 = arith.constant 0.000000e+00 : f32
    %38 = vector.broadcast %cst_26 : f32 to vector<4x128xf32>
    %cst_27 = arith.constant 0.000000e+00 : f32
    %39 = vector.broadcast %cst_27 : f32 to vector<4x128xf32>
    %cst_28 = arith.constant 0.000000e+00 : f32
    %40 = vector.broadcast %cst_28 : f32 to vector<4x128xf32>
    %41 = vector.extract_strided_slice %31 {offsets = [0, 0], sizes = [1, 512], strides = [1, 1]} : vector<8x512xf32> to vector<1x512xf32>
    %42 = vector.broadcast %41 : vector<1x512xf32> to vector<4x512xf32>
    %43 = arith.addf %42, %37 : vector<4x512xf32>
    %44 = arith.truncf %38 : vector<4x128xf32> to vector<4x128xbf16>
    %c0_29 = arith.constant 0 : index
    %c0_30 = arith.constant 0 : index
    %45 = vector.load %arg9[%c0_29, %c0_30] : memref<128x512xbf16, #tpu.memory_space<vmem>>, vector<128x512xbf16>
    %cst_31 = arith.constant dense<0.000000e+00> : vector<4x512xf32>
    %46 = tpu.matmul %44, %45, %cst_31 {dimension_numbers = #tpu.dot_dimension_numbers<[1], [0], [0], [1], [0, 0, 1, 1], [], []>} : vector<4x128xbf16>, vector<128x512xbf16>, vector<4x512xf32> -> vector<4x512xf32>
    %47 = arith.addf %43, %46 : vector<4x512xf32>
    %48 = vector.extract_strided_slice %47 {offsets = [0, 0], sizes = [4, 128], strides = [1, 1]} : vector<4x512xf32> to vector<4x128xf32>
    %49 = arith.negf %48 : vector<4x128xf32>
    %50 = math.exp %49 : vector<4x128xf32>
    %cst_32 = arith.constant 1.000000e+00 : f32
    %51 = vector.broadcast %cst_32 : f32 to vector<4x128xf32>
    %52 = arith.addf %51, %50 : vector<4x128xf32>
    %53 = arith.divf %51, %52 : vector<4x128xf32>
    %54 = vector.extract_strided_slice %47 {offsets = [0, 128], sizes = [4, 128], strides = [1, 1]} : vector<4x512xf32> to vector<4x128xf32>
    %55 = arith.negf %54 : vector<4x128xf32>
    %56 = math.exp %55 : vector<4x128xf32>
    %cst_33 = arith.constant 1.000000e+00 : f32
    %57 = vector.broadcast %cst_33 : f32 to vector<4x128xf32>
    %58 = arith.addf %57, %56 : vector<4x128xf32>
    %59 = arith.divf %57, %58 : vector<4x128xf32>
    %60 = vector.extract_strided_slice %47 {offsets = [0, 256], sizes = [4, 128], strides = [1, 1]} : vector<4x512xf32> to vector<4x128xf32>
    %61 = math.tanh %60 : vector<4x128xf32>
    %62 = vector.extract_strided_slice %47 {offsets = [0, 384], sizes = [4, 128], strides = [1, 1]} : vector<4x512xf32> to vector<4x128xf32>
    %63 = arith.negf %62 : vector<4x128xf32>
    %64 = math.exp %63 : vector<4x128xf32>
    %cst_34 = arith.constant 1.000000e+00 : f32
    %65 = vector.broadcast %cst_34 : f32 to vector<4x128xf32>
    %66 = arith.addf %65, %64 : vector<4x128xf32>
    %67 = arith.divf %65, %66 : vector<4x128xf32>
    %68 = arith.mulf %59, %39 : vector<4x128xf32>
    %69 = arith.mulf %53, %61 : vector<4x128xf32>
    %70 = arith.addf %68, %69 : vector<4x128xf32>
    %71 = math.tanh %70 : vector<4x128xf32>
    %72 = arith.mulf %67, %71 : vector<4x128xf32>
    %73 = arith.addf %40, %72 : vector<4x128xf32>
    %74 = vector.extract_strided_slice %31 {offsets = [1, 0], sizes = [1, 512], strides = [1, 1]} : vector<8x512xf32> to vector<1x512xf32>
    %75 = vector.broadcast %74 : vector<1x512xf32> to vector<4x512xf32>
    %76 = arith.addf %75, %37 : vector<4x512xf32>
    %77 = arith.truncf %72 : vector<4x128xf32> to vector<4x128xbf16>
    %c0_35 = arith.constant 0 : index
    %c0_36 = arith.constant 0 : index
    %78 = vector.load %arg9[%c0_35, %c0_36] : memref<128x512xbf16, #tpu.memory_space<vmem>>, vector<128x512xbf16>
    %cst_37 = arith.constant dense<0.000000e+00> : vector<4x512xf32>
    %79 = tpu.matmul %77, %78, %cst_37 {dimension_numbers = #tpu.dot_dimension_numbers<[1], [0], [0], [1], [0, 0, 1, 1], [], []>} : vector<4x128xbf16>, vector<128x512xbf16>, vector<4x512xf32> -> vector<4x512xf32>
    %80 = arith.addf %76, %79 : vector<4x512xf32>
    %81 = vector.extract_strided_slice %80 {offsets = [0, 0], sizes = [4, 128], strides = [1, 1]} : vector<4x512xf32> to vector<4x128xf32>
    %82 = arith.negf %81 : vector<4x128xf32>
    %83 = math.exp %82 : vector<4x128xf32>
    %cst_38 = arith.constant 1.000000e+00 : f32
    %84 = vector.broadcast %cst_38 : f32 to vector<4x128xf32>
    %85 = arith.addf %84, %83 : vector<4x128xf32>
    %86 = arith.divf %84, %85 : vector<4x128xf32>
    %87 = vector.extract_strided_slice %80 {offsets = [0, 128], sizes = [4, 128], strides = [1, 1]} : vector<4x512xf32> to vector<4x128xf32>
    %88 = arith.negf %87 : vector<4x128xf32>
    %89 = math.exp %88 : vector<4x128xf32>
    %cst_39 = arith.constant 1.000000e+00 : f32
    %90 = vector.broadcast %cst_39 : f32 to vector<4x128xf32>
    %91 = arith.addf %90, %89 : vector<4x128xf32>
    %92 = arith.divf %90, %91 : vector<4x128xf32>
    %93 = vector.extract_strided_slice %80 {offsets = [0, 256], sizes = [4, 128], strides = [1, 1]} : vector<4x512xf32> to vector<4x128xf32>
    %94 = math.tanh %93 : vector<4x128xf32>
    %95 = vector.extract_strided_slice %80 {offsets = [0, 384], sizes = [4, 128], strides = [1, 1]} : vector<4x512xf32> to vector<4x128xf32>
    %96 = arith.negf %95 : vector<4x128xf32>
    %97 = math.exp %96 : vector<4x128xf32>
    %cst_40 = arith.constant 1.000000e+00 : f32
    %98 = vector.broadcast %cst_40 : f32 to vector<4x128xf32>
    %99 = arith.addf %98, %97 : vector<4x128xf32>
    %100 = arith.divf %98, %99 : vector<4x128xf32>
    %101 = arith.mulf %92, %70 : vector<4x128xf32>
    %102 = arith.mulf %86, %94 : vector<4x128xf32>
    %103 = arith.addf %101, %102 : vector<4x128xf32>
    %104 = math.tanh %103 : vector<4x128xf32>
    %105 = arith.mulf %100, %104 : vector<4x128xf32>
    %106 = arith.addf %73, %105 : vector<4x128xf32>
    %107 = vector.extract_strided_slice %31 {offsets = [2, 0], sizes = [1, 512], strides = [1, 1]} : vector<8x512xf32> to vector<1x512xf32>
    %108 = vector.broadcast %107 : vector<1x512xf32> to vector<4x512xf32>
    %109 = arith.addf %108, %37 : vector<4x512xf32>
    %110 = arith.truncf %105 : vector<4x128xf32> to vector<4x128xbf16>
    %c0_41 = arith.constant 0 : index
    %c0_42 = arith.constant 0 : index
    %111 = vector.load %arg9[%c0_41, %c0_42] : memref<128x512xbf16, #tpu.memory_space<vmem>>, vector<128x512xbf16>
    %cst_43 = arith.constant dense<0.000000e+00> : vector<4x512xf32>
    %112 = tpu.matmul %110, %111, %cst_43 {dimension_numbers = #tpu.dot_dimension_numbers<[1], [0], [0], [1], [0, 0, 1, 1], [], []>} : vector<4x128xbf16>, vector<128x512xbf16>, vector<4x512xf32> -> vector<4x512xf32>
    %113 = arith.addf %109, %112 : vector<4x512xf32>
    %114 = vector.extract_strided_slice %113 {offsets = [0, 0], sizes = [4, 128], strides = [1, 1]} : vector<4x512xf32> to vector<4x128xf32>
    %115 = arith.negf %114 : vector<4x128xf32>
    %116 = math.exp %115 : vector<4x128xf32>
    %cst_44 = arith.constant 1.000000e+00 : f32
    %117 = vector.broadcast %cst_44 : f32 to vector<4x128xf32>
    %118 = arith.addf %117, %116 : vector<4x128xf32>
    %119 = arith.divf %117, %118 : vector<4x128xf32>
    %120 = vector.extract_strided_slice %113 {offsets = [0, 128], sizes = [4, 128], strides = [1, 1]} : vector<4x512xf32> to vector<4x128xf32>
    %121 = arith.negf %120 : vector<4x128xf32>
    %122 = math.exp %121 : vector<4x128xf32>
    %cst_45 = arith.constant 1.000000e+00 : f32
    %123 = vector.broadcast %cst_45 : f32 to vector<4x128xf32>
    %124 = arith.addf %123, %122 : vector<4x128xf32>
    %125 = arith.divf %123, %124 : vector<4x128xf32>
    %126 = vector.extract_strided_slice %113 {offsets = [0, 256], sizes = [4, 128], strides = [1, 1]} : vector<4x512xf32> to vector<4x128xf32>
    %127 = math.tanh %126 : vector<4x128xf32>
    %128 = vector.extract_strided_slice %113 {offsets = [0, 384], sizes = [4, 128], strides = [1, 1]} : vector<4x512xf32> to vector<4x128xf32>
    %129 = arith.negf %128 : vector<4x128xf32>
    %130 = math.exp %129 : vector<4x128xf32>
    %cst_46 = arith.constant 1.000000e+00 : f32
    %131 = vector.broadcast %cst_46 : f32 to vector<4x128xf32>
    %132 = arith.addf %131, %130 : vector<4x128xf32>
    %133 = arith.divf %131, %132 : vector<4x128xf32>
    %134 = arith.mulf %125, %103 : vector<4x128xf32>
    %135 = arith.mulf %119, %127 : vector<4x128xf32>
    %136 = arith.addf %134, %135 : vector<4x128xf32>
    %137 = math.tanh %136 : vector<4x128xf32>
    %138 = arith.mulf %133, %137 : vector<4x128xf32>
    %139 = arith.addf %106, %138 : vector<4x128xf32>
    %140 = vector.extract_strided_slice %31 {offsets = [3, 0], sizes = [1, 512], strides = [1, 1]} : vector<8x512xf32> to vector<1x512xf32>
    %141 = vector.broadcast %140 : vector<1x512xf32> to vector<4x512xf32>
    %142 = arith.addf %141, %37 : vector<4x512xf32>
    %143 = arith.truncf %138 : vector<4x128xf32> to vector<4x128xbf16>
    %c0_47 = arith.constant 0 : index
    %c0_48 = arith.constant 0 : index
    %144 = vector.load %arg9[%c0_47, %c0_48] : memref<128x512xbf16, #tpu.memory_space<vmem>>, vector<128x512xbf16>
    %cst_49 = arith.constant dense<0.000000e+00> : vector<4x512xf32>
    %145 = tpu.matmul %143, %144, %cst_49 {dimension_numbers = #tpu.dot_dimension_numbers<[1], [0], [0], [1], [0, 0, 1, 1], [], []>} : vector<4x128xbf16>, vector<128x512xbf16>, vector<4x512xf32> -> vector<4x512xf32>
    %146 = arith.addf %142, %145 : vector<4x512xf32>
    %147 = vector.extract_strided_slice %146 {offsets = [0, 0], sizes = [4, 128], strides = [1, 1]} : vector<4x512xf32> to vector<4x128xf32>
    %148 = arith.negf %147 : vector<4x128xf32>
    %149 = math.exp %148 : vector<4x128xf32>
    %cst_50 = arith.constant 1.000000e+00 : f32
    %150 = vector.broadcast %cst_50 : f32 to vector<4x128xf32>
    %151 = arith.addf %150, %149 : vector<4x128xf32>
    %152 = arith.divf %150, %151 : vector<4x128xf32>
    %153 = vector.extract_strided_slice %146 {offsets = [0, 128], sizes = [4, 128], strides = [1, 1]} : vector<4x512xf32> to vector<4x128xf32>
    %154 = arith.negf %153 : vector<4x128xf32>
    %155 = math.exp %154 : vector<4x128xf32>
    %cst_51 = arith.constant 1.000000e+00 : f32
    %156 = vector.broadcast %cst_51 : f32 to vector<4x128xf32>
    %157 = arith.addf %156, %155 : vector<4x128xf32>
    %158 = arith.divf %156, %157 : vector<4x128xf32>
    %159 = vector.extract_strided_slice %146 {offsets = [0, 256], sizes = [4, 128], strides = [1, 1]} : vector<4x512xf32> to vector<4x128xf32>
    %160 = math.tanh %159 : vector<4x128xf32>
    %161 = vector.extract_strided_slice %146 {offsets = [0, 384], sizes = [4, 128], strides = [1, 1]} : vector<4x512xf32> to vector<4x128xf32>
    %162 = arith.negf %161 : vector<4x128xf32>
    %163 = math.exp %162 : vector<4x128xf32>
    %cst_52 = arith.constant 1.000000e+00 : f32
    %164 = vector.broadcast %cst_52 : f32 to vector<4x128xf32>
    %165 = arith.addf %164, %163 : vector<4x128xf32>
    %166 = arith.divf %164, %165 : vector<4x128xf32>
    %167 = arith.mulf %158, %136 : vector<4x128xf32>
    %168 = arith.mulf %152, %160 : vector<4x128xf32>
    %169 = arith.addf %167, %168 : vector<4x128xf32>
    %170 = math.tanh %169 : vector<4x128xf32>
    %171 = arith.mulf %166, %170 : vector<4x128xf32>
    %172 = arith.addf %139, %171 : vector<4x128xf32>
    %173 = vector.extract_strided_slice %31 {offsets = [4, 0], sizes = [1, 512], strides = [1, 1]} : vector<8x512xf32> to vector<1x512xf32>
    %174 = vector.broadcast %173 : vector<1x512xf32> to vector<4x512xf32>
    %175 = arith.addf %174, %37 : vector<4x512xf32>
    %176 = arith.truncf %171 : vector<4x128xf32> to vector<4x128xbf16>
    %c0_53 = arith.constant 0 : index
    %c0_54 = arith.constant 0 : index
    %177 = vector.load %arg9[%c0_53, %c0_54] : memref<128x512xbf16, #tpu.memory_space<vmem>>, vector<128x512xbf16>
    %cst_55 = arith.constant dense<0.000000e+00> : vector<4x512xf32>
    %178 = tpu.matmul %176, %177, %cst_55 {dimension_numbers = #tpu.dot_dimension_numbers<[1], [0], [0], [1], [0, 0, 1, 1], [], []>} : vector<4x128xbf16>, vector<128x512xbf16>, vector<4x512xf32> -> vector<4x512xf32>
    %179 = arith.addf %175, %178 : vector<4x512xf32>
    %180 = vector.extract_strided_slice %179 {offsets = [0, 0], sizes = [4, 128], strides = [1, 1]} : vector<4x512xf32> to vector<4x128xf32>
    %181 = arith.negf %180 : vector<4x128xf32>
    %182 = math.exp %181 : vector<4x128xf32>
    %cst_56 = arith.constant 1.000000e+00 : f32
    %183 = vector.broadcast %cst_56 : f32 to vector<4x128xf32>
    %184 = arith.addf %183, %182 : vector<4x128xf32>
    %185 = arith.divf %183, %184 : vector<4x128xf32>
    %186 = vector.extract_strided_slice %179 {offsets = [0, 128], sizes = [4, 128], strides = [1, 1]} : vector<4x512xf32> to vector<4x128xf32>
    %187 = arith.negf %186 : vector<4x128xf32>
    %188 = math.exp %187 : vector<4x128xf32>
    %cst_57 = arith.constant 1.000000e+00 : f32
    %189 = vector.broadcast %cst_57 : f32 to vector<4x128xf32>
    %190 = arith.addf %189, %188 : vector<4x128xf32>
    %191 = arith.divf %189, %190 : vector<4x128xf32>
    %192 = vector.extract_strided_slice %179 {offsets = [0, 256], sizes = [4, 128], strides = [1, 1]} : vector<4x512xf32> to vector<4x128xf32>
    %193 = math.tanh %192 : vector<4x128xf32>
    %194 = vector.extract_strided_slice %179 {offsets = [0, 384], sizes = [4, 128], strides = [1, 1]} : vector<4x512xf32> to vector<4x128xf32>
    %195 = arith.negf %194 : vector<4x128xf32>
    %196 = math.exp %195 : vector<4x128xf32>
    %cst_58 = arith.constant 1.000000e+00 : f32
    %197 = vector.broadcast %cst_58 : f32 to vector<4x128xf32>
    %198 = arith.addf %197, %196 : vector<4x128xf32>
    %199 = arith.divf %197, %198 : vector<4x128xf32>
    %200 = arith.mulf %191, %169 : vector<4x128xf32>
    %201 = arith.mulf %185, %193 : vector<4x128xf32>
    %202 = arith.addf %200, %201 : vector<4x128xf32>
    %203 = math.tanh %202 : vector<4x128xf32>
    %204 = arith.mulf %199, %203 : vector<4x128xf32>
    %205 = arith.addf %172, %204 : vector<4x128xf32>
    %206 = vector.extract_strided_slice %31 {offsets = [5, 0], sizes = [1, 512], strides = [1, 1]} : vector<8x512xf32> to vector<1x512xf32>
    %207 = vector.broadcast %206 : vector<1x512xf32> to vector<4x512xf32>
    %208 = arith.addf %207, %37 : vector<4x512xf32>
    %209 = arith.truncf %204 : vector<4x128xf32> to vector<4x128xbf16>
    %c0_59 = arith.constant 0 : index
    %c0_60 = arith.constant 0 : index
    %210 = vector.load %arg9[%c0_59, %c0_60] : memref<128x512xbf16, #tpu.memory_space<vmem>>, vector<128x512xbf16>
    %cst_61 = arith.constant dense<0.000000e+00> : vector<4x512xf32>
    %211 = tpu.matmul %209, %210, %cst_61 {dimension_numbers = #tpu.dot_dimension_numbers<[1], [0], [0], [1], [0, 0, 1, 1], [], []>} : vector<4x128xbf16>, vector<128x512xbf16>, vector<4x512xf32> -> vector<4x512xf32>
    %212 = arith.addf %208, %211 : vector<4x512xf32>
    %213 = vector.extract_strided_slice %212 {offsets = [0, 0], sizes = [4, 128], strides = [1, 1]} : vector<4x512xf32> to vector<4x128xf32>
    %214 = arith.negf %213 : vector<4x128xf32>
    %215 = math.exp %214 : vector<4x128xf32>
    %cst_62 = arith.constant 1.000000e+00 : f32
    %216 = vector.broadcast %cst_62 : f32 to vector<4x128xf32>
    %217 = arith.addf %216, %215 : vector<4x128xf32>
    %218 = arith.divf %216, %217 : vector<4x128xf32>
    %219 = vector.extract_strided_slice %212 {offsets = [0, 128], sizes = [4, 128], strides = [1, 1]} : vector<4x512xf32> to vector<4x128xf32>
    %220 = arith.negf %219 : vector<4x128xf32>
    %221 = math.exp %220 : vector<4x128xf32>
    %cst_63 = arith.constant 1.000000e+00 : f32
    %222 = vector.broadcast %cst_63 : f32 to vector<4x128xf32>
    %223 = arith.addf %222, %221 : vector<4x128xf32>
    %224 = arith.divf %222, %223 : vector<4x128xf32>
    %225 = vector.extract_strided_slice %212 {offsets = [0, 256], sizes = [4, 128], strides = [1, 1]} : vector<4x512xf32> to vector<4x128xf32>
    %226 = math.tanh %225 : vector<4x128xf32>
    %227 = vector.extract_strided_slice %212 {offsets = [0, 384], sizes = [4, 128], strides = [1, 1]} : vector<4x512xf32> to vector<4x128xf32>
    %228 = arith.negf %227 : vector<4x128xf32>
    %229 = math.exp %228 : vector<4x128xf32>
    %cst_64 = arith.constant 1.000000e+00 : f32
    %230 = vector.broadcast %cst_64 : f32 to vector<4x128xf32>
    %231 = arith.addf %230, %229 : vector<4x128xf32>
    %232 = arith.divf %230, %231 : vector<4x128xf32>
    %233 = arith.mulf %224, %202 : vector<4x128xf32>
    %234 = arith.mulf %218, %226 : vector<4x128xf32>
    %235 = arith.addf %233, %234 : vector<4x128xf32>
    %236 = math.tanh %235 : vector<4x128xf32>
    %237 = arith.mulf %232, %236 : vector<4x128xf32>
    %238 = arith.addf %205, %237 : vector<4x128xf32>
    %239 = vector.extract_strided_slice %31 {offsets = [6, 0], sizes = [1, 512], strides = [1, 1]} : vector<8x512xf32> to vector<1x512xf32>
    %240 = vector.broadcast %239 : vector<1x512xf32> to vector<4x512xf32>
    %241 = arith.addf %240, %37 : vector<4x512xf32>
    %242 = arith.truncf %237 : vector<4x128xf32> to vector<4x128xbf16>
    %c0_65 = arith.constant 0 : index
    %c0_66 = arith.constant 0 : index
    %243 = vector.load %arg9[%c0_65, %c0_66] : memref<128x512xbf16, #tpu.memory_space<vmem>>, vector<128x512xbf16>
    %cst_67 = arith.constant dense<0.000000e+00> : vector<4x512xf32>
    %244 = tpu.matmul %242, %243, %cst_67 {dimension_numbers = #tpu.dot_dimension_numbers<[1], [0], [0], [1], [0, 0, 1, 1], [], []>} : vector<4x128xbf16>, vector<128x512xbf16>, vector<4x512xf32> -> vector<4x512xf32>
    %245 = arith.addf %241, %244 : vector<4x512xf32>
    %246 = vector.extract_strided_slice %245 {offsets = [0, 0], sizes = [4, 128], strides = [1, 1]} : vector<4x512xf32> to vector<4x128xf32>
    %247 = arith.negf %246 : vector<4x128xf32>
    %248 = math.exp %247 : vector<4x128xf32>
    %cst_68 = arith.constant 1.000000e+00 : f32
    %249 = vector.broadcast %cst_68 : f32 to vector<4x128xf32>
    %250 = arith.addf %249, %248 : vector<4x128xf32>
    %251 = arith.divf %249, %250 : vector<4x128xf32>
    %252 = vector.extract_strided_slice %245 {offsets = [0, 128], sizes = [4, 128], strides = [1, 1]} : vector<4x512xf32> to vector<4x128xf32>
    %253 = arith.negf %252 : vector<4x128xf32>
    %254 = math.exp %253 : vector<4x128xf32>
    %cst_69 = arith.constant 1.000000e+00 : f32
    %255 = vector.broadcast %cst_69 : f32 to vector<4x128xf32>
    %256 = arith.addf %255, %254 : vector<4x128xf32>
    %257 = arith.divf %255, %256 : vector<4x128xf32>
    %258 = vector.extract_strided_slice %245 {offsets = [0, 256], sizes = [4, 128], strides = [1, 1]} : vector<4x512xf32> to vector<4x128xf32>
    %259 = math.tanh %258 : vector<4x128xf32>
    %260 = vector.extract_strided_slice %245 {offsets = [0, 384], sizes = [4, 128], strides = [1, 1]} : vector<4x512xf32> to vector<4x128xf32>
    %261 = arith.negf %260 : vector<4x128xf32>
    %262 = math.exp %261 : vector<4x128xf32>
    %cst_70 = arith.constant 1.000000e+00 : f32
    %263 = vector.broadcast %cst_70 : f32 to vector<4x128xf32>
    %264 = arith.addf %263, %262 : vector<4x128xf32>
    %265 = arith.divf %263, %264 : vector<4x128xf32>
    %266 = arith.mulf %257, %235 : vector<4x128xf32>
    %267 = arith.mulf %251, %259 : vector<4x128xf32>
    %268 = arith.addf %266, %267 : vector<4x128xf32>
    %269 = math.tanh %268 : vector<4x128xf32>
    %270 = arith.mulf %265, %269 : vector<4x128xf32>
    %271 = arith.addf %238, %270 : vector<4x128xf32>
    %272 = vector.extract_strided_slice %31 {offsets = [7, 0], sizes = [1, 512], strides = [1, 1]} : vector<8x512xf32> to vector<1x512xf32>
    %273 = vector.broadcast %272 : vector<1x512xf32> to vector<4x512xf32>
    %274 = arith.addf %273, %37 : vector<4x512xf32>
    %275 = arith.truncf %270 : vector<4x128xf32> to vector<4x128xbf16>
    %c0_71 = arith.constant 0 : index
    %c0_72 = arith.constant 0 : index
    %276 = vector.load %arg9[%c0_71, %c0_72] : memref<128x512xbf16, #tpu.memory_space<vmem>>, vector<128x512xbf16>
    %cst_73 = arith.constant dense<0.000000e+00> : vector<4x512xf32>
    %277 = tpu.matmul %275, %276, %cst_73 {dimension_numbers = #tpu.dot_dimension_numbers<[1], [0], [0], [1], [0, 0, 1, 1], [], []>} : vector<4x128xbf16>, vector<128x512xbf16>, vector<4x512xf32> -> vector<4x512xf32>
    %278 = arith.addf %274, %277 : vector<4x512xf32>
    %279 = vector.extract_strided_slice %278 {offsets = [0, 0], sizes = [4, 128], strides = [1, 1]} : vector<4x512xf32> to vector<4x128xf32>
    %280 = arith.negf %279 : vector<4x128xf32>
    %281 = math.exp %280 : vector<4x128xf32>
    %cst_74 = arith.constant 1.000000e+00 : f32
    %282 = vector.broadcast %cst_74 : f32 to vector<4x128xf32>
    %283 = arith.addf %282, %281 : vector<4x128xf32>
    %284 = arith.divf %282, %283 : vector<4x128xf32>
    %285 = vector.extract_strided_slice %278 {offsets = [0, 128], sizes = [4, 128], strides = [1, 1]} : vector<4x512xf32> to vector<4x128xf32>
    %286 = arith.negf %285 : vector<4x128xf32>
    %287 = math.exp %286 : vector<4x128xf32>
    %cst_75 = arith.constant 1.000000e+00 : f32
    %288 = vector.broadcast %cst_75 : f32 to vector<4x128xf32>
    %289 = arith.addf %288, %287 : vector<4x128xf32>
    %290 = arith.divf %288, %289 : vector<4x128xf32>
    %291 = vector.extract_strided_slice %278 {offsets = [0, 256], sizes = [4, 128], strides = [1, 1]} : vector<4x512xf32> to vector<4x128xf32>
    %292 = math.tanh %291 : vector<4x128xf32>
    %293 = vector.extract_strided_slice %278 {offsets = [0, 384], sizes = [4, 128], strides = [1, 1]} : vector<4x512xf32> to vector<4x128xf32>
    %294 = arith.negf %293 : vector<4x128xf32>
    %295 = math.exp %294 : vector<4x128xf32>
    %cst_76 = arith.constant 1.000000e+00 : f32
    %296 = vector.broadcast %cst_76 : f32 to vector<4x128xf32>
    %297 = arith.addf %296, %295 : vector<4x128xf32>
    %298 = arith.divf %296, %297 : vector<4x128xf32>
    %299 = arith.mulf %290, %268 : vector<4x128xf32>
    %300 = arith.mulf %284, %292 : vector<4x128xf32>
    %301 = arith.addf %299, %300 : vector<4x128xf32>
    %302 = math.tanh %301 : vector<4x128xf32>
    %303 = arith.mulf %298, %302 : vector<4x128xf32>
    %304 = arith.addf %271, %303 : vector<4x128xf32>
    %305 = arith.truncf %304 : vector<4x128xf32> to vector<4x128xbf16>
    %c0_77 = arith.constant 0 : index
    %c0_78 = arith.constant 0 : index
    %306 = vector.load %arg11[%c0_77, %c0_78] : memref<128x32xbf16, #tpu.memory_space<vmem>>, vector<128x32xbf16>
    %cst_79 = arith.constant dense<0.000000e+00> : vector<4x32xf32>
    %307 = tpu.matmul %305, %306, %cst_79 {dimension_numbers = #tpu.dot_dimension_numbers<[1], [0], [0], [1], [0, 0, 1, 1], [], []>} : vector<4x128xbf16>, vector<128x32xbf16>, vector<4x32xf32> -> vector<4x32xf32>
    %c0_80 = arith.constant 0 : index
    %c0_81 = arith.constant 0 : index
    %308 = vector.load %arg12[%c0_80, %c0_81] : memref<1x32xf32, #tpu.memory_space<vmem>>, vector<1x32xf32>
    %309 = vector.broadcast %308 : vector<1x32xf32> to vector<4x32xf32>
    %310 = arith.addf %307, %309 : vector<4x32xf32>
    %cst_82 = arith.constant 0.000000e+00 : f32
    %311 = vector.broadcast %cst_82 : f32 to vector<4x32xf32>
    %312 = arith.maximumf %310, %311 : vector<4x32xf32>
    %c0_83 = arith.constant 0 : index
    %c0_84 = arith.constant 0 : index
    %313 = vector.load %arg13[%c0_83, %c0_84] : memref<1x32xf32, #tpu.memory_space<vmem>>, vector<1x32xf32>
    %314 = vector.broadcast %313 : vector<1x32xf32> to vector<4x32xf32>
    %315 = arith.mulf %312, %314 : vector<4x32xf32>
    %cst_85 = arith.constant dense<0.000000e+00> : vector<4xf32>
    %316 = vector.multi_reduction <add>, %315, %cst_85 [1] : vector<4x32xf32> to vector<4xf32>
    %317 = vector.shape_cast %316 : vector<4xf32> to vector<4x1xf32>
    %c0_86 = arith.constant 0 : index
    %c0_87 = arith.constant 0 : index
    %318 = vector.load %arg14[%c0_86, %c0_87] : memref<1x1xf32, #tpu.memory_space<vmem>>, vector<1x1xf32>
    %319 = vector.broadcast %318 : vector<1x1xf32> to vector<4x1xf32>
    %320 = arith.addf %317, %319 : vector<4x1xf32>
    %cst_88 = arith.constant 0.000000e+00 : f32
    %321 = vector.broadcast %cst_88 : f32 to vector<4x1xf32>
    %322 = arith.maximumf %320, %321 : vector<4x1xf32>
    %c0_89 = arith.constant 0 : index
    %c0_90 = arith.constant 0 : index
    %323 = vector.load %arg15[%c0_89, %c0_90] : memref<4x1xf32, #tpu.memory_space<vmem>>, vector<4x1xf32>
    tpu.vector_store %arg15[%c0_89, %c0_90], %322 {strides = array<i32>} : memref<4x1xf32, #tpu.memory_space<vmem>>, vector<4x1xf32>,
    return
  }
  func.func @transform_0(%arg0: i32) -> (i32, i32) {
    %c0_i32 = arith.constant 0 : i32
    %c0_i32_0 = arith.constant 0 : i32
    %c0_i32_1 = arith.constant 0 : i32
    return %c0_i32, %c0_i32_0 : i32, i32
  }
  func.func @transform_1(%arg0: i32) -> (i32, i32) {
    %c0_i32 = arith.constant 0 : i32
    %c0_i32_0 = arith.constant 0 : i32
    %c0_i32_1 = arith.constant 0 : i32
    return %c0_i32, %c0_i32_0 : i32, i32
  }
  func.func @transform_2(%arg0: i32) -> (i32, i32) {
    %c0_i32 = arith.constant 0 : i32
    %c0_i32_0 = arith.constant 0 : i32
    %c0_i32_1 = arith.constant 0 : i32
    return %c0_i32, %c0_i32_0 : i32, i32
  }
  func.func @transform_3(%arg0: i32) -> (i32, i32) {
    %c0_i32 = arith.constant 0 : i32
    %c0_i32_0 = arith.constant 0 : i32
    %c0_i32_1 = arith.constant 0 : i32
    return %c0_i32, %c0_i32_0 : i32, i32
  }
  func.func @transform_4(%arg0: i32) -> (i32, i32) {
    %c0_i32 = arith.constant 0 : i32
    %c0_i32_0 = arith.constant 0 : i32
    %c0_i32_1 = arith.constant 0 : i32
    return %c0_i32, %c0_i32_0 : i32, i32
  }
  func.func @transform_5(%arg0: i32) -> (i32, i32) {
    %c0_i32 = arith.constant 0 : i32
    %c0_i32_0 = arith.constant 0 : i32
    %c0_i32_1 = arith.constant 0 : i32
    return %c0_i32, %c0_i32_0 : i32, i32
  }
  func.func @transform_6(%arg0: i32) -> (i32, i32) {
    %c0_i32 = arith.constant 0 : i32
    %c0_i32_0 = arith.constant 0 : i32
    %c0_i32_1 = arith.constant 0 : i32
    return %c0_i32, %c0_i32_0 : i32, i32
  }
  func.func @transform_7(%arg0: i32) -> (i32, i32) {
    %c0_i32 = arith.constant 0 : i32
    %c0_i32_0 = arith.constant 0 : i32
    %c0_i32_1 = arith.constant 0 : i32
    return %c0_i32, %c0_i32_0 : i32, i32
  }
  func.func @transform_8(%arg0: i32) -> (i32, i32) {
    %c0_i32 = arith.constant 0 : i32
    %c0_i32_0 = arith.constant 0 : i32
    %c0_i32_1 = arith.constant 0 : i32
    return %c0_i32, %c0_i32_0 : i32, i32
  }
  func.func @transform_9(%arg0: i32) -> (i32, i32) {
    %c0_i32 = arith.constant 0 : i32
    %c0_i32_0 = arith.constant 0 : i32
    %c0_i32_1 = arith.constant 0 : i32
    return %c0_i32, %c0_i32_0 : i32, i32
  }
  func.func @transform_10(%arg0: i32) -> (i32, i32) {
    %c0_i32 = arith.constant 0 : i32
    %c0_i32_0 = arith.constant 0 : i32
    %c0_i32_1 = arith.constant 0 : i32
    return %c0_i32, %c0_i32_0 : i32, i32
  }
  func.func @transform_11(%arg0: i32) -> (i32, i32) {
    %c0_i32 = arith.constant 0 : i32
    %c0_i32_0 = arith.constant 0 : i32
    %c0_i32_1 = arith.constant 0 : i32
    return %c0_i32, %c0_i32_0 : i32, i32
  }
  func.func @transform_12(%arg0: i32) -> (i32, i32) {
    %c0_i32 = arith.constant 0 : i32
    %c0_i32_0 = arith.constant 0 : i32
    %c0_i32_1 = arith.constant 0 : i32
    return %c0_i32, %c0_i32_0 : i32, i32
  }
  func.func @transform_13(%arg0: i32) -> (i32, i32) {
    %c0_i32 = arith.constant 0 : i32
    %c0_i32_0 = arith.constant 0 : i32
    %c0_i32_1 = arith.constant 0 : i32
    return %c0_i32, %c0_i32_0 : i32, i32
  }
  func.func @transform_14(%arg0: i32) -> (i32, i32) {
    %c0_i32 = arith.constant 0 : i32
    %c0_i32_0 = arith.constant 0 : i32
    %c0_i32_1 = arith.constant 0 : i32
    return %c0_i32, %c0_i32_0 : i32, i32
  }
}

</mosaic_0001>

<bundles_post_ra>
// kernel: listener_forward.1
= control target key start
LH: loop header
LB: loop body
LE: loop exit
PB: predicated region body
PF: predicated region fallthrough
CT: control target
= control target key end

     0   :  { %vm245_vm0 = vcmask 1044480   ;;  %vm246_vm1 = vcmask 1045504   ;;  %v4424_v2 = vmov 65535   ;;  %vm202_vm2 = vcmask 220160   ;;  %s6244_s1 = inlined_call_operand.vmem [shape: bf16[27,512], index: 1, kind: input, shape index: {}]   ;;  %s6245_s0 = inlined_call_operand.vmem [shape: bf16[224,27], index: 0, kind: input, shape index: {}]   ;;  %s6246_s2 = inlined_call_operand.vmem [shape: f32[1,512], index: 2, kind: input, shape index: {}]   ;;  %s6247_s3 = inlined_call_operand.vmem [shape: bf16[512,32], index: 3, kind: input, shape index: {}]   ;;  %s6248_s4 = inlined_call_operand.vmem [shape: f32[1,32], index: 4, kind: input, shape index: {}]   ;;  %s6249_s6 = inlined_call_operand.vmem [shape: bf16[300,512], index: 6, kind: input, shape index: {}]   ;;  %s6250_s5 = inlined_call_operand.vmem [shape: bf16[8,300], index: 5, kind: input, shape index: {}]   ;;  %s6251_s8 = inlined_call_operand.vmem [shape: bf16[128,512], index: 8, kind: input, shape index: {}]   ;;  %s6252_s7 = inlined_call_operand.vmem [shape: bf16[32,512], index: 7, kind: input, shape index: {}]   ;;  %s6253_s9 = inlined_call_operand.vmem [shape: f32[1,512], index: 9, kind: input, shape index: {}]   ;;  %s6254_s11 = inlined_call_operand.vmem [shape: f32[1,32], index: 11, kind: input, shape index: {}]   ;;  %s6255_s10 = inlined_call_operand.vmem [shape: bf16[128,32], index: 10, kind: input, shape index: {}]   ;;  %s6256_s12 = inlined_call_operand.vmem [shape: f32[1,32], index: 12, kind: input, shape index: {}]   ;;  %s6257_s13 = inlined_call_operand.<no memory space> [shape: f32[1,1], index: 13, kind: input, shape index: {}]   ;;  %s6258_s14 = inlined_call_operand.vmem [shape: f32[4,1], index: 14, kind: output, shape index: {}]  }
   0x1   :  { %v3384_v0 = vld [vmem:[%s6244_s1 + $0x20] sm:$0xf]  ;;  %v4130_v1 = vld [vmem:[%s6244_s1 + $0x2c] sm:$0x30]  ;;  %v247_v3 = vsel %vm245_vm0, 4294967295, %v4424_v2  ;;  %v4556_v30 = vld [vmem:[%s6245_s0 + $0x68] sm:$0xff] }
   0x2   :  { %v3385_v4 = vor.u32 %v4130_v1, %v3384_v0  ;;  %v248_v5 = vsel %vm246_vm1, %v247_v3, 0  ;;  %v3392_v6 = vld [vmem:[%s6244_s1 + $0x28] sm:$0xf]  ;;  %v4131_v7 = vld [vmem:[%s6244_s1 + $0x34] sm:$0x30]  ;;  %v4110_v29 = vld [vmem:[%s6245_s0] sm:$0xff] }
   0x3   :  { %v3393_v8 = vor.u32 %v4131_v7, %v3392_v6  ;;  %v4129_v9 = vld [vmem:[%s6244_s1 + $0x2c] sm:$0xf]  ;;  %v3394_v10 = vld [vmem:[%s6244_s1 + $0x38] sm:$0x30]  ;;  %v3368_v11 = vld [vmem:[%s6244_s1] sm:$0xf] }
   0x4   :  { %v250_v12 = vand.u32 %v3385_v4, %v248_v5  ;;  %v3397_v13 = vor.u32 %v4129_v9, %v3394_v10  ;;  %v4126_v14 = vld [vmem:[%s6244_s1 + $0xc] sm:$0xf0]  ;;  %v3376_v15 = vld [vmem:[%s6244_s1 + $0x8] sm:$0xf]  ;;  %v4127_v16 = vld [vmem:[%s6244_s1 + $0x14] sm:$0xf0] }
   0x5   :  { %v256_v17 = vand.u32 %v3393_v8, %v248_v5  ;;  %v4125_v18 = vld [vmem:[%s6244_s1 + $0xc] sm:$0xf]  ;;  %v3378_v19 = vld [vmem:[%s6244_s1 + $0x18] sm:$0xf0]  ;;  %v4128_v20 = vld [vmem:[%s6244_s1 + $0x24] sm:$0xf]  ;;  %v3369_v22 = vor.u32 %v4126_v14, %v3368_v11  ;;  %v3377_v24 = vor.u32 %v4127_v16, %v3376_v15 }
   0x6   :  { %267 = vmatpush.bf16.msra.mxu0 %v250_v12  ;;  %4288 = vmatpush.bf16.msra.mxu1 %v250_v12  ;;  %v259_v21 = vand.u32 %v3397_v13, %v248_v5  ;;  %v3386_v23 = vld [vmem:[%s6244_s1 + $0x30] sm:$0x30]  ;;  %v3381_v26 = vor.u32 %v4125_v18, %v3378_v19  ;;  %v4124_v27 = vld [vmem:[%s6244_s1 + $0x4] sm:$0xf]  ;;  %v4111_v33 = vld [vmem:[%s6245_s0 + $0x8] sm:$0xff]  ;;  %vm694_vm3 = vcmask 1040384  }
   0x7   :  { %425 = vmatpush.bf16.msra.mxu2 %v256_v17  ;;  %v3389_v25 = vor.u32 %v4128_v20, %v3386_v23  ;;  %v3370_v28 = vld [vmem:[%s6244_s1 + $0x10] sm:$0xf0]  ;;  %v4113_v35 = vld [vmem:[%s6245_s0 + $0x18] sm:$0xff]  ;;  %v4114_v36 = vld [vmem:[%s6245_s0 + $0x20] sm:$0xff]  ;;  %vm902_vm4 = vcmask 1041408   ;;  %vm907_vm5 = vcmask 1042432  }
   0x8   :  { %504 = vmatpush.bf16.msra.mxu3 %v259_v21  ;;  %v3373_v32 = vor.u32 %v4124_v27, %v3370_v28  ;;  %v4112_v34 = vld [vmem:[%s6245_s0 + $0x10] sm:$0xff]  ;;  %v4115_v37 = vld [vmem:[%s6245_s0 + $0x28] sm:$0xff]  ;;  %v4117_v39 = vld [vmem:[%s6245_s0 + $0x38] sm:$0xff]  ;;  %vm1696_vm6 = vcmask 359424   ;;  %vm1927_vm7 = vcmask 261120  }
   0x9   :  { %v253_v31 = vand.u32 %v3389_v25, %v248_v5  ;;  %v4116_v38 = vld [vmem:[%s6245_s0 + $0x30] sm:$0xff]  ;;  %v4155_v40 = vld [vmem:[%s6247_s3 + $0xb8] sm:$0xff]  ;;  %v4118_v41 = vld [vmem:[%s6245_s0 + $0x40] sm:$0xff] }
   0xa   :  { %268 = vmatpush.bf16.msra.mxu0 %v3369_v22  ;;  %4289 = vmatpush.bf16.msra.mxu1 %v3369_v22  ;;  %v86_v42 = vld [vmem:[%s6246_s2] sm:$0xf]  ;;  %v4163_v47 = vld [vmem:[%s6247_s3 + $0xf8] sm:$0xff]  ;;  %v4119_v62 = vld [vmem:[%s6245_s0 + $0x48] sm:$0xff] }
   0xb   :  { %426 = vmatpush.bf16.msra.mxu2 %v3377_v24  ;;  %v4623_v45 = vperm.slane %v86_v42, 0  ;;  %v4147_v48 = vld [vmem:[%s6247_s3 + $0x78] sm:$0xff]  ;;  %v4636_v53 = vperm.slane %v86_v42, 3  ;;  %v4641_v56 = vperm.slane %v86_v42, 2  ;;  %v4653_v11 = vperm.slane %v86_v42, 1 }
   0xc   :  { %505 = vmatpush.bf16.msra.mxu3 %v3381_v26  ;;  %v4139_v14 = vld [vmem:[%s6247_s3 + $0x38] sm:$0xff] }
   0xd   :  { %3398 = vmatmul.msk.bf16.vlgmr.msra.gmra.mxu0 %vm202_vm2, %v4110_v29  ;;  %3411 = vmatmul.msk.bf16.vlgmr.msra.gmra.mxu1 %vm202_vm2, %v4556_v30 }
   0xe   :  { %346 = vmatpush.bf16.msrb.mxu1 %v253_v31  ;;  %3426 = vmatmul.msk.bf16.vlgmr.msra.gmra.mxu2 %vm202_vm2, %v4110_v29 }
   0xf   :  { %3440 = vmatmul.msk.bf16.vlgmr.msra.gmra.mxu3 %vm202_vm2, %v4110_v29  ;;  %1206 = vmatpush.bf16.msrb.mxu2 %v4155_v40 }
  0x10   :  { %1219 = vmatpush.bf16.msrb.mxu3 %v4163_v47  ;;  %1180 = vmatpush.bf16.msrb.mxu0 %v4139_v14 }
  0x12   :  { %347 = vmatpush.bf16.msrb.mxu1 %v3373_v32 }
  0x16   :  { %1193 = vmatpush.bf16.msra.mxu1 %v4147_v48 }
  0x1d   :  { %3399 = vmatmul.msk.bf16.gmra.mxu0 %vm202_vm2, %v4111_v33  ;;  %3412 = vmatmul.msk.bf16.vlgmr.msrb.gmra.mxu1 %vm202_vm2, %v4110_v29 }
  0x1e   :  { %3427 = vmatmul.msk.bf16.gmra.mxu2 %vm202_vm2, %v4111_v33 }
  0x1f   :  { %3441 = vmatmul.msk.bf16.gmra.mxu3 %vm202_vm2, %v4111_v33 }
  0x2d   :  { %3400 = vmatmul.msk.bf16.gmra.mxu0 %vm202_vm2, %v4112_v34  ;;  %3413 = vmatmul.msk.bf16.gmra.mxu1 %vm202_vm2, %v4111_v33 }
  0x2e   :  { %3428 = vmatmul.msk.bf16.gmra.mxu2 %vm202_vm2, %v4112_v34 }
  0x2f   :  { %3442 = vmatmul.msk.bf16.gmra.mxu3 %vm202_vm2, %v4112_v34 }
  0x3d   :  { %3401 = vmatmul.msk.bf16.gmra.mxu0 %vm202_vm2, %v4113_v35  ;;  %3414 = vmatmul.msk.bf16.gmra.mxu1 %vm202_vm2, %v4112_v34  ;;  %v4120_v34 = vld [vmem:[%s6245_s0 + $0x50] sm:$0xff] }
  0x3e   :  { %3429 = vmatmul.msk.bf16.gmra.mxu2 %vm202_vm2, %v4113_v35 }
  0x3f   :  { %3443 = vmatmul.msk.bf16.gmra.mxu3 %vm202_vm2, %v4113_v35 }
  0x4d   :  { %3402 = vmatmul.msk.bf16.gmra.mxu0 %vm202_vm2, %v4114_v36  ;;  %3415 = vmatmul.msk.bf16.gmra.mxu1 %vm202_vm2, %v4113_v35 }
  0x4e   :  { %3430 = vmatmul.msk.bf16.gmra.mxu2 %vm202_vm2, %v4114_v36 }
  0x4f   :  { %3444 = vmatmul.msk.bf16.gmra.mxu3 %vm202_vm2, %v4114_v36 }
  0x5d   :  { %3403 = vmatmul.msk.bf16.gmra.mxu0 %vm202_vm2, %v4115_v37  ;;  %3416 = vmatmul.msk.bf16.gmra.mxu1 %vm202_vm2, %v4114_v36 }
  0x5e   :  { %3431 = vmatmul.msk.bf16.gmra.mxu2 %vm202_vm2, %v4115_v37 }
  0x5f   :  { %3445 = vmatmul.msk.bf16.gmra.mxu3 %vm202_vm2, %v4115_v37 }
  0x6d   :  { %3404 = vmatmul.msk.bf16.gmra.mxu0 %vm202_vm2, %v4116_v38  ;;  %3417 = vmatmul.msk.bf16.gmra.mxu1 %vm202_vm2, %v4115_v37 }
  0x6e   :  { %3432 = vmatmul.msk.bf16.gmra.mxu2 %vm202_vm2, %v4116_v38 }
  0x6f   :  { %3446 = vmatmul.msk.bf16.gmra.mxu3 %vm202_vm2, %v4116_v38 }
  0x7d   :  { %3405 = vmatmul.msk.bf16.gmra.mxu0 %vm202_vm2, %v4117_v39  ;;  %3418 = vmatmul.msk.bf16.gmra.mxu1 %vm202_vm2, %v4116_v38 }
  0x7e   :  { %3433 = vmatmul.msk.bf16.gmra.mxu2 %vm202_vm2, %v4117_v39 }
  0x7f   :  { %3447 = vmatmul.msk.bf16.gmra.mxu3 %vm202_vm2, %v4117_v39 }
  0x8a   :  { %v270_v43 = vpop.f32.mrf.mxu0  ;;  %v4621_v44 = vpop.f32.mrf.mxu1 }
  0x8b   :  { %v271_v46 = vadd.f32 %v270_v43, %v4623_v45 }
  0x8d   :  { %3406 = vmatmul.msk.bf16.gmra.mxu0 %vm202_vm2, %v4118_v41  ;;  %3419 = vmatmul.msk.bf16.gmra.mxu1 %vm202_vm2, %v4117_v39  ;;  %v577_v52 = vmax.f32 %v271_v46, 0.0 }
  0x8e   :  { %3434 = vmatmul.msk.bf16.gmra.mxu2 %vm202_vm2, %v4118_v41 }
  0x8f   :  { %3448 = vmatmul.msk.bf16.gmra.mxu3 %vm202_vm2, %v4118_v41 }
  0x91   :  { %v428_v49 = vpop.f32.mrf.mxu2 }
  0x92   :  { %v507_v50 = vpop.f32.mrf.mxu3  ;;  %v272_v51 = vpop.f32.mrf.mxu0  ;;  %v429_v60 = vadd.f32 %v428_v49, %v4641_v56 }
  0x93   :  { %v273_v54 = vadd.f32 %v272_v51, %v4623_v45  ;;  %v4639_v55 = vpop.f32.mrf.mxu1  ;;  %v508_v58 = vadd.f32 %v507_v50, %v4636_v53 }
  0x94   :  { %v579_v6 = vmax.f32 %v429_v60, 0.0 }
  0x95   :  { %v581_v57 = vmax.f32 %v273_v54, 0.0  ;;  %v580_v2 = vmax.f32 %v508_v58, 0.0 }
  0x97   :  { %v689_v59 = vadd.f32 %v581_v57, %v577_v52 }
  0x99   :  { %v430_v61 = vpop.f32.mrf.mxu2 }
  0x9a   :  { %v431_v63 = vadd.f32 %v430_v61, %v4641_v56  ;;  %v509_v0 = vpop.f32.mrf.mxu3  ;;  %v275_v1 = vpop.f32.mrf.mxu0 }
  0x9b   :  { %v510_v3 = vadd.f32 %v509_v0, %v4636_v53  ;;  %v276_v4 = vadd.f32 %v275_v1, %v4623_v45  ;;  %v349_v5 = vpop.f32.mrf.mxu1  ;;  %v4154_v0 = vld [vmem:[%s6247_s3 + $0xb0] sm:$0xff] }
  0x9c   :  { %v583_v7 = vmax.f32 %v431_v63, 0.0  ;;  %v350_v16 = vadd.f32 %v349_v5, %v4653_v11  ;;  %v4162_v1 = vld [vmem:[%s6247_s3 + $0xf0] sm:$0xff]  ;;  %1207 = vmatpush.bf16.msrb.mxu2 %v4154_v0 }
  0x9d   :  { %v584_v8 = vmax.f32 %v510_v3, 0.0  ;;  %v585_v9 = vmax.f32 %v276_v4, 0.0  ;;  %3407 = vmatmul.msk.bf16.gmra.mxu0 %vm202_vm2, %v4119_v62  ;;  %3420 = vmatmul.msk.bf16.gmra.mxu1 %vm202_vm2, %v4118_v41 }
  0x9e   :  { %v716_v10 = vadd.f32 %v583_v7, %v579_v6  ;;  %3435 = vmatmul.msk.bf16.gmra.mxu2 %vm202_vm2, %v4119_v62  ;;  %v578_v26 = vmax.f32 %v350_v16, 0.0  ;;  %1220 = vmatpush.bf16.msrb.mxu3 %v4162_v1  ;;  %v4137_v1 = vld [vmem:[%s6247_s3 + $0x28] sm:$0xff] }
  0x9f   :  { %v729_v12 = vadd.f32 %v584_v8, %v580_v2  ;;  %v690_v13 = vadd.f32 %v689_v59, %v585_v9  ;;  %3449 = vmatmul.msk.bf16.gmra.mxu3 %vm202_vm2, %v4119_v62  ;;  %v4146_v2 = vld [vmem:[%s6247_s3 + $0x70] sm:$0xff] }
  0xa0   :  { %1194 = vmatpush.bf16.msra.mxu1 %v4146_v2 }
  0xa1   :  { %v433_v15 = vpop.f32.mrf.mxu2 }
  0xa2   :  { %v434_v17 = vadd.f32 %v433_v15, %v4641_v56  ;;  %v512_v18 = vpop.f32.mrf.mxu3  ;;  %v277_v19 = vpop.f32.mrf.mxu0 }
  0xa3   :  { %v513_v20 = vadd.f32 %v512_v18, %v4636_v53  ;;  %v278_v21 = vadd.f32 %v277_v19, %v4623_v45  ;;  %v351_v22 = vpop.f32.mrf.mxu1 }
  0xa4   :  { %v587_v23 = vmax.f32 %v434_v17, 0.0  ;;  %v352_v24 = vadd.f32 %v351_v22, %v4653_v11 }
  0xa5   :  { %v588_v25 = vmax.f32 %v513_v20, 0.0  ;;  %v589_v31 = vmax.f32 %v278_v21, 0.0  ;;  %v4138_v20 = vld [vmem:[%s6247_s3 + $0x30] sm:$0xff] }
  0xa6   :  { %v717_v27 = vadd.f32 %v716_v10, %v587_v23  ;;  %v582_v28 = vmax.f32 %v352_v24, 0.0  ;;  %v4121_v10 = vld [vmem:[%s6245_s0 + $0x58] sm:$0xff]  ;;  %1181 = vmatpush.bf16.msrb.mxu0 %v4138_v20 }
  0xa7   :  { %v730_v29 = vadd.f32 %v729_v12, %v588_v25  ;;  %v691_v38 = vadd.f32 %v690_v13, %v589_v31 }
  0xa8   :  { %v703_v32 = vadd.f32 %v582_v28, %v578_v26 }
  0xa9   :  { %v435_v33 = vpop.f32.mrf.mxu2 }
  0xaa   :  { %v436_v35 = vadd.f32 %v435_v33, %v4641_v56  ;;  %v514_v36 = vpop.f32.mrf.mxu3  ;;  %v280_v37 = vpop.f32.mrf.mxu0  ;;  %1182 = vmatpush.bf16.msrb.mxu0 %v4137_v1 }
  0xab   :  { %v515_v39 = vadd.f32 %v514_v36, %v4636_v53  ;;  %v281_v40 = vadd.f32 %v280_v37, %v4623_v45  ;;  %v354_v41 = vpop.f32.mrf.mxu1 }
  0xac   :  { %v591_v42 = vmax.f32 %v436_v35, 0.0  ;;  %v355_v43 = vadd.f32 %v354_v41, %v4653_v11 }
  0xad   :  { %v592_v46 = vmax.f32 %v515_v39, 0.0  ;;  %v593_v47 = vmax.f32 %v281_v40, 0.0  ;;  %3408 = vmatmul.msk.bf16.gmra.mxu0 %vm202_vm2, %v4120_v34  ;;  %3421 = vmatmul.msk.bf16.gmra.mxu1 %vm202_vm2, %v4119_v62 }
  0xae   :  { %v718_v48 = vadd.f32 %v717_v27, %v591_v42  ;;  %v586_v49 = vmax.f32 %v355_v43, 0.0  ;;  %3436 = vmatmul.msk.bf16.gmra.mxu2 %vm202_vm2, %v4120_v34  ;;  %v4153_v27 = vld [vmem:[%s6247_s3 + $0xa8] sm:$0xff] }
  0xaf   :  { %v731_v50 = vadd.f32 %v730_v29, %v592_v46  ;;  %v692_v51 = vadd.f32 %v691_v38, %v593_v47  ;;  %3450 = vmatmul.msk.bf16.gmra.mxu3 %vm202_vm2, %v4120_v34  ;;  %1208 = vmatpush.bf16.msrb.mxu2 %v4153_v27  ;;  %v4161_v47 = vld [vmem:[%s6247_s3 + $0xe8] sm:$0xff] }
  0xb0   :  { %v704_v52 = vadd.f32 %v703_v32, %v586_v49  ;;  %v4145_v49 = vld [vmem:[%s6247_s3 + $0x68] sm:$0xff]  ;;  %1221 = vmatpush.bf16.msrb.mxu3 %v4161_v47 }
  0xb1   :  { %v438_v54 = vpop.f32.mrf.mxu2  ;;  %1195 = vmatpush.bf16.msra.mxu1 %v4145_v49 }
  0xb2   :  { %v439_v57 = vadd.f32 %v438_v54, %v4641_v56  ;;  %v517_v58 = vpop.f32.mrf.mxu3  ;;  %v282_v59 = vpop.f32.mrf.mxu0 }
  0xb3   :  { %v518_v60 = vadd.f32 %v517_v58, %v4636_v53  ;;  %v356_v61 = vpop.f32.mrf.mxu1  ;;  %v283_v5 = vadd.f32 %v282_v59, %v4623_v45 }
  0xb4   :  { %v595_v63 = vmax.f32 %v439_v57, 0.0  ;;  %v357_v62 = vadd.f32 %v356_v61, %v4653_v11 }
  0xb5   :  { %v596_v3 = vmax.f32 %v518_v60, 0.0  ;;  %v597_v12 = vmax.f32 %v283_v5, 0.0 }
  0xb6   :  { %v719_v4 = vadd.f32 %v718_v48, %v595_v63  ;;  %v590_v6 = vmax.f32 %v357_v62, 0.0 }
  0xb7   :  { %v732_v7 = vadd.f32 %v731_v50, %v596_v3  ;;  %v693_v21 = vadd.f32 %v692_v51, %v597_v12  ;;  %v4122_v51 = vld [vmem:[%s6245_s0 + $0x60] sm:$0xff] }
  0xb8   :  { %v705_v8 = vadd.f32 %v704_v52, %v590_v6 }
  0xb9   :  { %v440_v9 = vpop.f32.mrf.mxu2 }
  0xba   :  { %v519_v13 = vpop.f32.mrf.mxu3  ;;  %v285_v14 = vpop.f32.mrf.mxu0  ;;  %v441_v18 = vadd.f32 %v440_v9, %v4641_v56 }
  0xbb   :  { %v286_v15 = vadd.f32 %v285_v14, %v4623_v45  ;;  %v359_v16 = vpop.f32.mrf.mxu1  ;;  %v520_v22 = vadd.f32 %v519_v13, %v4636_v53 }
  0xbc   :  { %v360_v17 = vadd.f32 %v359_v16, %v4653_v11  ;;  %v599_v28 = vmax.f32 %v441_v18, 0.0 }
  0xbd   :  { %v601_v19 = vmax.f32 %v286_v15, 0.0  ;;  %3409 = vmatmul.msk.bf16.gmra.mxu0 %vm202_vm2, %v4121_v10  ;;  %3422 = vmatmul.msk.bf16.gmra.mxu1 %vm202_vm2, %v4120_v34  ;;  %v600_v31 = vmax.f32 %v520_v22, 0.0 }
  0xbe   :  { %v594_v23 = vmax.f32 %v360_v17, 0.0  ;;  %3437 = vmatmul.msk.bf16.gmra.mxu2 %vm202_vm2, %v4121_v10  ;;  %v720_v38 = vadd.f32 %v719_v4, %v599_v28 }
  0xbf   :  { %v695_v24 = vsel %vm694_vm3, %v601_v19, 0.0  ;;  %3451 = vmatmul.msk.bf16.gmra.mxu3 %vm202_vm2, %v4121_v10  ;;  %v733_v40 = vadd.f32 %v732_v7, %v600_v31 }
  0xc0   :  { %v4704_v25 = vadd.f32 %v695_v24, %v693_v21  ;;  %v706_v26 = vadd.f32 %v705_v8, %v594_v23 }
  0xc1   :  { %v443_v29 = vpop.f32.mrf.mxu2 }
  0xc2   :  { %v444_v32 = vadd.f32 %v443_v29, %v4641_v56  ;;  %v522_v33 = vpop.f32.mrf.mxu3  ;;  %v287_v34 = vpop.f32.mrf.mxu0 }
  0xc3   :  { %v523_v35 = vadd.f32 %v522_v33, %v4636_v53  ;;  %v361_v36 = vpop.f32.mrf.mxu1  ;;  %v288_v61 = vadd.f32 %v287_v34, %v4623_v45 }
  0xc4   :  { %v603_v37 = vmax.f32 %v444_v32, 0.0  ;;  %v362_v46 = vadd.f32 %v361_v36, %v4653_v11 }
  0xc5   :  { %v604_v39 = vmax.f32 %v523_v35, 0.0  ;;  %v605_v6 = vmax.f32 %v288_v61, 0.0 }
  0xc6   :  { %v721_v41 = vsel %vm694_vm3, %v603_v37, 0.0  ;;  %v598_v57 = vmax.f32 %v362_v46, 0.0 }
  0xc7   :  { %v4712_v42 = vadd.f32 %v721_v41, %v720_v38  ;;  %v734_v43 = vsel %vm694_vm3, %v604_v39, 0.0 }
  0xc8   :  { %v4719_v48 = vadd.f32 %v734_v43, %v733_v40  ;;  %v707_v63 = vadd.f32 %v706_v26, %v598_v57 }
  0xc9   :  { %v445_v50 = vpop.f32.mrf.mxu2 }
  0xca   :  { %v524_v52 = vpop.f32.mrf.mxu3  ;;  %v290_v54 = vpop.f32.mrf.mxu0  ;;  %v446_v21 = vadd.f32 %v445_v50, %v4641_v56 }
  0xcb   :  { %v364_v58 = vpop.f32.mrf.mxu1  ;;  %v291_v62 = vadd.f32 %v290_v54, %v4623_v45  ;;  %v525_v23 = vadd.f32 %v524_v52, %v4636_v53 }
  0xcc   :  { %v365_v59 = vadd.f32 %v364_v58, %v4653_v11  ;;  %v607_v31 = vmax.f32 %v446_v21, 0.0 }
  0xcd   :  { %3410 = vmatmul.msk.bf16.gmra.mxu0 %vm202_vm2, %v4122_v51  ;;  %3423 = vmatmul.msk.bf16.gmra.mxu1 %vm202_vm2, %v4121_v10  ;;  %v609_v7 = vmax.f32 %v291_v62, 0.0  ;;  %v608_v33 = vmax.f32 %v525_v23, 0.0 }
  0xce   :  { %v602_v60 = vmax.f32 %v365_v59, 0.0  ;;  %3438 = vmatmul.msk.bf16.gmra.mxu2 %vm202_vm2, %v4122_v51 }
  0xcf   :  { %3452 = vmatmul.msk.bf16.gmra.mxu3 %vm202_vm2, %v4122_v51  ;;  %v742_v10 = vadd.f32 %v609_v7, %v605_v6 }
  0xd0   :  { %v708_v0 = vsel %vm694_vm3, %v602_v60, 0.0 }
  0xd1   :  { %v4738_v2 = vadd.f32 %v708_v0, %v707_v63  ;;  %v448_v3 = vpop.f32.mrf.mxu2 }
  0xd2   :  { %v527_v4 = vpop.f32.mrf.mxu3  ;;  %v292_v5 = vpop.f32.mrf.mxu0  ;;  %v449_v14 = vadd.f32 %v448_v3, %v4641_v56 }
  0xd3   :  { %v293_v8 = vadd.f32 %v292_v5, %v4623_v45  ;;  %v366_v9 = vpop.f32.mrf.mxu1  ;;  %v528_v17 = vadd.f32 %v527_v4, %v4636_v53 }
  0xd4   :  { %v611_v27 = vmax.f32 %v449_v14, 0.0  ;;  %v367_v54 = vadd.f32 %v366_v9, %v4653_v11  ;;  %v4152_v9 = vld [vmem:[%s6247_s3 + $0xa0] sm:$0xff] }
  0xd5   :  { %v613_v12 = vmax.f32 %v293_v8, 0.0  ;;  %v612_v28 = vmax.f32 %v528_v17, 0.0  ;;  %1209 = vmatpush.bf16.msrb.mxu2 %v4152_v9 }
  0xd6   :  { %v768_v36 = vadd.f32 %v611_v27, %v607_v31  ;;  %v606_v62 = vmax.f32 %v367_v54, 0.0 }
  0xd7   :  { %v743_v18 = vadd.f32 %v742_v10, %v613_v12  ;;  %v781_v40 = vadd.f32 %v612_v28, %v608_v33  ;;  %v4160_v10 = vld [vmem:[%s6247_s3 + $0xe0] sm:$0xff] }
  0xd8   :  { %v4144_v12 = vld [vmem:[%s6247_s3 + $0x60] sm:$0xff]  ;;  %1222 = vmatpush.bf16.msrb.mxu3 %v4160_v10 }
  0xd9   :  { %v450_v13 = vpop.f32.mrf.mxu2  ;;  %1196 = vmatpush.bf16.msra.mxu1 %v4144_v12 }
  0xda   :  { %v529_v15 = vpop.f32.mrf.mxu3  ;;  %v295_v16 = vpop.f32.mrf.mxu0  ;;  %v451_v22 = vadd.f32 %v450_v13, %v4641_v56 }
  0xdb   :  { %v296_v19 = vadd.f32 %v295_v16, %v4623_v45  ;;  %v369_v20 = vpop.f32.mrf.mxu1  ;;  %v530_v24 = vadd.f32 %v529_v15, %v4636_v53 }
  0xdc   :  { %v615_v32 = vmax.f32 %v451_v22, 0.0  ;;  %v370_v47 = vadd.f32 %v369_v20, %v4653_v11 }
  0xdd   :  { %v617_v26 = vmax.f32 %v296_v19, 0.0  ;;  %3424 = vmatmul.msk.bf16.gmra.mxu1 %vm202_vm2, %v4122_v51  ;;  %v616_v34 = vmax.f32 %v530_v24, 0.0 }
  0xde   :  { %3439 = vmatmul.msk.bf16.gmra.mxu2 %vm202_vm2, %v4556_v30  ;;  %v769_v46 = vadd.f32 %v768_v36, %v615_v32  ;;  %v610_v60 = vmax.f32 %v370_v47, 0.0  ;;  %v723_v32 = vrot.slane %v4712_v42, 4 }
  0xdf   :  { %v744_v29 = vadd.f32 %v743_v18, %v617_v26  ;;  %3453 = vmatmul.msk.bf16.gmra.mxu3 %vm202_vm2, %v4556_v30  ;;  %v782_v50 = vadd.f32 %v781_v40, %v616_v34  ;;  %v697_v18 = vrot.slane %v4704_v25, 4 }
  0xe0   :  { %v755_v6 = vadd.f32 %v610_v60, %v606_v62 }
  0xe1   :  { %v453_v35 = vpop.f32.mrf.mxu2  ;;  %v698_v28 = vadd.f32 %v697_v18, %v4704_v25  ;;  %v4143_v18 = vld [vmem:[%s6247_s3 + $0x58] sm:$0xff] }
  0xe2   :  { %v454_v37 = vadd.f32 %v453_v35, %v4641_v56  ;;  %v532_v38 = vpop.f32.mrf.mxu3  ;;  %v297_v39 = vpop.f32.mrf.mxu0  ;;  %v736_v35 = vrot.slane %v4719_v48, 4  ;;  %1197 = vmatpush.bf16.msra.mxu1 %v4143_v18 }
  0xe3   :  { %v533_v41 = vadd.f32 %v532_v38, %v4636_v53  ;;  %v371_v43 = vpop.f32.mrf.mxu1  ;;  %v298_v52 = vadd.f32 %v297_v39, %v4623_v45 }
  0xe4   :  { %v619_v49 = vmax.f32 %v454_v37, 0.0  ;;  %v372_v58 = vadd.f32 %v371_v43, %v4653_v11 }
  0xe5   :  { %v620_v51 = vmax.f32 %v533_v41, 0.0  ;;  %v621_v61 = vmax.f32 %v298_v52, 0.0  ;;  %v699_v41 = vrot.slane %v698_v28, 2 }
  0xe6   :  { %v770_v57 = vadd.f32 %v769_v46, %v619_v49  ;;  %v614_v0 = vmax.f32 %v372_v58, 0.0  ;;  %v4136_v46 = vld [vmem:[%s6247_s3 + $0x20] sm:$0xff]  ;;  %v4151_v49 = vld [vmem:[%s6247_s3 + $0x98] sm:$0xff] }
  0xe7   :  { %v783_v59 = vadd.f32 %v782_v50, %v620_v51  ;;  %v745_v13 = vadd.f32 %v744_v29, %v621_v61  ;;  %v724_v50 = vadd.f32 %v723_v32, %v4712_v42  ;;  %v737_v51 = vadd.f32 %v736_v35, %v4719_v48  ;;  %1183 = vmatpush.bf16.msrb.mxu0 %v4136_v46 }
  0xe8   :  { %v756_v16 = vadd.f32 %v755_v6, %v614_v0  ;;  %1210 = vmatpush.bf16.msrb.mxu2 %v4151_v49  ;;  %v700_v61 = vadd.f32 %v699_v41, %v698_v28  ;;  %v4135_v49 = vld [vmem:[%s6247_s3 + $0x18] sm:$0xff] }
  0xe9   :  { %v455_v63 = vpop.f32.mrf.mxu2  ;;  %v725_v42 = vrot.slane %v724_v50, 2 }
  0xea   :  { %v534_v1 = vpop.f32.mrf.mxu3  ;;  %v300_v3 = vpop.f32.mrf.mxu0  ;;  %v456_v7 = vadd.f32 %v455_v63, %v4641_v56  ;;  %v701_v9 = vrot.slane %v700_v61, 1 }
  0xeb   :  { %v301_v4 = vadd.f32 %v300_v3, %v4623_v45  ;;  %v374_v5 = vpop.f32.mrf.mxu1  ;;  %v535_v14 = vadd.f32 %v534_v1, %v4636_v53  ;;  %1184 = vmatpush.bf16.msrb.mxu0 %v4135_v49 }
  0xec   :  { %v375_v8 = vadd.f32 %v374_v5, %v4653_v11  ;;  %v623_v20 = vmax.f32 %v456_v7, 0.0  ;;  %v702_v28 = vadd.f32 %v701_v9, %v700_v61 }
  0xed   :  { %v625_v15 = vmax.f32 %v301_v4, 0.0  ;;  %3425 = vmatmul.msk.bf16.gmra.mxu1 %vm202_vm2, %v4556_v30  ;;  %v624_v22 = vmax.f32 %v535_v14, 0.0  ;;  %v738_v4 = vrot.slane %v737_v51, 2  ;;  %v710_v14 = vrot.slane %v4738_v2, 4 }
  0xee   :  { %v618_v17 = vmax.f32 %v375_v8, 0.0  ;;  %v771_v33 = vadd.f32 %v770_v57, %v623_v20 }
  0xef   :  { %v746_v19 = vadd.f32 %v745_v13, %v625_v15  ;;  %v784_v36 = vadd.f32 %v783_v59, %v624_v22  ;;  %v4159_v13 = vld [vmem:[%s6247_s3 + $0xd8] sm:$0xff]  ;;  %v739_v22 = vadd.f32 %v738_v4, %v737_v51 }
  0xf0   :  { %v757_v21 = vadd.f32 %v756_v16, %v618_v17  ;;  %1223 = vmatpush.bf16.msrb.mxu3 %v4159_v13 }
  0xf1   :  { %v458_v23 = vpop.f32.mrf.mxu2 }
  0xf2   :  { %v459_v24 = vadd.f32 %v458_v23, %v4641_v56  ;;  %v537_v26 = vpop.f32.mrf.mxu3  ;;  %v302_v27 = vpop.f32.mrf.mxu0 }
  0xf3   :  { %v538_v30 = vadd.f32 %v537_v26, %v4636_v53  ;;  %v303_v29 = vadd.f32 %v302_v27, %v4623_v45  ;;  %v376_v31 = vpop.f32.mrf.mxu1 }
  0xf4   :  { %v627_v34 = vmax.f32 %v459_v24, 0.0  ;;  %v377_v40 = vadd.f32 %v376_v31, %v4653_v11 }
  0xf5   :  { %v628_v37 = vmax.f32 %v538_v30, 0.0  ;;  %v629_v38 = vmax.f32 %v303_v29, 0.0 }
  0xf6   :  { %v772_v39 = vadd.f32 %v771_v33, %v627_v34  ;;  %v622_v57 = vmax.f32 %v377_v40, 0.0  ;;  %v711_v33 = vadd.f32 %v710_v14, %v4738_v2 }
  0xf7   :  { %v785_v43 = vadd.f32 %v784_v36, %v628_v37  ;;  %v747_v25 = vsel %vm694_vm3, %v629_v38, 0.0 }
  0xf8   :  { %v748_v47 = vadd.f32 %v747_v25, %v746_v19  ;;  %v758_v6 = vadd.f32 %v757_v21, %v622_v57  ;;  %v726_v19 = vadd.f32 %v725_v42, %v724_v50  ;;  %v712_v2 = vrot.slane %v711_v33, 2 }
  0xf9   :  { %v460_v52 = vpop.f32.mrf.mxu2 }
  0xfa   :  { %v749_v54 = vrot.slane %v748_v47, 4  ;;  %v461_v58 = vadd.f32 %v460_v52, %v4641_v56  ;;  %v539_v59 = vpop.f32.mrf.mxu3  ;;  %v305_v60 = vpop.f32.mrf.mxu0  ;;  %v727_v37 = vrot.slane %v726_v19, 1  ;;  %v713_v4 = vadd.f32 %v712_v2, %v711_v33 }
  0xfb   :  { %v540_v63 = vadd.f32 %v539_v59, %v4636_v53  ;;  %v379_v62 = vpop.f32.mrf.mxu1  ;;  %v306_v29 = vadd.f32 %v305_v60, %v4623_v45 }
  0xfc   :  { %v750_v0 = vadd.f32 %v749_v54, %v748_v47  ;;  %v631_v1 = vmax.f32 %v461_v58, 0.0  ;;  %v380_v3 = vadd.f32 %v379_v62, %v4653_v11  ;;  %v728_v58 = vadd.f32 %v727_v37, %v726_v19 }
  0xfd   :  { %v632_v48 = vmax.f32 %v540_v63, 0.0  ;;  %v633_v46 = vmax.f32 %v306_v29, 0.0 }
  0xfe   :  { %v751_v5 = vrot.slane %v750_v0, 2  ;;  %v773_v7 = vsel %vm694_vm3, %v631_v1, 0.0  ;;  %v626_v8 = vmax.f32 %v380_v3, 0.0 }
  0xff   :  { %v774_v10 = vadd.f32 %v773_v7, %v772_v39  ;;  %v786_v12 = vsel %vm694_vm3, %v632_v48, 0.0  ;;  %v740_v39 = vrot.slane %v739_v22, 1 }
 0x100   :  { %v752_v15 = vadd.f32 %v751_v5, %v750_v0  ;;  %v787_v16 = vadd.f32 %v786_v12, %v785_v43  ;;  %v759_v17 = vadd.f32 %v758_v6, %v626_v8 }
 0x101   :  { %v775_v20 = vrot.slane %v774_v10, 4  ;;  %v463_v21 = vpop.f32.mrf.mxu2  ;;  %v741_v59 = vadd.f32 %v740_v39, %v739_v22 }
 0x102   :  { %v753_v23 = vrot.slane %v752_v15, 1  ;;  %v788_v24 = vrot.slane %v787_v16, 4  ;;  %v542_v26 = vpop.f32.mrf.mxu3  ;;  %v307_v27 = vpop.f32.mrf.mxu0  ;;  %v464_v12 = vadd.f32 %v463_v21, %v4641_v56 }
 0x103   :  { %v776_v30 = vadd.f32 %v775_v20, %v774_v10  ;;  %v308_v31 = vadd.f32 %v307_v27, %v4623_v45  ;;  %v381_v32 = vpop.f32.mrf.mxu1  ;;  %v543_v5 = vadd.f32 %v542_v26, %v4636_v53 }
 0x104   :  { %v754_v34 = vadd.f32 %v753_v23, %v752_v15  ;;  %v789_v35 = vadd.f32 %v788_v24, %v787_v16  ;;  %v382_v36 = vadd.f32 %v381_v32, %v4653_v11  ;;  %v635_v23 = vmax.f32 %v464_v12, 0.0 }
 0x105   :  { %v777_v38 = vrot.slane %v776_v30, 2  ;;  %v637_v47 = vmax.f32 %v308_v31, 0.0  ;;  %v636_v18 = vmax.f32 %v543_v5, 0.0 }
 0x106   :  { %v790_v40 = vrot.slane %v789_v35, 2  ;;  %v630_v41 = vmax.f32 %v382_v36, 0.0  ;;  %v4808_v43 = vsel %vm694_vm3, %v702_v28, %v754_v34 }
 0x107   :  { %v778_v25 = vadd.f32 %v777_v38, %v776_v30  ;;  %v794_v0 = vadd.f32 %v637_v47, %v633_v46 }
 0x108   :  { %v791_v50 = vadd.f32 %v790_v40, %v789_v35  ;;  %v760_v51 = vsel %vm694_vm3, %v630_v41, 0.0 }
 0x109   :  { %v779_v52 = vrot.slane %v778_v25, 1  ;;  %v761_v54 = vadd.f32 %v760_v51, %v759_v17  ;;  %v465_v57 = vpop.f32.mrf.mxu2  ;;  %v714_v17 = vrot.slane %v713_v4, 1 }
 0x10a   :  { %v792_v60 = vrot.slane %v791_v50, 1  ;;  %v544_v61 = vpop.f32.mrf.mxu3  ;;  %v310_v63 = vpop.f32.mrf.mxu0  ;;  %v466_v6 = vadd.f32 %v465_v57, %v4641_v56 }
 0x10b   :  { %v780_v62 = vadd.f32 %v779_v52, %v778_v25  ;;  %v762_v1 = vrot.slane %v761_v54, 4  ;;  %v311_v3 = vadd.f32 %v310_v63, %v4623_v45  ;;  %v384_v42 = vpop.f32.mrf.mxu1  ;;  %v545_v8 = vadd.f32 %v544_v61, %v4636_v53 }
 0x10c   :  { %v793_v48 = vadd.f32 %v792_v60, %v791_v50  ;;  %v639_v16 = vmax.f32 %v466_v6, 0.0  ;;  %v715_v32 = vadd.f32 %v714_v17, %v713_v4  ;;  %v385_v40 = vadd.f32 %v384_v42, %v4653_v11 }
 0x10d   :  { %v763_v7 = vadd.f32 %v762_v1, %v761_v54  ;;  %v641_v9 = vmax.f32 %v311_v3, 0.0  ;;  %v4819_v10 = vsel %vm694_vm3, %v728_v58, %v780_v62  ;;  %v640_v20 = vmax.f32 %v545_v8, 0.0  ;;  %v4158_v8 = vld [vmem:[%s6247_s3 + $0xd0] sm:$0xff] }
 0x10e   :  { %v4823_v13 = vsel %vm694_vm3, %v741_v59, %v793_v48  ;;  %v820_v29 = vadd.f32 %v639_v16, %v635_v23  ;;  %v634_v2 = vmax.f32 %v385_v40, 0.0  ;;  %1224 = vmatpush.bf16.msrb.mxu3 %v4158_v8 }
 0x10f   :  { %v764_v14 = vrot.slane %v763_v7, 2  ;;  %v795_v15 = vadd.f32 %v794_v0, %v641_v9  ;;  %v833_v34 = vadd.f32 %v640_v20, %v636_v18  ;;  %v4142_v9 = vld [vmem:[%s6247_s3 + $0x50] sm:$0xff] }
 0x110   :  { %1198 = vmatpush.bf16.msra.mxu1 %v4142_v9 }
 0x111   :  { %v765_v19 = vadd.f32 %v764_v14, %v763_v7  ;;  %v468_v22 = vpop.f32.mrf.mxu2  ;;  %v4150_v7 = vld [vmem:[%s6247_s3 + $0x90] sm:$0xff] }
 0x112   :  { %v469_v24 = vadd.f32 %v468_v22, %v4641_v56  ;;  %v547_v26 = vpop.f32.mrf.mxu3  ;;  %v312_v27 = vpop.f32.mrf.mxu0  ;;  %1211 = vmatpush.bf16.msrb.mxu2 %v4150_v7 }
 0x113   :  { %v766_v28 = vrot.slane %v765_v19, 1  ;;  %v548_v30 = vadd.f32 %v547_v26, %v4636_v53  ;;  %v386_v21 = vpop.f32.mrf.mxu1  ;;  %v313_v58 = vadd.f32 %v312_v27, %v4623_v45 }
 0x114   :  { %v643_v31 = vmax.f32 %v469_v24, 0.0  ;;  %v387_v37 = vadd.f32 %v386_v21, %v4653_v11 }
 0x115   :  { %v767_v33 = vadd.f32 %v766_v28, %v765_v19  ;;  %v644_v35 = vmax.f32 %v548_v30, 0.0  ;;  %v645_v4 = vmax.f32 %v313_v58, 0.0 }
 0x116   :  { %v821_v36 = vadd.f32 %v820_v29, %v643_v31  ;;  %v638_v25 = vmax.f32 %v387_v37, 0.0 }
 0x117   :  { %v4829_v38 = vsel %vm694_vm3, %v715_v32, %v767_v33  ;;  %v834_v39 = vadd.f32 %v833_v34, %v644_v35  ;;  %v796_v20 = vadd.f32 %v795_v15, %v645_v4  ;;  %v4157_v4 = vld [vmem:[%s6247_s3 + $0xc8] sm:$0xff] }
 0x118   :  { %v807_v54 = vadd.f32 %v638_v25, %v634_v2  ;;  %v4149_v25 = vld [vmem:[%s6247_s3 + $0x88] sm:$0xff]  ;;  %1225 = vmatpush.bf16.msrb.mxu3 %v4157_v4 }
 0x119   :  { %v470_v41 = vpop.f32.mrf.mxu2  ;;  %1212 = vmatpush.bf16.msrb.mxu2 %v4149_v25 }
 0x11a   :  { %v549_v46 = vpop.f32.mrf.mxu3  ;;  %v315_v47 = vpop.f32.mrf.mxu0  ;;  %v471_v50 = vadd.f32 %v470_v41, %v4641_v56 }
 0x11b   :  { %v389_v49 = vpop.f32.mrf.mxu1  ;;  %v550_v52 = vadd.f32 %v549_v46, %v4636_v53  ;;  %v316_v5 = vadd.f32 %v315_v47, %v4623_v45 }
 0x11c   :  { %v390_v51 = vadd.f32 %v389_v49, %v4653_v11  ;;  %v647_v59 = vmax.f32 %v471_v50, 0.0 }
 0x11d   :  { %v648_v61 = vmax.f32 %v550_v52, 0.0  ;;  %v649_v22 = vmax.f32 %v316_v5, 0.0 }
 0x11e   :  { %v642_v57 = vmax.f32 %v390_v51, 0.0  ;;  %v822_v48 = vadd.f32 %v821_v36, %v647_v59 }
 0x11f   :  { %v835_v12 = vadd.f32 %v834_v39, %v648_v61  ;;  %v797_v29 = vadd.f32 %v796_v20, %v649_v22  ;;  %v4134_v39 = vld [vmem:[%s6247_s3 + $0x10] sm:$0xff] }
 0x120   :  { %v808_v60 = vadd.f32 %v807_v54, %v642_v57  ;;  %1185 = vmatpush.bf16.msrb.mxu0 %v4134_v39 }
 0x121   :  { %v473_v63 = vpop.f32.mrf.mxu2 }
 0x122   :  { %v474_v62 = vadd.f32 %v473_v63, %v4641_v56  ;;  %v552_v0 = vpop.f32.mrf.mxu3  ;;  %v317_v1 = vpop.f32.mrf.mxu0 }
 0x123   :  { %v553_v3 = vadd.f32 %v552_v0, %v4636_v53  ;;  %v391_v42 = vpop.f32.mrf.mxu1  ;;  %v318_v17 = vadd.f32 %v317_v1, %v4623_v45 }
 0x124   :  { %v651_v6 = vmax.f32 %v474_v62, 0.0  ;;  %v392_v18 = vadd.f32 %v391_v42, %v4653_v11 }
 0x125   :  { %v652_v14 = vmax.f32 %v553_v3, 0.0  ;;  %v653_v24 = vmax.f32 %v318_v17, 0.0 }
 0x126   :  { %v823_v16 = vadd.f32 %v822_v48, %v651_v6  ;;  %v646_v26 = vmax.f32 %v392_v18, 0.0 }
 0x127   :  { %v836_v19 = vadd.f32 %v835_v12, %v652_v14  ;;  %v798_v34 = vadd.f32 %v797_v29, %v653_v24 }
 0x128   :  { %v809_v35 = vadd.f32 %v808_v60, %v646_v26 }
 0x129   :  { %v475_v23 = vpop.f32.mrf.mxu2 }
 0x12a   :  { %v554_v27 = vpop.f32.mrf.mxu3  ;;  %v320_v28 = vpop.f32.mrf.mxu0  ;;  %v476_v32 = vadd.f32 %v475_v23, %v4641_v56 }
 0x12b   :  { %v321_v30 = vadd.f32 %v320_v28, %v4623_v45  ;;  %v394_v21 = vpop.f32.mrf.mxu1  ;;  %v555_v36 = vadd.f32 %v554_v27, %v4636_v53 }
 0x12c   :  { %v395_v31 = vadd.f32 %v394_v21, %v4653_v11  ;;  %v655_v46 = vmax.f32 %v476_v32, 0.0 }
 0x12d   :  { %v657_v33 = vmax.f32 %v321_v30, 0.0  ;;  %v656_v49 = vmax.f32 %v555_v36, 0.0 }
 0x12e   :  { %v650_v15 = vmax.f32 %v395_v31, 0.0  ;;  %v824_v60 = vadd.f32 %v823_v16, %v655_v46 }
 0x12f   :  { %v799_v37 = vsel %vm694_vm3, %v657_v33, 0.0  ;;  %v837_v63 = vadd.f32 %v836_v19, %v656_v49 }
 0x130   :  { %v800_v40 = vadd.f32 %v799_v37, %v798_v34  ;;  %v810_v41 = vadd.f32 %v809_v35, %v650_v15 }
 0x131   :  { %v478_v47 = vpop.f32.mrf.mxu2 }
 0x132   :  { %v801_v2 = vrot.slane %v800_v40, 4  ;;  %v479_v50 = vadd.f32 %v478_v47, %v4641_v56  ;;  %v557_v51 = vpop.f32.mrf.mxu3  ;;  %v322_v52 = vpop.f32.mrf.mxu0  ;;  %v4133_v47 = vld [vmem:[%s6247_s3 + $0x8] sm:$0xff] }
 0x133   :  { %v558_v54 = vadd.f32 %v557_v51, %v4636_v53  ;;  %v396_v57 = vpop.f32.mrf.mxu1  ;;  %v323_v25 = vadd.f32 %v322_v52, %v4623_v45  ;;  %1186 = vmatpush.bf16.msrb.mxu0 %v4133_v47 }
 0x134   :  { %v802_v58 = vadd.f32 %v801_v2, %v800_v40  ;;  %v659_v59 = vmax.f32 %v479_v50, 0.0  ;;  %v397_v42 = vadd.f32 %v396_v57, %v4653_v11 }
 0x135   :  { %v660_v61 = vmax.f32 %v558_v54, 0.0  ;;  %v661_v51 = vmax.f32 %v323_v25, 0.0 }
 0x136   :  { %v803_v62 = vrot.slane %v802_v58, 2  ;;  %v825_v0 = vsel %vm694_vm3, %v659_v59, 0.0  ;;  %v654_v17 = vmax.f32 %v397_v42, 0.0 }
 0x137   :  { %v826_v1 = vadd.f32 %v825_v0, %v824_v60  ;;  %v838_v3 = vsel %vm694_vm3, %v660_v61, 0.0 }
 0x138   :  { %v804_v48 = vadd.f32 %v803_v62, %v802_v58  ;;  %v839_v5 = vadd.f32 %v838_v3, %v837_v63  ;;  %v811_v30 = vadd.f32 %v810_v41, %v654_v17  ;;  %v4141_v41 = vld [vmem:[%s6247_s3 + $0x48] sm:$0xff] }
 0x139   :  { %v827_v6 = vrot.slane %v826_v1, 4  ;;  %v4869_v7 = vpop.f32.mrf.mxu2  ;;  %1199 = vmatpush.bf16.msra.mxu1 %v4141_v41 }
 0x13a   :  { %v805_v8 = vrot.slane %v804_v48, 1  ;;  %v840_v9 = vrot.slane %v839_v5, 4  ;;  %v4871_v12 = vpop.f32.mrf.mxu3  ;;  %v325_v14 = vpop.f32.mrf.mxu0 }
 0x13b   :  { %v828_v16 = vadd.f32 %v827_v6, %v826_v1  ;;  %v399_v18 = vpop.f32.mrf.mxu1 }
 0x13c   :  { %v806_v19 = vadd.f32 %v805_v8, %v804_v48  ;;  %v841_v20 = vadd.f32 %v840_v9, %v839_v5  ;;  %v400_v22 = vadd.f32 %v399_v18, %v4653_v11  ;;  %v338_v5 = vadd.f32 %v4639_v55, %v4623_v45 }
 0x13d   :  { %v829_v23 = vrot.slane %v828_v16, 2  ;;  %v336_v9 = vadd.f32 %v4621_v44, %v4623_v45  ;;  %v4148_v44 = vld [vmem:[%s6247_s3 + $0x80] sm:$0xff] }
 0x13e   :  { %v842_v24 = vrot.slane %v841_v20, 2  ;;  %v658_v26 = vmax.f32 %v400_v22, 0.0  ;;  %v4876_v27 = vsel %vm902_vm4, %v4808_v43, %v806_v19  ;;  %v326_v43 = vadd.f32 %v325_v14, %v4623_v45  ;;  %1213 = vmatpush.bf16.msrb.mxu2 %v4148_v44 }
 0x13f   :  { %v830_v28 = vadd.f32 %v829_v23, %v828_v16  ;;  %v685_v19 = vmax.f32 %v338_v5, 0.0 }
 0x140   :  { %v843_v21 = vadd.f32 %v842_v24, %v841_v20  ;;  %v812_v29 = vsel %vm694_vm3, %v658_v26, 0.0  ;;  %v665_v52 = vmax.f32 %v326_v43, 0.0  ;;  %v681_v20 = vmax.f32 %v336_v9, 0.0 }
 0x141   :  { %v831_v31 = vrot.slane %v830_v28, 1  ;;  %v813_v32 = vadd.f32 %v812_v29, %v811_v30  ;;  %v483_v33 = vpop.f32.mrf.mxu2  ;;  %v851_v24 = vsel %vm694_vm3, %v685_v19, 0.0  ;;  %v4140_v29 = vld [vmem:[%s6247_s3 + $0x40] sm:$0xff] }
 0x142   :  { %v844_v34 = vrot.slane %v843_v21, 1  ;;  %v562_v35 = vpop.f32.mrf.mxu3  ;;  %v327_v36 = vpop.f32.mrf.mxu0  ;;  %v846_v62 = vadd.f32 %v665_v52, %v661_v51  ;;  %v484_v30 = vadd.f32 %v483_v33, %v4641_v56  ;;  %v560_v33 = vadd.f32 %v4871_v12, %v4636_v53  ;;  %1200 = vmatpush.bf16.msra.mxu1 %v4140_v29 }
 0x143   :  { %v832_v15 = vadd.f32 %v831_v31, %v830_v28  ;;  %v814_v37 = vrot.slane %v813_v32, 4  ;;  %v4879_v39 = vpop.f32.mrf.mxu1  ;;  %v328_v57 = vadd.f32 %v327_v36, %v4623_v45 }
 0x144   :  { %v845_v40 = vadd.f32 %v844_v34, %v843_v21  ;;  %v563_v21 = vadd.f32 %v562_v35, %v4636_v53  ;;  %v664_v41 = vmax.f32 %v560_v33, 0.0 }
 0x145   :  { %v815_v46 = vadd.f32 %v814_v37, %v813_v32  ;;  %v4891_v49 = vsel %vm902_vm4, %v4819_v10, %v832_v15  ;;  %v4132_v10 = vld [vmem:[%s6247_s3] sm:$0xff]  ;;  %v669_v0 = vmax.f32 %v328_v57, 0.0  ;;  %v481_v32 = vadd.f32 %v4869_v7, %v4641_v56 }
 0x146   :  { %v4895_v2 = vsel %vm902_vm4, %v4823_v13, %v845_v40  ;;  %1187 = vmatpush.bf16.msrb.mxu0 %v4132_v10  ;;  %v667_v15 = vmax.f32 %v484_v30, 0.0  ;;  %v668_v37 = vmax.f32 %v563_v21, 0.0 }
 0x147   :  { %v816_v50 = vrot.slane %v815_v46, 2  ;;  %v847_v42 = vadd.f32 %v846_v62, %v669_v0  ;;  %v663_v7 = vmax.f32 %v481_v32, 0.0 }
 0x149   :  { %v817_v54 = vadd.f32 %v816_v50, %v815_v46  ;;  %v485_v58 = vpop.f32.mrf.mxu2 }
 0x14a   :  { %v564_v59 = vpop.f32.mrf.mxu3  ;;  %v330_v60 = vpop.f32.mrf.mxu0  ;;  %v486_v34 = vadd.f32 %v485_v58, %v4641_v56  ;;  %v872_v58 = vadd.f32 %v667_v15, %v663_v7 }
 0x14b   :  { %v818_v61 = vrot.slane %v817_v54, 1  ;;  %v404_v63 = vpop.f32.mrf.mxu1  ;;  %v331_v1 = vadd.f32 %v330_v60, %v4623_v45  ;;  %v565_v35 = vadd.f32 %v564_v59, %v4636_v53  ;;  %v885_v59 = vadd.f32 %v668_v37, %v664_v41 }
 0x14c   :  { %v671_v47 = vmax.f32 %v486_v34, 0.0  ;;  %v405_v51 = vadd.f32 %v404_v63, %v4653_v11  ;;  %v402_v60 = vadd.f32 %v4879_v39, %v4653_v11  ;;  %v4190_v34 = vld [vmem:[%s6249_s6 + $0xcc] sm:$0xf0] }
 0x14d   :  { %v819_v13 = vadd.f32 %v818_v61, %v817_v54  ;;  %v673_v4 = vmax.f32 %v331_v1, 0.0  ;;  %v672_v50 = vmax.f32 %v565_v35, 0.0 }
 0x14e   :  { %v873_v1 = vadd.f32 %v872_v58, %v671_v47  ;;  %v3664_v47 = vld [vmem:[%s6249_s6 + $0xa0] sm:$0xf] }
 0x14f   :  { %v4904_v3 = vsel %vm902_vm4, %v4829_v38, %v819_v13  ;;  %v848_v17 = vadd.f32 %v847_v42, %v673_v4  ;;  %v886_v63 = vadd.f32 %v885_v59, %v672_v50  ;;  %v666_v4 = vmax.f32 %v405_v51, 0.0  ;;  %v3808_v51 = vld [vmem:[%s6249_s6 + $0x1c0] sm:$0xf] }
 0x151   :  { %v488_v48 = vpop.f32.mrf.mxu2 }
 0x152   :  { %v567_v6 = vpop.f32.mrf.mxu3  ;;  %v332_v8 = vpop.f32.mrf.mxu0  ;;  %v489_v40 = vadd.f32 %v488_v48, %v4641_v56 }
 0x153   :  { %v333_v14 = vadd.f32 %v332_v8, %v4623_v45  ;;  %v406_v16 = vpop.f32.mrf.mxu1  ;;  %v4156_v45 = vld [vmem:[%s6247_s3 + $0xc0] sm:$0xff]  ;;  %v568_v25 = vadd.f32 %v567_v6, %v4636_v53  ;;  %v662_v6 = vmax.f32 %v402_v60, 0.0 }
 0x154   :  { %1226 = vmatpush.bf16.msrb.mxu3 %v4156_v45  ;;  %v675_v10 = vmax.f32 %v489_v40, 0.0  ;;  %v407_v8 = vadd.f32 %v406_v16, %v4653_v11  ;;  %v3824_v40 = vld [vmem:[%s6249_s6 + $0x1e0] sm:$0xf] }
 0x155   :  { %v677_v18 = vmax.f32 %v333_v14, 0.0  ;;  %v676_v62 = vmax.f32 %v568_v25, 0.0  ;;  %v4226_v25 = vld [vmem:[%s6249_s6 + $0x1ec] sm:$0xf0] }
 0x156   :  { %v874_v39 = vadd.f32 %v873_v1, %v675_v10  ;;  %v670_v21 = vmax.f32 %v407_v8, 0.0  ;;  %v3825_v41 = vor.u32 %v4226_v25, %v3824_v40  ;;  %v4192_v10 = vld [vmem:[%s6249_s6 + $0xe4] sm:$0xf]  ;;  %v3698_v1 = vld [vmem:[%s6249_s6 + $0xf0] sm:$0xf0] }
 0x157   :  { %v849_v38 = vadd.f32 %v848_v17, %v677_v18  ;;  %v887_v14 = vadd.f32 %v886_v63, %v676_v62  ;;  %v4182_v8 = vld [vmem:[%s6249_s6 + $0x8c] sm:$0xf0]  ;;  %v3666_v40 = vld [vmem:[%s6249_s6 + $0xb0] sm:$0xf0] }
 0x158   :  { %1725 = vmatpush.bf16.msrb.mxu1 %v3825_v41 }
 0x159   :  { %v850_v22 = vadd.f32 %v849_v38, %v681_v20  ;;  %v490_v23 = vpop.f32.mrf.mxu2 }
 0x15a   :  { %v569_v26 = vpop.f32.mrf.mxu3  ;;  %v491_v54 = vadd.f32 %v490_v23, %v4641_v56 }
 0x15b   :  { %v852_v28 = vadd.f32 %v851_v24, %v850_v22  ;;  %v409_v55 = vpop.f32.mrf.mxu1  ;;  %v570_v61 = vadd.f32 %v569_v26, %v4636_v53  ;;  %v859_v26 = vadd.f32 %v666_v4, %v662_v6  ;;  %v3701_v6 = vor.u32 %v4192_v10, %v3698_v1  ;;  %v3744_v1 = vld [vmem:[%s6249_s6 + $0x140] sm:$0xf] }
 0x15c   :  { %v679_v48 = vmax.f32 %v491_v54, 0.0  ;;  %v410_v20 = vadd.f32 %v409_v55, %v4653_v11  ;;  %v4194_v55 = vld [vmem:[%s6249_s6 + $0xec] sm:$0xf0]  ;;  %v3872_v54 = vld [vmem:[%s6249_s6 + $0x240] sm:$0xf] }
 0x15d   :  { %v853_v31 = vrot.slane %v852_v28, 4  ;;  %v680_v9 = vmax.f32 %v570_v61, 0.0  ;;  %v4238_v61 = vld [vmem:[%s6249_s6 + $0x24c] sm:$0x30]  ;;  %1751 = vmatpush.bf16.msra.mxu3 %v3701_v6  ;;  %v3810_v6 = vld [vmem:[%s6249_s6 + $0x1d0] sm:$0xf0] }
 0x15e   :  { %v674_v35 = vmax.f32 %v410_v20, 0.0  ;;  %v4234_v20 = vld [vmem:[%s6249_s6 + $0x22c] sm:$0xf0] }
 0x15f   :  { %v854_v36 = vadd.f32 %v853_v31, %v852_v28  ;;  %v875_v28 = vadd.f32 %v874_v39, %v679_v48  ;;  %v888_v44 = vadd.f32 %v887_v14, %v680_v9  ;;  %v3792_v9 = vld [vmem:[%s6249_s6 + $0x1a0] sm:$0xf]  ;;  %v4218_v39 = vld [vmem:[%s6249_s6 + $0x1ac] sm:$0xf0] }
 0x161   :  { %v855_v43 = vrot.slane %v854_v36, 2  ;;  %v493_v46 = vpop.f32.mrf.mxu2 }
 0x162   :  { %v572_v12 = vpop.f32.mrf.mxu3  ;;  %v494_v0 = vadd.f32 %v493_v46, %v4641_v56 }
 0x163   :  { %v856_v52 = vadd.f32 %v855_v43, %v854_v36  ;;  %v411_v57 = vpop.f32.mrf.mxu1  ;;  %v573_v42 = vadd.f32 %v572_v12, %v4636_v53  ;;  %v4186_v12 = vld [vmem:[%s6249_s6 + $0xac] sm:$0xf0] }
 0x164   :  { %v683_v17 = vmax.f32 %v494_v0, 0.0  ;;  %v412_v31 = vadd.f32 %v411_v57, %v4653_v11  ;;  %v860_v57 = vadd.f32 %v859_v26, %v670_v21  ;;  %v3873_v0 = vor.u32 %v4238_v61, %v3872_v54  ;;  %v3682_v26 = vld [vmem:[%s6249_s6 + $0xd0] sm:$0xf0]  ;;  %v3632_v21 = vld [vmem:[%s6249_s6 + $0x60] sm:$0xf] }
 0x165   :  { %v857_v13 = vrot.slane %v856_v52, 1  ;;  %v684_v38 = vmax.f32 %v573_v42, 0.0  ;;  %v3648_v42 = vld [vmem:[%s6249_s6 + $0x80] sm:$0xf]  ;;  %v4180_v54 = vld [vmem:[%s6249_s6 + $0x84] sm:$0xf] }
 0x166   :  { %v678_v58 = vmax.f32 %v412_v31, 0.0  ;;  %v861_v63 = vadd.f32 %v860_v57, %v674_v35  ;;  %v3840_v31 = vld [vmem:[%s6249_s6 + $0x200] sm:$0xf]  ;;  %v3650_v57 = vld [vmem:[%s6249_s6 + $0x90] sm:$0xf0] }
 0x167   :  { %v858_v5 = vadd.f32 %v857_v13, %v856_v52  ;;  %v889_v36 = vadd.f32 %v888_v44, %v684_v38  ;;  %v4222_v52 = vld [vmem:[%s6249_s6 + $0x1cc] sm:$0xf0] }
 0x168   :  { %v3809_v60 = vor.u32 %v4222_v52, %v3808_v51  ;;  %v862_v38 = vadd.f32 %v861_v63, %v678_v58  ;;  %v4178_v44 = vld [vmem:[%s6249_s6 + $0x6c] sm:$0xf0] }
 0x169   :  { %v495_v18 = vpop.f32.mrf.mxu2  ;;  %v908_v19 = vsel %vm907_vm5, %v4876_v27, %v858_v5  ;;  %v3696_v27 = vld [vmem:[%s6249_s6 + $0xe0] sm:$0xf]  ;;  %v3665_v5 = vor.u32 %v4186_v12, %v3664_v47  ;;  %v3633_v47 = vor.u32 %v4178_v44, %v3632_v21  ;;  %v3826_v12 = vld [vmem:[%s6249_s6 + $0x1f0] sm:$0xf0]  ;;  %v4210_v52 = vld [vmem:[%s6249_s6 + $0x16c] sm:$0xf0] }
 0x16a   :  { %v496_v22 = vadd.f32 %v495_v18, %v4641_v56  ;;  %v574_v23 = vpop.f32.mrf.mxu3  ;;  %v912_v24 = vmul.f32 0.020408163, %v908_v19  ;;  %v876_v56 = vadd.f32 %v875_v28, %v683_v17  ;;  %v3697_v33 = vor.u32 %v4194_v55, %v3696_v27  ;;  %v3856_v19 = vld [vmem:[%s6249_s6 + $0x220] sm:$0xf]  ;;  %1726 = vmatpush.bf16.msrb.mxu1 %v3809_v60  ;;  %v4174_v61 = vld [vmem:[%s6249_s6 + $0x4c] sm:$0xf0] }
 0x16b   :  { %v575_v30 = vadd.f32 %v574_v23, %v4636_v53  ;;  %v414_v16 = vpop.f32.mrf.mxu1  ;;  %v3680_v53 = vld [vmem:[%s6249_s6 + $0xc0] sm:$0xf]  ;;  %v1701_v18 = vsel %vm246_vm1, %v3873_v0, 0  ;;  %v3793_v23 = vor.u32 %v4218_v39, %v3792_v9  ;;  %v3649_v27 = vor.u32 %v4182_v8, %v3648_v42  ;;  %v4176_v8 = vld [vmem:[%s6249_s6 + $0x64] sm:$0xf] }
 0x16c   :  { %v687_v45 = vmax.f32 %v496_v22, 0.0  ;;  %v916_v29 = vpack.c.bf16 %v912_v24, %v912_v24  ;;  %v415_v37 = vadd.f32 %v414_v16, %v4653_v11  ;;  %1712 = vmatpush.bf16.msra.mxu0 %v3697_v33  ;;  %v3681_v7 = vor.u32 %v4190_v34, %v3680_v53  ;;  %1743 = vmatpush.bf16.msra.mxu2 %v1701_v18  ;;  %v3776_v55 = vld [vmem:[%s6249_s6 + $0x180] sm:$0xf]  ;;  %v4230_v53 = vld [vmem:[%s6249_s6 + $0x20c] sm:$0xf0] }
 0x16d   :  { %v688_v32 = vmax.f32 %v575_v30, 0.0  ;;  %v3857_v24 = vor.u32 %v4234_v20, %v3856_v19  ;;  %v4184_v34 = vld [vmem:[%s6249_s6 + $0xa4] sm:$0xf]  ;;  %v3616_v60 = vld [vmem:[%s6249_s6 + $0x40] sm:$0xf]  ;;  %v3653_v0 = vor.u32 %v4180_v54, %v3650_v57 }
 0x16e   :  { %v877_v15 = vsel %vm694_vm3, %v687_v45, 0.0  ;;  %1188 = vmatmul.bf16.vlgmr.msrb.gmra.mxu0 %v916_v29  ;;  %v682_v13 = vmax.f32 %v415_v37, 0.0  ;;  %1727 = vmatpush.bf16.msrb.mxu1 %v3793_v23  ;;  %v3841_v37 = vor.u32 %v4230_v53, %v3840_v31  ;;  %v3634_v9 = vld [vmem:[%s6249_s6 + $0x70] sm:$0xf0]  ;;  %v4170_v18 = vld [vmem:[%s6249_s6 + $0x2c] sm:$0xf0] }
 0x16f   :  { %v878_v43 = vadd.f32 %v877_v15, %v876_v56  ;;  %v890_v46 = vsel %vm694_vm3, %v688_v32, 0.0  ;;  %v4214_v56 = vld [vmem:[%s6249_s6 + $0x18c] sm:$0xf0]  ;;  %v3637_v20 = vor.u32 %v4176_v8, %v3634_v9  ;;  %v4236_v23 = vld [vmem:[%s6249_s6 + $0x244] sm:$0xf] }
 0x170   :  { %v891_v50 = vadd.f32 %v890_v46, %v889_v36  ;;  %1713 = vmatpush.bf16.msra.mxu0 %v3681_v7  ;;  %v863_v29 = vadd.f32 %v862_v38, %v682_v13  ;;  %1744 = vmatpush.bf16.msra.mxu2 %v3857_v24  ;;  %v3777_v15 = vor.u32 %v4214_v56, %v3776_v55  ;;  %v4224_v46 = vld [vmem:[%s6249_s6 + $0x1e4] sm:$0xf]  ;;  %v3728_v38 = vld [vmem:[%s6249_s6 + $0x120] sm:$0xf]  ;;  %v3794_v44 = vld [vmem:[%s6249_s6 + $0x1b0] sm:$0xf0] }
 0x171   :  { %v879_v59 = vrot.slane %v878_v43, 4  ;;  %v4216_v21 = vld [vmem:[%s6249_s6 + $0x1a4] sm:$0xf]  ;;  %v4166_v55 = vld [vmem:[%s6249_s6 + $0xc] sm:$0xf0] }
 0x172   :  { %v892_v62 = vrot.slane %v891_v50, 4  ;;  %1728 = vmatpush.bf16.msrb.mxu1 %v3777_v15  ;;  %v3712_v53 = vld [vmem:[%s6249_s6 + $0x100] sm:$0xf]  ;;  %v1233_v15 = vld [vmem:[%s6250_s5 + $0x8] sm:$0xf] }
 0x173   :  { %v880_v4 = vadd.f32 %v879_v59, %v878_v43  ;;  %v416_v48 = vpop.f32.mrf.mxu1  ;;  %v3669_v43 = vor.u32 %v4184_v34, %v3666_v40  ;;  %v4198_v34 = vld [vmem:[%s6249_s6 + $0x10c] sm:$0xf0]  ;;  %v4168_v40 = vld [vmem:[%s6249_s6 + $0x24] sm:$0xf] }
 0x174   :  { %v893_v14 = vadd.f32 %v892_v62, %v891_v50  ;;  %v417_v17 = vadd.f32 %v416_v48, %v4653_v11  ;;  %v4188_v11 = vld [vmem:[%s6249_s6 + $0xc4] sm:$0xf]  ;;  %1714 = vmatpush.bf16.msra.mxu0 %v3665_v5  ;;  %v3760_v50 = vld [vmem:[%s6249_s6 + $0x160] sm:$0xf]  ;;  %1745 = vmatpush.bf16.msra.mxu2 %v3841_v37  ;;  %v4206_v48 = vld [vmem:[%s6249_s6 + $0x14c] sm:$0xf0] }
 0x175   :  { %v881_v22 = vrot.slane %v880_v4, 2  ;;  %v3685_v16 = vor.u32 %v4188_v11, %v3682_v26  ;;  %v3761_v10 = vor.u32 %v4210_v52, %v3760_v50  ;;  %v3745_v19 = vor.u32 %v4206_v48, %v3744_v1  ;;  %v3874_v26 = vld [vmem:[%s6249_s6 + $0x250] sm:$0x30]  ;;  %v4232_v50 = vld [vmem:[%s6249_s6 + $0x224] sm:$0xf] }
 0x176   :  { %v894_v28 = vrot.slane %v893_v14, 2  ;;  %v686_v30 = vmax.f32 %v417_v17, 0.0  ;;  %v3600_v17 = vld [vmem:[%s6249_s6 + $0x20] sm:$0xf]  ;;  %v3877_v31 = vor.u32 %v4236_v23, %v3874_v26  ;;  %v4208_v1 = vld [vmem:[%s6249_s6 + $0x164] sm:$0xf] }
 0x177   :  { %v882_v45 = vadd.f32 %v881_v22, %v880_v4  ;;  %1752 = vmatpush.bf16.msra.mxu3 %v3685_v16  ;;  %v3829_v4 = vor.u32 %v4224_v46, %v3826_v12  ;;  %1729 = vmatpush.bf16.msrb.mxu1 %v3761_v10  ;;  %v4202_v22 = vld [vmem:[%s6249_s6 + $0x12c] sm:$0xf0]  ;;  %v3601_v16 = vor.u32 %v4170_v18, %v3600_v17  ;;  %v4227_v48 = vld [vmem:[%s6249_s6 + $0x1f4] sm:$0xf0]  ;;  %v3672_v18 = vld [vmem:[%s6249_s6 + $0xa8] sm:$0xf] }
 0x178   :  { %v895_v32 = vadd.f32 %v894_v28, %v893_v14  ;;  %v864_v33 = vsel %vm694_vm3, %v686_v30, 0.0  ;;  %1715 = vmatpush.bf16.msra.mxu0 %v3649_v27  ;;  %v4172_v28 = vld [vmem:[%s6249_s6 + $0x44] sm:$0xf]  ;;  %v3584_v27 = vld [vmem:[%s6249_s6] sm:$0xf]  ;;  %v3729_v56 = vor.u32 %v4202_v22, %v3728_v38  ;;  %v3713_v12 = vor.u32 %v4198_v34, %v3712_v53 }
 0x179   :  { %v883_v35 = vrot.slane %v882_v45, 1  ;;  %v865_v36 = vadd.f32 %v864_v33, %v863_v29  ;;  %v5111_v30 = vld [vmem:[%s6250_s5] sm:$0xff]  ;;  %v3585_v46 = vor.u32 %v4166_v55, %v3584_v27  ;;  %v3746_v38 = vld [vmem:[%s6249_s6 + $0x150] sm:$0xf0]  ;;  %v3816_v22 = vld [vmem:[%s6249_s6 + $0x1c8] sm:$0xf] }
 0x17a   :  { %v896_v25 = vrot.slane %v895_v32, 1  ;;  %v4212_v33 = vld [vmem:[%s6249_s6 + $0x184] sm:$0xf]  ;;  %v1312_v37 = vunpack.c.l.b16 %v5111_v30  ;;  %v4223_v23 = vld [vmem:[%s6249_s6 + $0x1d4] sm:$0xf0] }
 0x17b   :  { %v884_v7 = vadd.f32 %v883_v35, %v882_v45  ;;  %v866_v41 = vrot.slane %v865_v36, 4  ;;  %1753 = vmatpush.bf16.msra.mxu3 %v3669_v43  ;;  %v3618_v45 = vld [vmem:[%s6249_s6 + $0x50] sm:$0xf0]  ;;  %1730 = vmatpush.bf16.msrb.mxu1 %v3745_v19  ;;  %v4187_v19 = vld [vmem:[%s6249_s6 + $0xb4] sm:$0xf0] }
 0x17c   :  { %v897_v51 = vadd.f32 %v896_v25, %v895_v32  ;;  %1716 = vmatpush.bf16.msra.mxu0 %v3633_v47  ;;  %v3621_v32 = vor.u32 %v4172_v28, %v3618_v45  ;;  %v3602_v25 = vld [vmem:[%s6249_s6 + $0x30] sm:$0xf0]  ;;  %v1704_v47 = vsel %vm246_vm1, %v3877_v31, 0  ;;  %v3673_v26 = vor.u32 %v4187_v19, %v3672_v18  ;;  %v3864_v28 = vld [vmem:[%s6249_s6 + $0x228] sm:$0xf] }
 0x17d   :  { %v867_v58 = vadd.f32 %v866_v41, %v865_v36  ;;  %v910_v59 = vsel %vm907_vm5, %v4891_v49, %v884_v7  ;;  %v4220_v49 = vld [vmem:[%s6249_s6 + $0x1c4] sm:$0xf]  ;;  %v3797_v36 = vor.u32 %v4216_v21, %v3794_v44  ;;  %v3778_v7 = vld [vmem:[%s6249_s6 + $0x190] sm:$0xf0]  ;;  %v4195_v41 = vld [vmem:[%s6249_s6 + $0xf4] sm:$0xf0]  ;;  %v3605_v54 = vor.u32 %v4168_v40, %v3602_v25 }
 0x17e   :  { %v914_v62 = vmul.f32 0.020408163, %v910_v59  ;;  %v911_v13 = vsel %vm907_vm5, %v4895_v2, %v897_v51  ;;  %v3617_v2 = vor.u32 %v4174_v61, %v3616_v60  ;;  %v3813_v11 = vor.u32 %v4220_v49, %v3810_v6  ;;  %v3858_v51 = vld [vmem:[%s6249_s6 + $0x230] sm:$0xf0]  ;;  %v3688_v60 = vld [vmem:[%s6249_s6 + $0xc8] sm:$0xf] }
 0x17f   :  { %v868_v42 = vrot.slane %v867_v58, 2  ;;  %v915_v63 = vmul.f32 0.020408163, %v911_v13  ;;  %1754 = vmatpush.bf16.msra.mxu3 %v3653_v0  ;;  %1731 = vmatpush.bf16.msrb.mxu1 %v3729_v56  ;;  %v3586_v59 = vld [vmem:[%s6249_s6 + $0x10] sm:$0xf0]  ;;  %v5174_v61 = vpack.c.b16 %v1312_v37, %v1312_v37  ;;  %v3781_v10 = vor.u32 %v4212_v33, %v3778_v7 }
 0x180   :  { %v918_v5 = vpack.c.bf16 %v914_v62, %v914_v62  ;;  %1717 = vmatpush.bf16.msra.mxu0 %v3617_v2  ;;  %v4191_v62 = vld [vmem:[%s6249_s6 + $0xd4] sm:$0xf0]  ;;  %v3880_v13 = vld [vmem:[%s6249_s6 + $0x248] sm:$0xf]  ;;  %v1314_v49 = vunpack.c.l.b16 %v1233_v15  ;;  %v3842_v2 = vld [vmem:[%s6249_s6 + $0x210] sm:$0xf0]  ;;  %v3817_v45 = vor.u32 %v4223_v23, %v3816_v22 }
 0x181   :  { %v869_v39 = vadd.f32 %v868_v42, %v867_v58  ;;  %v919_v14 = vpack.c.bf16 %v915_v63, %v915_v63  ;;  %v4164_v58 = vld [vmem:[%s6249_s6 + $0x4] sm:$0xf]  ;;  %v4239_v0 = vld [vmem:[%s6249_s6 + $0x254] sm:$0x30]  ;;  %v3762_v42 = vld [vmem:[%s6249_s6 + $0x170] sm:$0xf0]  ;;  %v3689_v8 = vor.u32 %v4191_v62, %v3688_v60 }
 0x182   :  { %1214 = vmatmul.bf16.vlgmr.msrb.gmra.mxu2 %v918_v5  ;;  %v3832_v63 = vld [vmem:[%s6249_s6 + $0x1e8] sm:$0xf]  ;;  %v4228_v5 = vld [vmem:[%s6249_s6 + $0x204] sm:$0xf]  ;;  %v3589_v6 = vor.u32 %v4164_v58, %v3586_v59  ;;  %v3881_v9 = vor.u32 %v4239_v0, %v3880_v13  ;;  %v4183_v27 = vld [vmem:[%s6249_s6 + $0x94] sm:$0xf0] }
 0x183   :  { %v870_v24 = vrot.slane %v869_v39, 1  ;;  %1227 = vmatmul.bf16.vlgmr.msrb.gmra.mxu3 %v919_v14  ;;  %1764 = vmatpush.bf16.msrb.mxu2 %v3829_v4  ;;  %v3861_v4 = vor.u32 %v4232_v50, %v3858_v51  ;;  %v4204_v14 = vld [vmem:[%s6249_s6 + $0x144] sm:$0xf]  ;;  %v3833_v17 = vor.u32 %v4227_v48, %v3832_v63  ;;  %v3730_v55 = vld [vmem:[%s6249_s6 + $0x130] sm:$0xf0] }
 0x184   :  { %1755 = vmatpush.bf16.msra.mxu3 %v3637_v20  ;;  %1718 = vmatpush.bf16.msra.mxu0 %v3601_v16  ;;  %v5213_v20 = vpack.c.b16 %v1314_v49, %v1314_v49  ;;  %v4235_v16 = vld [vmem:[%s6249_s6 + $0x234] sm:$0xf0]  ;;  %v3749_v21 = vor.u32 %v4204_v14, %v3746_v38  ;;  %v4200_v44 = vld [vmem:[%s6249_s6 + $0x124] sm:$0xf]  ;;  %v3800_v56 = vld [vmem:[%s6249_s6 + $0x1a8] sm:$0xf] }
 0x185   :  { %v871_v29 = vadd.f32 %v870_v24, %v869_v39  ;;  %1732 = vmatpush.bf16.msrb.mxu1 %v3713_v12  ;;  %v3765_v39 = vor.u32 %v4208_v1, %v3762_v42  ;;  %v3845_v24 = vor.u32 %v4228_v5, %v3842_v2  ;;  %v4219_v31 = vld [vmem:[%s6249_s6 + $0x1b4] sm:$0xf0]  ;;  %v3865_v33 = vor.u32 %v4235_v16, %v3864_v28  ;;  %v3848_v34 = vld [vmem:[%s6249_s6 + $0x208] sm:$0xf]  ;;  %v4196_v40 = vld [vmem:[%s6249_s6 + $0x104] sm:$0xf] }
 0x186   :  { %v3801_v15 = vor.u32 %v4219_v31, %v3800_v56  ;;  %v4179_v37 = vld [vmem:[%s6249_s6 + $0x74] sm:$0xf0]  ;;  %v3714_v25 = vld [vmem:[%s6249_s6 + $0x110] sm:$0xf0]  ;;  %v4193_v7 = vld [vmem:[%s6249_s6 + $0xec] sm:$0xf] }
 0x187   :  { %v909_v35 = vsel %vm907_vm5, %v4904_v3, %v871_v29  ;;  %1765 = vmatpush.bf16.msrb.mxu2 %v3813_v11  ;;  %v3704_v3 = vld [vmem:[%s6249_s6 + $0xe8] sm:$0xf]  ;;  %v1707_v11 = vsel %vm246_vm1, %v3881_v9, 0  ;;  %v4215_v51 = vld [vmem:[%s6249_s6 + $0x194] sm:$0xf0] }
 0x188   :  { %v913_v43 = vmul.f32 0.020408163, %v909_v35  ;;  %1756 = vmatpush.bf16.msra.mxu3 %v3621_v32  ;;  %v3705_v57 = vor.u32 %v4195_v41, %v3704_v3  ;;  %1719 = vmatpush.bf16.msra.mxu0 %v3585_v46  ;;  %v3656_v29 = vld [vmem:[%s6249_s6 + $0x88] sm:$0xf]  ;;  %v1313_v32 = vunpack.c.h.b16 %v5111_v30  ;;  %v3733_v35 = vor.u32 %v4200_v44, %v3730_v55  ;;  %v4225_v3 = vld [vmem:[%s6249_s6 + $0x1ec] sm:$0xf] }
 0x189   :  { %v3657_v53 = vor.u32 %v4183_v27, %v3656_v29  ;;  %v3640_v30 = vld [vmem:[%s6249_s6 + $0x68] sm:$0xf]  ;;  %v3834_v46 = vld [vmem:[%s6249_s6 + $0x1f8] sm:$0xf0]  ;;  %v4221_v60 = vld [vmem:[%s6249_s6 + $0x1cc] sm:$0xf] }
 0x18a   :  { %v917_v52 = vpack.c.bf16 %v913_v43, %v913_v43  ;;  %v5274_v43 = vpack.c.b16 %v1313_v32, %v1313_v32  ;;  %v3706_v41 = vld [vmem:[%s6249_s6 + $0xf8] sm:$0xf0]  ;;  %v3641_v12 = vor.u32 %v4179_v37, %v3640_v30  ;;  %v3784_v50 = vld [vmem:[%s6249_s6 + $0x188] sm:$0xf]  ;;  %v3837_v58 = vor.u32 %v4225_v3, %v3834_v46  ;;  %v4189_v13 = vld [vmem:[%s6249_s6 + $0xcc] sm:$0xf] }
 0x18b   :  { %1766 = vmatpush.bf16.msrb.mxu2 %v3797_v36  ;;  %1720 = vmatmul.bf16.vlgmr.msra.gmra.mxu0 %v5174_v61  ;;  %v4231_v36 = vld [vmem:[%s6249_s6 + $0x214] sm:$0xf0]  ;;  %v3709_v59 = vor.u32 %v4193_v7, %v3706_v41  ;;  %v3818_v62 = vld [vmem:[%s6249_s6 + $0x1d8] sm:$0xf0]  ;;  %v3768_v1 = vld [vmem:[%s6249_s6 + $0x168] sm:$0xf] }
 0x18c   :  { %1201 = vmatmul.bf16.vlgmr.msra.gmra.mxu1 %v917_v52  ;;  %1782 = vmatpush.bf16.msrb.mxu0 %v1704_v47  ;;  %v3849_v47 = vor.u32 %v4231_v36, %v3848_v34  ;;  %v3717_v52 = vor.u32 %v4196_v40, %v3714_v25  ;;  %v3690_v0 = vld [vmem:[%s6249_s6 + $0xd8] sm:$0xf0]  ;;  %v4211_v42 = vld [vmem:[%s6249_s6 + $0x174] sm:$0xf0]  ;;  %v3608_v63 = vld [vmem:[%s6249_s6 + $0x28] sm:$0xf]  ;;  %v3821_v48 = vor.u32 %v4221_v60, %v3818_v62 }
 0x18d   :  { %1757 = vmatpush.bf16.msra.mxu3 %v3605_v54  ;;  %1790 = vmatpush.bf16.msra.mxu1 %v3705_v57  ;;  %v3624_v54 = vld [vmem:[%s6249_s6 + $0x48] sm:$0xf]  ;;  %v4175_v57 = vld [vmem:[%s6249_s6 + $0x54] sm:$0xf0]  ;;  %v3693_v5 = vor.u32 %v4189_v13, %v3690_v0  ;;  %v4217_v2 = vld [vmem:[%s6249_s6 + $0x1ac] sm:$0xf] }
 0x18e   :  { %v3625_v49 = vor.u32 %v4175_v57, %v3624_v54  ;;  %v4185_v9 = vld [vmem:[%s6249_s6 + $0xac] sm:$0xf]  ;;  %v3752_v19 = vld [vmem:[%s6249_s6 + $0x148] sm:$0xf]  ;;  %v4207_v38 = vld [vmem:[%s6249_s6 + $0x154] sm:$0xf0] }
 0x18f   :  { %1767 = vmatpush.bf16.msrb.mxu2 %v3781_v10  ;;  %v3785_v10 = vor.u32 %v4215_v51, %v3784_v50  ;;  %v4213_v22 = vld [vmem:[%s6249_s6 + $0x18c] sm:$0xf]  ;;  %v3753_v23 = vor.u32 %v4207_v38, %v3752_v19  ;;  %v4167_v44 = vld [vmem:[%s6249_s6 + $0x14] sm:$0xf0]  ;;  %v3770_v56 = vld [vmem:[%s6249_s6 + $0x178] sm:$0xf0] }
 0x190   :  { %1783 = vmatpush.bf16.msrb.mxu0 %v3861_v4  ;;  %v4171_v4 = vld [vmem:[%s6249_s6 + $0x34] sm:$0xf0]  ;;  %v4209_v55 = vld [vmem:[%s6249_s6 + $0x16c] sm:$0xf]  ;;  %v3754_v37 = vld [vmem:[%s6249_s6 + $0x158] sm:$0xf0] }
 0x191   :  { %1758 = vmatpush.bf16.msra.mxu3 %v3589_v6  ;;  %1791 = vmatpush.bf16.msra.mxu1 %v3689_v8  ;;  %v3769_v6 = vor.u32 %v4211_v42, %v3768_v1  ;;  %v3802_v8 = vld [vmem:[%s6249_s6 + $0x1b8] sm:$0xf0]  ;;  %v3609_v14 = vor.u32 %v4171_v4, %v3608_v63  ;;  %v4203_v27 = vld [vmem:[%s6249_s6 + $0x134] sm:$0xf0]  ;;  %v3773_v32 = vor.u32 %v4209_v55, %v3770_v56  ;;  %v4173_v40 = vld [vmem:[%s6249_s6 + $0x4c] sm:$0xf] }
 0x192   :  { %3886 = vmatmul.msk.bf16.vlgmr.msra.gmra.mxu2 %vm1696_vm6, %v5213_v20  ;;  %v4199_v36 = vld [vmem:[%s6249_s6 + $0x114] sm:$0xf0]  ;;  %v3626_v25 = vld [vmem:[%s6249_s6 + $0x58] sm:$0xf0]  ;;  %v4237_v7 = vld [vmem:[%s6249_s6 + $0x24c] sm:$0xf] }
 0x193   :  { %1768 = vmatpush.bf16.msrb.mxu2 %v3765_v39  ;;  %v3674_v39 = vld [vmem:[%s6249_s6 + $0xb8] sm:$0xf0]  ;;  %v3629_v46 = vor.u32 %v4173_v40, %v3626_v25  ;;  %v4169_v51 = vld [vmem:[%s6249_s6 + $0x2c] sm:$0xf]  ;;  %v4040_v63 = vld [vmem:[%s6251_s8 + $0xe0] sm:$0xf] }
 0x194   :  { %1784 = vmatpush.bf16.msrb.mxu0 %v3845_v24  ;;  %1759 = vmatmul.bf16.vlgmr.msra.gmra.mxu3 %v5174_v61  ;;  %v3677_v18 = vor.u32 %v4185_v9, %v3674_v39  ;;  %v3786_v24 = vld [vmem:[%s6249_s6 + $0x198] sm:$0xf0]  ;;  %v4197_v60 = vld [vmem:[%s6249_s6 + $0x10c] sm:$0xf]  ;;  %v4278_v4 = vld [vmem:[%s6251_s8 + $0xec] sm:$0xf0] }
 0x195   :  { %1803 = vmatpush.bf16.msrb.mxu3 %v3833_v17  ;;  %1792 = vmatpush.bf16.msra.mxu1 %v3673_v26  ;;  %v3805_v17 = vor.u32 %v4217_v2, %v3802_v8  ;;  %v3658_v26 = vld [vmem:[%s6249_s6 + $0x98] sm:$0xf0]  ;;  %v3789_v28 = vor.u32 %v4213_v22, %v3786_v24  ;;  %v4165_v13 = vld [vmem:[%s6249_s6 + $0xc] sm:$0xf]  ;;  %v3916_v8 = vld [vmem:[%s6252_s7 + $0x28] sm:$0xf]  ;;  %v5462_v39 = vor.u32 %v4278_v4, %v4040_v63 }
 0x196   :  { %v3882_v41 = vld [vmem:[%s6249_s6 + $0x258] sm:$0x30]  ;;  %v4229_v1 = vld [vmem:[%s6249_s6 + $0x20c] sm:$0xf]  ;;  %v4247_v9 = vld [vmem:[%s6252_s7 + $0x34] sm:$0xf0] }
 0x197   :  { %1769 = vmatpush.bf16.msrb.mxu2 %v3749_v21  ;;  %v3592_v21 = vld [vmem:[%s6249_s6 + $0x8] sm:$0xf]  ;;  %v3738_v50 = vld [vmem:[%s6249_s6 + $0x138] sm:$0xf0]  ;;  %v4024_v19 = vld [vmem:[%s6251_s8 + $0xc0] sm:$0xf] }
 0x198   :  { %1821 = vmatpush.bf16.msra.mxu0 %v1707_v11  ;;  %v4181_v11 = vld [vmem:[%s6249_s6 + $0x8c] sm:$0xf]  ;;  %v3593_v29 = vor.u32 %v4167_v44, %v3592_v21  ;;  %v3722_v62 = vld [vmem:[%s6249_s6 + $0x118] sm:$0xf0]  ;;  %v4274_v38 = vld [vmem:[%s6251_s8 + $0xcc] sm:$0xf0] }
 0x199   :  { %1804 = vmatpush.bf16.msrb.mxu3 %v3817_v45  ;;  %1793 = vmatpush.bf16.msra.mxu1 %v3657_v53  ;;  %v3661_v16 = vor.u32 %v4181_v11, %v3658_v26  ;;  %v3736_v45 = vld [vmem:[%s6249_s6 + $0x128] sm:$0xf]  ;;  %v3642_v53 = vld [vmem:[%s6249_s6 + $0x78] sm:$0xf0]  ;;  %v4246_v22 = vld [vmem:[%s6252_s7 + $0x2c] sm:$0xf0] }
 0x19a   :  { %v3737_v31 = vor.u32 %v4203_v27, %v3736_v45  ;;  %v3850_v42 = vld [vmem:[%s6249_s6 + $0x218] sm:$0xf0]  ;;  %v4240_v11 = vld [vmem:[%s6252_s7 + $0x4] sm:$0xf]  ;;  %v3900_v26 = vld [vmem:[%s6252_s7 + $0x8] sm:$0xf]  ;;  %v5495_v45 = vor.u32 %v4274_v38, %v4024_v19 }
 0x19b   :  { %1770 = vmatpush.bf16.msrb.mxu2 %v3733_v35  ;;  %3887 = vmatmul.msk.bf16.vlgmr.msrb.gmra.mxu0 %vm1696_vm6, %v5213_v20  ;;  %v3720_v35 = vld [vmem:[%s6249_s6 + $0x108] sm:$0xf]  ;;  %v4279_v44 = vld [vmem:[%s6251_s8 + $0xf4] sm:$0xf0]  ;;  %v4042_v27 = vld [vmem:[%s6251_s8 + $0xf0] sm:$0xf0] }
 0x19c   :  { %1822 = vmatpush.bf16.msra.mxu0 %v3865_v33  ;;  %1733 = vmatmul.bf16.vlgmr.msrb.gmra.mxu1 %v5274_v43  ;;  %v4177_v33 = vld [vmem:[%s6249_s6 + $0x6c] sm:$0xf]  ;;  %v3721_v30 = vor.u32 %v4199_v36, %v3720_v35  ;;  %v4048_v21 = vld [vmem:[%s6251_s8 + $0xe8] sm:$0xf]  ;;  %v4275_v36 = vld [vmem:[%s6251_s8 + $0xd4] sm:$0xf0] }
 0x19d   :  { %1805 = vmatpush.bf16.msrb.mxu3 %v3801_v15  ;;  %1794 = vmatpush.bf16.msra.mxu1 %v3641_v12  ;;  %v3645_v34 = vor.u32 %v4177_v33, %v3642_v53  ;;  %v4205_v15 = vld [vmem:[%s6249_s6 + $0x14c] sm:$0xf]  ;;  %v3885_v12 = vor.u32 %v4237_v7, %v3882_v41  ;;  %v4008_v33 = vld [vmem:[%s6251_s8 + $0xa0] sm:$0xf]  ;;  %v4268_v25 = vld [vmem:[%s6251_s8 + $0xa4] sm:$0xf] }
 0x19e   :  { %v3757_v3 = vor.u32 %v4205_v15, %v3754_v37  ;;  %v4266_v37 = vld [vmem:[%s6251_s8 + $0x8c] sm:$0xf0]  ;;  %v4271_v41 = vld [vmem:[%s6251_s8 + $0xb4] sm:$0xf0]  ;;  %v3960_v63 = vld [vmem:[%s6251_s8 + $0x40] sm:$0xf] }
 0x19f   :  { %1771 = vmatpush.bf16.msrb.mxu2 %v3717_v52  ;;  %v3610_v52 = vld [vmem:[%s6249_s6 + $0x38] sm:$0xf0]  ;;  %v4258_v4 = vld [vmem:[%s6251_s8 + $0x4c] sm:$0xf0] }
 0x1a0   :  { %1823 = vmatpush.bf16.msra.mxu0 %v3849_v47  ;;  %v4201_v47 = vld [vmem:[%s6249_s6 + $0x12c] sm:$0xf]  ;;  %v3613_v57 = vor.u32 %v4169_v51, %v3610_v52  ;;  %v3976_v52 = vld [vmem:[%s6251_s8 + $0x60] sm:$0xf] }
 0x1a1   :  { %1806 = vmatpush.bf16.msrb.mxu3 %v3785_v10  ;;  %1795 = vmatpush.bf16.msra.mxu1 %v3625_v49  ;;  %v3741_v54 = vor.u32 %v4201_v47, %v3738_v50  ;;  %v1710_v10 = vsel %vm246_vm1, %v3885_v12, 0  ;;  %v3594_v49 = vld [vmem:[%s6249_s6 + $0x18] sm:$0xf0]  ;;  %v3892_v12 = vld [vmem:[%s6252_s7] sm:$0xf] }
 0x1a2   :  { %1772 = vmatmul.bf16.vlgmr.msrb.gmra.mxu2 %v5274_v43  ;;  %v3597_v2 = vor.u32 %v4165_v13, %v3594_v49  ;;  %v4242_v50 = vld [vmem:[%s6252_s7 + $0xc] sm:$0xf0]  ;;  %v3994_v13 = vld [vmem:[%s6251_s8 + $0x90] sm:$0xf0] }
 0x1a3   :  { %1829 = vmatpush.bf16.msra.mxu2 %v3709_v59  ;;  %v3866_v59 = vld [vmem:[%s6249_s6 + $0x238] sm:$0xf0] }
 0x1a4   :  { %1842 = vmatpush.bf16.msrb.mxu0 %v3837_v58  ;;  %v4233_v58 = vld [vmem:[%s6249_s6 + $0x22c] sm:$0xf] }
 0x1a5   :  { %1807 = vmatpush.bf16.msrb.mxu3 %v3769_v6  ;;  %1796 = vmatpush.bf16.msra.mxu1 %v3609_v14  ;;  %v3869_v0 = vor.u32 %v4233_v58, %v3866_v59  ;;  %v3910_v6 = vld [vmem:[%s6252_s7 + $0x30] sm:$0xf0]  ;;  %v3917_v14 = vor.u32 %v4247_v9, %v3916_v8  ;;  %v4245_v58 = vld [vmem:[%s6252_s7 + $0x2c] sm:$0xf]  ;;  %v3918_v59 = vld [vmem:[%s6252_s7 + $0x38] sm:$0xf0] }
 0x1a6   :  { %v4260_v8 = vld [vmem:[%s6251_s8 + $0x64] sm:$0xf]  ;;  %v3978_v9 = vld [vmem:[%s6251_s8 + $0x70] sm:$0xf0] }
 0x1a7   :  { %1830 = vmatpush.bf16.msra.mxu2 %v3693_v5  ;;  %v3725_v5 = vor.u32 %v4197_v60, %v3722_v62  ;;  %v4264_v62 = vld [vmem:[%s6251_s8 + $0x84] sm:$0xf] }
 0x1a8   :  { %1843 = vmatpush.bf16.msrb.mxu0 %v3821_v48  ;;  %v4244_v48 = vld [vmem:[%s6252_s7 + $0x24] sm:$0xf]  ;;  %v5599_v49 = vor.u32 %v4264_v62, %v3994_v13  ;;  %v4050_v62 = vld [vmem:[%s6251_s8 + $0xf8] sm:$0xf0] }
 0x1a9   :  { %1808 = vmatpush.bf16.msrb.mxu3 %v3753_v23  ;;  %1797 = vmatpush.bf16.msra.mxu1 %v3593_v29  ;;  %v3913_v23 = vor.u32 %v4244_v48, %v3910_v6  ;;  %v4276_v29 = vld [vmem:[%s6251_s8 + $0xe4] sm:$0xf]  ;;  %v5613_v48 = vor.u32 %v4258_v4, %v3960_v63  ;;  %v4273_v4 = vld [vmem:[%s6251_s8 + $0xcc] sm:$0xf] }
 0x1ab   :  { %1831 = vmatpush.bf16.msra.mxu2 %v3677_v18  ;;  %3888 = vmatmul.msk.bf16.vlgmr.msra.gmra.mxu0 %vm1696_vm6, %v5213_v20  ;;  %v3853_v18 = vor.u32 %v4229_v1, %v3850_v42  ;;  %v4267_v1 = vld [vmem:[%s6251_s8 + $0x94] sm:$0xf0] }
 0x1ac   :  { %1844 = vmatpush.bf16.msrb.mxu0 %v3805_v17  ;;  %1798 = vmatmul.bf16.vlgmr.msra.gmra.mxu1 %v5174_v61  ;;  %v3908_v17 = vld [vmem:[%s6252_s7 + $0x20] sm:$0xf] }
 0x1ad   :  { %1809 = vmatpush.bf16.msrb.mxu3 %v3737_v31  ;;  %1860 = vmatpush.bf16.msrb.mxu1 %v1710_v10  ;;  %v3909_v24 = vor.u32 %v4246_v22, %v3908_v17  ;;  %v5504_v31 = vor.u32 %v4279_v44, %v4048_v21  ;;  %v3921_v10 = vor.u32 %v4245_v58, %v3918_v59  ;;  %v3984_v17 = vld [vmem:[%s6251_s8 + $0x68] sm:$0xf]  ;;  %v3944_v22 = vld [vmem:[%s6251_s8 + $0x20] sm:$0xf] }
 0x1af   :  { %1832 = vmatpush.bf16.msra.mxu2 %v3661_v16  ;;  %v3894_v16 = vld [vmem:[%s6252_s7 + $0x10] sm:$0xf0] }
 0x1b0   :  { %1845 = vmatpush.bf16.msrb.mxu0 %v3789_v28  ;;  %v4243_v28 = vld [vmem:[%s6252_s7 + $0x14] sm:$0xf0]  ;;  %v3897_v56 = vor.u32 %v4240_v11, %v3894_v16  ;;  %v4256_v11 = vld [vmem:[%s6251_s8 + $0x44] sm:$0xf] }
 0x1b1   :  { %1810 = vmatpush.bf16.msrb.mxu3 %v3721_v30  ;;  %1861 = vmatpush.bf16.msrb.mxu1 %v3869_v0  ;;  %v3901_v55 = vor.u32 %v4243_v28, %v3900_v26  ;;  %v3992_v30 = vld [vmem:[%s6251_s8 + $0x80] sm:$0xf]  ;;  %v4000_v0 = vld [vmem:[%s6251_s8 + $0x88] sm:$0xf]  ;;  %v3962_v26 = vld [vmem:[%s6251_s8 + $0x50] sm:$0xf0] }
 0x1b2   :  { %v5545_v40 = vor.u32 %v4266_v37, %v3992_v30  ;;  %v5605_v42 = vor.u32 %v4267_v1, %v4000_v0  ;;  %v3968_v28 = vld [vmem:[%s6251_s8 + $0x48] sm:$0xf]  ;;  %v4259_v16 = vld [vmem:[%s6251_s8 + $0x54] sm:$0xf0]  ;;  %v5662_v21 = vor.u32 %v4256_v11, %v3962_v26  ;;  %v3930_v30 = vld [vmem:[%s6251_s8 + $0x10] sm:$0xf0] }
 0x1b3   :  { %1833 = vmatpush.bf16.msra.mxu2 %v3645_v34  ;;  %v4032_v34 = vld [vmem:[%s6251_s8 + $0xc8] sm:$0xf]  ;;  %v5664_v44 = vor.u32 %v4259_v16, %v3968_v28 }
 0x1b4   :  { %1846 = vmatpush.bf16.msrb.mxu0 %v3773_v32  ;;  %1811 = vmatmul.bf16.vlgmr.msrb.gmra.mxu3 %v5274_v43  ;;  %v5506_v32 = vor.u32 %v4276_v29, %v4042_v27  ;;  %v5537_v15 = vor.u32 %v4275_v36, %v4032_v34  ;;  %v3928_v29 = vld [vmem:[%s6251_s8] sm:$0xf]  ;;  %v4250_v27 = vld [vmem:[%s6251_s8 + $0xc] sm:$0xf0]  ;;  %v4248_v36 = vld [vmem:[%s6251_s8 + $0x4] sm:$0xf] }
 0x1b5   :  { %1862 = vmatpush.bf16.msrb.mxu1 %v3853_v18  ;;  %1937 = vmatpush.bf16.msra.mxu3 %v3909_v24  ;;  %v4263_v18 = vld [vmem:[%s6251_s8 + $0x74] sm:$0xf0]  ;;  %v3936_v37 = vld [vmem:[%s6251_s8 + $0x8] sm:$0xf] }
 0x1b6   :  { %v5638_v38 = vor.u32 %v4263_v18, %v3984_v17  ;;  %v4018_v17 = vld [vmem:[%s6251_s8 + $0xb8] sm:$0xf0] }
 0x1b7   :  { %1834 = vmatpush.bf16.msra.mxu2 %v3629_v46  ;;  %v4016_v46 = vld [vmem:[%s6251_s8 + $0xa8] sm:$0xf] }
 0x1b8   :  { %1847 = vmatpush.bf16.msrb.mxu0 %v3757_v3  ;;  %v4010_v3 = vld [vmem:[%s6251_s8 + $0xb0] sm:$0xf0]  ;;  %v5572_v51 = vor.u32 %v4271_v41, %v4016_v46  ;;  %v4425_v46 = vmov 0   ;;  %v5712_v41 = vor.u32 %v4248_v36, %v3930_v30  ;;  %v4257_v36 = vld [vmem:[%s6251_s8 + $0x4c] sm:$0xf] }
 0x1b9   :  { %1950 = vmatpush.bf16.msra.mxu1 %v3913_v23  ;;  %v5558_v7 = vor.u32 %v4268_v25, %v4010_v3  ;;  %v4254_v23 = vld [vmem:[%s6251_s8 + $0x2c] sm:$0xf0]  ;;  %v4251_v25 = vld [vmem:[%s6251_s8 + $0x14] sm:$0xf0]  ;;  %v3970_v30 = vld [vmem:[%s6251_s8 + $0x58] sm:$0xf0] }
 0x1ba   :  { %v5646_v24 = vor.u32 %v4254_v23, %v3944_v22  ;;  %v5708_v3 = vor.u32 %v4251_v25, %v3936_v37  ;;  %v4265_v22 = vld [vmem:[%s6251_s8 + $0x8c] sm:$0xf]  ;;  %v4002_v23 = vld [vmem:[%s6251_s8 + $0x98] sm:$0xf0] }
 0x1bb   :  { %1835 = vmatpush.bf16.msra.mxu2 %v3613_v57  ;;  %v4262_v57 = vld [vmem:[%s6251_s8 + $0x6c] sm:$0xf0] }
 0x1bc   :  { %1848 = vmatpush.bf16.msrb.mxu0 %v3741_v54  ;;  %3889 = vmatmul.msk.bf16.vlgmr.msrb.gmra.mxu1 %vm1696_vm6, %v5213_v20  ;;  %v4026_v20 = vld [vmem:[%s6251_s8 + $0xd0] sm:$0xf0]  ;;  %v3893_v54 = vor.u32 %v4242_v50, %v3892_v12  ;;  %v5587_v60 = vor.u32 %v4262_v57, %v3976_v52  ;;  %v4292_v12 = vld [vmem:[%s6248_s4] ss:$0 sm:$0xff] }
 0x1bd   :  { %1951 = vmatpush.bf16.msra.mxu1 %v3897_v56  ;;  %v5676_v56 = vor.u32 %v4250_v27, %v3928_v29  ;;  %v5768_v29 = vor.u32 %v4265_v22, %v4002_v23  ;;  %v4261_v27 = vld [vmem:[%s6251_s8 + $0x6c] sm:$0xf] }
 0x1be   :  { %1938 = vmatpush.bf16.msra.mxu3 %v3893_v54 }
 0x1bf   :  { %1836 = vmatpush.bf16.msra.mxu2 %v3597_v2  ;;  %v3902_v2 = vld [vmem:[%s6252_s7 + $0x18] sm:$0xf0] }
 0x1c0   :  { %1849 = vmatpush.bf16.msrb.mxu0 %v3725_v5  ;;  %v4241_v5 = vld [vmem:[%s6252_s7 + $0xc] sm:$0xf] }
 0x1c1   :  { %2196 = vmatpush.bf16.msrb.mxu1 %v5506_v32  ;;  %v3905_v6 = vor.u32 %v4241_v5, %v3902_v2  ;;  %v4034_v5 = vld [vmem:[%s6251_s8 + $0xd8] sm:$0xf0] }
 0x1c2   :  { %1837 = vmatmul.bf16.vlgmr.msra.gmra.mxu2 %v5174_v61  ;;  %v4270_v61 = vld [vmem:[%s6251_s8 + $0xac] sm:$0xf0]  ;;  %1976 = vmatpush.bf16.msrb.mxu3 %v3921_v10  ;;  %v4277_v10 = vld [vmem:[%s6251_s8 + $0xec] sm:$0xf] }
 0x1c3   :  { %1963 = vmatpush.bf16.msrb.mxu2 %v3917_v14  ;;  %1850 = vmatmul.bf16.vlgmr.msrb.gmra.mxu0 %v5274_v43  ;;  %v5518_v53 = vor.u32 %v4270_v61, %v4008_v33  ;;  %v4272_v43 = vld [vmem:[%s6251_s8 + $0xc4] sm:$0xf]  ;;  %v5629_v14 = vor.u32 %v4260_v8, %v3978_v9  ;;  %v3946_v33 = vld [vmem:[%s6251_s8 + $0x30] sm:$0xf0]  ;;  %v3952_v61 = vld [vmem:[%s6251_s8 + $0x28] sm:$0xf]  ;;  %v5743_v8 = vor.u32 %v4273_v4, %v4034_v5 }
 0x1c4   :  { %2183 = vmatpush.bf16.msra.mxu0 %v5462_v39  ;;  %v5531_v35 = vor.u32 %v4272_v43, %v4026_v20  ;;  %v4255_v43 = vld [vmem:[%s6251_s8 + $0x34] sm:$0xf0]  ;;  %v4269_v9 = vld [vmem:[%s6251_s8 + $0xac] sm:$0xf] }
 0x1c5   :  { %v5688_v20 = vor.u32 %v4255_v43, %v3952_v61  ;;  %v5755_v18 = vor.u32 %v4269_v9, %v4018_v17 }
 0x1c6   :  { %2197 = vmatpush.bf16.msrb.mxu1 %v5531_v35  ;;  %1977 = vmatpush.bf16.msrb.mxu3 %v3905_v6 }
 0x1c7   :  { %1964 = vmatpush.bf16.msrb.mxu2 %v3901_v55  ;;  %v4252_v55 = vld [vmem:[%s6251_s8 + $0x24] sm:$0xf] }
 0x1c8   :  { %2184 = vmatpush.bf16.msra.mxu0 %v5495_v45  ;;  %v5691_v34 = vor.u32 %v4252_v55, %v3946_v33  ;;  %v3986_v55 = vld [vmem:[%s6251_s8 + $0x78] sm:$0xf0] }
 0x1c9   :  { %v5782_v61 = vor.u32 %v4261_v27, %v3986_v55 }
 0x1ca   :  { %2198 = vmatpush.bf16.msrb.mxu1 %v5558_v7 }
 0x1cb   :  { %2209 = vmatpush.bf16.msra.mxu2 %v5504_v31 }
 0x1cc   :  { %2185 = vmatpush.bf16.msra.mxu0 %v5518_v53 }
 0x1ce   :  { %2199 = vmatpush.bf16.msrb.mxu1 %v5599_v49 }
 0x1cf   :  { %2210 = vmatpush.bf16.msra.mxu2 %v5537_v15 }
 0x1d0   :  { %2186 = vmatpush.bf16.msra.mxu0 %v5545_v40 }
 0x1d2   :  { %2200 = vmatpush.bf16.msrb.mxu1 %v5629_v14 }
 0x1d3   :  { %2211 = vmatpush.bf16.msra.mxu2 %v5572_v51 }
 0x1d4   :  { %2187 = vmatpush.bf16.msra.mxu0 %v5587_v60 }
 0x1d6   :  { %2201 = vmatpush.bf16.msrb.mxu1 %v5662_v21 }
 0x1d7   :  { %2212 = vmatpush.bf16.msra.mxu2 %v5605_v42 }
 0x1d8   :  { %2188 = vmatpush.bf16.msra.mxu0 %v5613_v48 }
 0x1da   :  { %2202 = vmatpush.bf16.msrb.mxu1 %v5691_v34 }
 0x1db   :  { %2213 = vmatpush.bf16.msra.mxu2 %v5638_v38 }
 0x1dc   :  { %2189 = vmatpush.bf16.msra.mxu0 %v5646_v24 }
 0x1de   :  { %2203 = vmatpush.bf16.msrb.mxu1 %v5712_v41 }
 0x1df   :  { %2214 = vmatpush.bf16.msra.mxu2 %v5664_v44 }
 0x1e0   :  { %2190 = vmatpush.bf16.msra.mxu0 %v5676_v56 }
 0x1e3   :  { %2215 = vmatpush.bf16.msra.mxu2 %v5688_v20  ;;  %2191 = vmatmul.bf16.vlgmr.msra.gmra.mxu0 %v4425_v46 }
 0x1e4   :  { %2312 = vmatpush.bf16.msrb.mxu0 %v5462_v39 }
 0x1e7   :  { %2216 = vmatpush.bf16.msra.mxu2 %v5708_v3 }
 0x1e8   :  { %2313 = vmatpush.bf16.msrb.mxu0 %v5495_v45 }
 0x1eb   :  { %v5563_v47 = vpop.f32.mrf.mxu0 }
 0x1ec   :  { %2314 = vmatpush.bf16.msrb.mxu0 %v5518_v53  ;;  %v1190_v54 = vadd.f32 %v4292_v12, %v5563_v47  ;;  %v5730_v47 = vor.u32 %v4277_v10, %v4050_v62 }
 0x1f0   :  { %2315 = vmatpush.bf16.msrb.mxu0 %v5545_v40 }
 0x1f3   :  { %v1191_v19 = vpop.f32.mrf.mxu0 }
 0x1f4   :  { %2316 = vmatpush.bf16.msrb.mxu0 %v5587_v60 }
 0x1f8   :  { %2317 = vmatpush.bf16.msrb.mxu0 %v5613_v48 }
 0x1fc   :  { %2318 = vmatpush.bf16.msrb.mxu0 %v5646_v24 }
 0x200   :  { %2319 = vmatpush.bf16.msrb.mxu0 %v5676_v56 }
 0x204   :  { %2441 = vmatpush.bf16.msra.mxu0 %v5462_v39 }
 0x205   :  { %v1215_v50 = vpop.f32.mrf.mxu2 }
 0x206   :  { %v1228_v52 = vpop.f32.mrf.mxu3 }
 0x208   :  { %v1721_v6 = vpop.f32.mrf.mxu0  ;;  %2442 = vmatpush.bf16.msra.mxu0 %v5495_v45 }
 0x209   :  { %v1202_v57 = vpop.f32.mrf.mxu1 }
 0x20a   :  { %v1203_v58 = vadd.f32 %v1202_v57, %v1190_v54  ;;  %v3954_v54 = vld [vmem:[%s6251_s8 + $0x38] sm:$0xf0] }
 0x20c   :  { %v1216_v59 = vadd.f32 %v1215_v50, %v1203_v58  ;;  %v5796_v50 = vor.u32 %v4257_v36, %v3970_v30  ;;  %2443 = vmatpush.bf16.msra.mxu0 %v5518_v53  ;;  %v4249_v58 = vld [vmem:[%s6251_s8 + $0xc] sm:$0xf]  ;;  %v5873_v30 = vld [vmem:[%s6253_s9] sm:$0xf] }
 0x20d   :  { %v1217_v13 = vpop.f32.mrf.mxu2 }
 0x20e   :  { %v1229_v0 = vadd.f32 %v1228_v52, %v1216_v59  ;;  %v1230_v1 = vpop.f32.mrf.mxu3  ;;  %v4253_v52 = vld [vmem:[%s6251_s8 + $0x2c] sm:$0xf]  ;;  %v3938_v59 = vld [vmem:[%s6251_s8 + $0x18] sm:$0xf0] }
 0x20f   :  { %v5808_v57 = vor.u32 %v4253_v52, %v3954_v54 }
 0x210   :  { %v1868_v63 = vpack.c.bf16 %v1229_v0, %v1229_v0  ;;  %v1723_v28 = vpop.f32.mrf.mxu0  ;;  %2444 = vmatpush.bf16.msra.mxu0 %v5545_v40  ;;  %v5820_v0 = vor.u32 %v4249_v58, %v3938_v59 }
 0x211   :  { %v1204_v2 = vpop.f32.mrf.mxu1 }
 0x212   :  { %3922 = vmatmul.msk.bf16.vlgmr.msra.gmra.mxu3 %vm1927_vm7, %v1868_v63  ;;  %3923 = vmatmul.msk.bf16.vlgmr.msra.gmra.mxu1 %vm1927_vm7, %v1868_v63  ;;  %6261 = vst [vmem:[#allocation3_spill] sm:$0xff] %v5820_v0 }
 0x213   :  { %3924 = vmatmul.msk.bf16.vlgmr.msrb.gmra.mxu2 %vm1927_vm7, %v1868_v63  ;;  %2222 = vmatpush.bf16.msra.mxu3 %v5730_v47 }
 0x214   :  { %2325 = vmatpush.bf16.msra.mxu1 %v5506_v32  ;;  %2338 = vmatpush.bf16.msrb.mxu2 %v5504_v31 }
 0x215   :  { %v1747_v19 = vpop.f32.mrf.mxu2  ;;  %2445 = vmatpush.bf16.msra.mxu0 %v5587_v60 }
 0x217   :  { %2223 = vmatpush.bf16.msra.mxu3 %v5743_v8  ;;  %v1760_v11 = vpop.f32.mrf.mxu3 }
 0x218   :  { %2326 = vmatpush.bf16.msra.mxu1 %v5531_v35  ;;  %2339 = vmatpush.bf16.msrb.mxu2 %v5537_v15  ;;  %v1786_v12 = vpop.f32.mrf.mxu0 }
 0x219   :  { %v1734_v26 = vpop.f32.mrf.mxu1  ;;  %2446 = vmatpush.bf16.msra.mxu0 %v5613_v48 }
 0x21a   :  { %v1735_v16 = vadd.f32 %v1734_v26, %v1721_v6 }
 0x21b   :  { %2224 = vmatpush.bf16.msra.mxu3 %v5755_v18 }
 0x21c   :  { %v5776_v33 = vadd.f32 %v1747_v19, %v1735_v16  ;;  %2327 = vmatpush.bf16.msra.mxu1 %v5558_v7  ;;  %2340 = vmatpush.bf16.msrb.mxu2 %v5572_v51 }
 0x21d   :  { %v1749_v43 = vpop.f32.mrf.mxu2  ;;  %2447 = vmatpush.bf16.msra.mxu0 %v5646_v24 }
 0x21f   :  { %2225 = vmatpush.bf16.msra.mxu3 %v5768_v29  ;;  %v1762_v37 = vpop.f32.mrf.mxu3 }
 0x220   :  { %2328 = vmatpush.bf16.msra.mxu1 %v5599_v49  ;;  %2341 = vmatpush.bf16.msrb.mxu2 %v5605_v42  ;;  %v1788_v13 = vpop.f32.mrf.mxu0  ;;  %v1880_v37 = vperm.slane %v5873_v30, 1 }
 0x221   :  { %v1736_v25 = vpop.f32.mrf.mxu1  ;;  %2448 = vmatpush.bf16.msra.mxu0 %v5676_v56 }
 0x222   :  { %3925 = vmatmul.msk.bf16.vlgmr.msrb.gmra.mxu3 %vm1927_vm7, %v1868_v63  ;;  %2204 = vmatmul.bf16.vlgmr.msrb.gmra.mxu1 %v4425_v46 }
 0x223   :  { %2217 = vmatmul.bf16.vlgmr.msra.gmra.mxu2 %v4425_v46  ;;  %2226 = vmatpush.bf16.msra.mxu3 %v5782_v61 }
 0x224   :  { %2329 = vmatpush.bf16.msra.mxu1 %v5629_v14  ;;  %2342 = vmatpush.bf16.msrb.mxu2 %v5638_v38 }
 0x225   :  { %v1773_v10 = vpop.f32.mrf.mxu2 }
 0x226   :  { %v1774_v62 = vadd.f32 %v1773_v10, %v1760_v11  ;;  %v1879_v10 = vperm.slane %v5873_v30, 0 }
 0x227   :  { %2227 = vmatpush.bf16.msra.mxu3 %v5796_v50 }
 0x228   :  { %2330 = vmatpush.bf16.msra.mxu1 %v5662_v21  ;;  %2343 = vmatpush.bf16.msrb.mxu2 %v5664_v44  ;;  %v5822_v1 = vadd.f32 %v1786_v12, %v1774_v62  ;;  %v1825_v4 = vpop.f32.mrf.mxu0 }
 0x229   :  { %v1799_v5 = vpop.f32.mrf.mxu1 }
 0x22a   :  { %v2304_v12 = vperm.slane %v5822_v1, 1  ;;  %v2433_v54 = vperm.slane %v5822_v1, 2  ;;  %v2562_v58 = vperm.slane %v5822_v1, 3  ;;  %v2691_v59 = vperm.slane %v5822_v1, 4 }
 0x22b   :  { %2228 = vmatpush.bf16.msra.mxu3 %v5808_v57  ;;  %v2820_v62 = vperm.slane %v5822_v1, 5  ;;  %v2949_v13 = vperm.slane %v5822_v1, 6 }
 0x22c   :  { %2331 = vmatpush.bf16.msra.mxu1 %v5691_v34  ;;  %2344 = vmatpush.bf16.msrb.mxu2 %v5688_v20 }
 0x22d   :  { %v1775_v63 = vpop.f32.mrf.mxu2 }
 0x22e   :  { %v3078_v63 = vperm.slane %v5822_v1, 7 }
 0x22f   :  { %2229 = vmatpush.bf16.msra.mxu3 %v5820_v0 }
 0x230   :  { %2332 = vmatpush.bf16.msra.mxu1 %v5712_v41  ;;  %2345 = vmatpush.bf16.msrb.mxu2 %v5708_v3 }
 0x231   :  { %v1801_v2 = vpop.f32.mrf.mxu1 }
 0x232   :  { %2230 = vmatmul.bf16.vlgmr.msra.gmra.mxu3 %v4425_v46  ;;  %v1827_v46 = vpop.f32.mrf.mxu0 }
 0x233   :  { %2351 = vmatpush.bf16.msrb.mxu3 %v5730_v47 }
 0x234   :  { %2454 = vmatpush.bf16.msrb.mxu1 %v5506_v32  ;;  %2467 = vmatpush.bf16.msra.mxu2 %v5504_v31 }
 0x237   :  { %2352 = vmatpush.bf16.msrb.mxu3 %v5743_v8  ;;  %v1812_v6 = vpop.f32.mrf.mxu3 }
 0x238   :  { %2455 = vmatpush.bf16.msrb.mxu1 %v5531_v35  ;;  %2468 = vmatpush.bf16.msra.mxu2 %v5537_v15  ;;  %v1813_v9 = vadd.f32 %v1812_v6, %v1799_v5 }
 0x239   :  { %v1864_v22 = vpop.f32.mrf.mxu1 }
 0x23a   :  { %v5863_v17 = vadd.f32 %v1825_v4, %v1813_v9  ;;  %v1881_v4 = vperm.slane %v5873_v30, 2 }
 0x23b   :  { %2353 = vmatpush.bf16.msrb.mxu3 %v5755_v18 }
 0x23c   :  { %2456 = vmatpush.bf16.msrb.mxu1 %v5558_v7  ;;  %2469 = vmatpush.bf16.msra.mxu2 %v5572_v51 }
 0x23f   :  { %2354 = vmatpush.bf16.msrb.mxu3 %v5768_v29  ;;  %v1814_v23 = vpop.f32.mrf.mxu3 }
 0x240   :  { %2457 = vmatpush.bf16.msrb.mxu1 %v5599_v49  ;;  %2470 = vmatpush.bf16.msra.mxu2 %v5605_v42  ;;  %v1851_v19 = vpop.f32.mrf.mxu0  ;;  %v1983_v23 = vperm.slane %v5776_v33, 0 }
 0x241   :  { %v1866_v27 = vpop.f32.mrf.mxu1 }
 0x243   :  { %2355 = vmatpush.bf16.msrb.mxu3 %v5782_v61 }
 0x244   :  { %2458 = vmatpush.bf16.msrb.mxu1 %v5629_v14  ;;  %2471 = vmatpush.bf16.msra.mxu2 %v5638_v38 }
 0x245   :  { %v1838_v11 = vpop.f32.mrf.mxu2 }
 0x246   :  { %v1852_v26 = vadd.f32 %v1851_v19, %v1838_v11  ;;  %v2303_v11 = vperm.slane %v5776_v33, 1 }
 0x247   :  { %2356 = vmatpush.bf16.msrb.mxu3 %v5796_v50 }
 0x248   :  { %2459 = vmatpush.bf16.msrb.mxu1 %v5662_v21  ;;  %2472 = vmatpush.bf16.msra.mxu2 %v5664_v44  ;;  %v5867_v28 = vadd.f32 %v1864_v22, %v1852_v26  ;;  %v1853_v16 = vpop.f32.mrf.mxu0  ;;  %v2432_v26 = vperm.slane %v5776_v33, 2 }
 0x249   :  { %v2561_v16 = vperm.slane %v5776_v33, 3 }
 0x24b   :  { %2357 = vmatpush.bf16.msrb.mxu3 %v5808_v57 }
 0x24c   :  { %2460 = vmatpush.bf16.msrb.mxu1 %v5691_v34  ;;  %2473 = vmatpush.bf16.msra.mxu2 %v5688_v20 }
 0x24d   :  { %v1840_v55 = vpop.f32.mrf.mxu2 }
 0x24e   :  { %v2690_v55 = vperm.slane %v5776_v33, 4 }
 0x24f   :  { %2358 = vmatpush.bf16.msrb.mxu3 %v5820_v0 }
 0x250   :  { %2461 = vmatpush.bf16.msrb.mxu1 %v5712_v41  ;;  %2474 = vmatpush.bf16.msra.mxu2 %v5708_v3 }
 0x253   :  { %2480 = vmatpush.bf16.msra.mxu3 %v5730_v47 }
 0x257   :  { %2481 = vmatpush.bf16.msra.mxu3 %v5743_v8 }
 0x25b   :  { %2482 = vmatpush.bf16.msra.mxu3 %v5755_v18 }
 0x25f   :  { %2483 = vmatpush.bf16.msra.mxu3 %v5768_v29 }
 0x260   :  { %v2192_v43 = vpop.f32.mrf.mxu0 }
 0x263   :  { %2484 = vmatpush.bf16.msra.mxu3 %v5782_v61 }
 0x267   :  { %2485 = vmatpush.bf16.msra.mxu3 %v5796_v50 }
 0x268   :  { %v2194_v36 = vpop.f32.mrf.mxu0 }
 0x269   :  { %v2819_v36 = vperm.slane %v5776_v33, 5 }
 0x26b   :  { %2486 = vmatpush.bf16.msra.mxu3 %v5808_v57 }
 0x26f   :  { %2487 = vmatpush.bf16.msra.mxu3 %v5820_v0 }
 0x28f   :  { %v1953_v25 = vpop.f32.mrf.mxu1 }
 0x290   :  { %v1954_v52 = vadd.f32 %v1953_v25, %v1880_v37  ;;  %v2948_v37 = vperm.slane %v5776_v33, 6  ;;  %v3077_v25 = vperm.slane %v5776_v33, 7 }
 0x292   :  { %v5885_v46 = vadd.f32 %v2304_v12, %v1954_v52  ;;  %v5887_v5 = vadd.f32 %v2433_v54, %v1954_v52  ;;  %v5889_v2 = vadd.f32 %v2562_v58, %v1954_v52  ;;  %v5891_v6 = vadd.f32 %v2691_v59, %v1954_v52 }
 0x293   :  { %v5893_v9 = vadd.f32 %v2820_v62, %v1954_v52  ;;  %v5895_v19 = vadd.f32 %v2949_v13, %v1954_v52  ;;  %v5897_v22 = vadd.f32 %v3078_v63, %v1954_v52  ;;  %v2305_v58 = vperm.slane %v5863_v17, 1 }
 0x294   :  { %6262 = vst [vmem:[#allocation4_spill] sm:$0xff] %v5885_v46  ;;  %v2434_v59 = vperm.slane %v5863_v17, 2  ;;  %v2563_v62 = vperm.slane %v5863_v17, 3 }
 0x295   :  { %6263 = vst [vmem:[#allocation5_spill] sm:$0xff] %v5887_v5  ;;  %v1940_v27 = vpop.f32.mrf.mxu3 }
 0x296   :  { %6264 = vst [vmem:[#allocation6_spill] sm:$0xff] %v5889_v2  ;;  %v1941_v12 = vadd.f32 %v1940_v27, %v1879_v10  ;;  %v1966_v54 = vpop.f32.mrf.mxu2 }
 0x297   :  { %6265 = vst [vmem:[#allocation7_spill] sm:$0xff] %v5891_v6  ;;  %v1967_v13 = vadd.f32 %v1966_v54, %v1881_v4  ;;  %v1955_v63 = vpop.f32.mrf.mxu1  ;;  %v3079_v4 = vperm.slane %v5863_v17, 7 }
 0x298   :  { %6266 = vst [vmem:[#allocation8_spill] sm:$0xff] %v5893_v9  ;;  %v2950_v9 = vperm.slane %v5863_v17, 6  ;;  %v1987_v6 = vadd.f32 %v1983_v23, %v1941_v12  ;;  %v5913_v2 = vadd.f32 %v2303_v11, %v1941_v12  ;;  %v5915_v33 = vadd.f32 %v2432_v26, %v1941_v12 }
 0x299   :  { %6267 = vst [vmem:[#allocation9_spill] sm:$0xff] %v5895_v19  ;;  %v2821_v19 = vperm.slane %v5863_v17, 5  ;;  %v5917_v10 = vadd.f32 %v2561_v16, %v1941_v12  ;;  %v5919_v27 = vadd.f32 %v2305_v58, %v1967_v13  ;;  %v5921_v5 = vadd.f32 %v2434_v59, %v1967_v13 }
 0x29a   :  { %6268 = vst [vmem:[#allocation10_spill] sm:$0xff] %v5897_v22  ;;  %v2692_v22 = vperm.slane %v5863_v17, 4  ;;  %v5923_v46 = vadd.f32 %v2563_v62, %v1967_v13  ;;  %v2235_v54 = vadd.f32 %v2192_v43, %v1987_v6  ;;  %v5926_v63 = vadd.f32 %v2690_v55, %v1941_v12 }
 0x29b   :  { %v5930_v23 = vadd.f32 %v2819_v36, %v1941_v12  ;;  %v5932_v11 = vadd.f32 %v2821_v19, %v1967_v13  ;;  %v5934_v26 = vadd.f32 %v2948_v37, %v1941_v12  ;;  %v5936_v16 = vadd.f32 %v2950_v9, %v1967_v13 }
 0x29c   :  { %6269 = vst [vmem:[#allocation11_spill] sm:$0xff] %v5923_v46  ;;  %v5928_v0 = vadd.f32 %v2692_v22, %v1967_v13  ;;  %v5938_v58 = vadd.f32 %v3077_v25, %v1941_v12  ;;  %v4054_v59 = vmul.f32 -1.442695, %v2235_v54  ;;  %v1984_v62 = vperm.slane %v5822_v1, 0 }
 0x29d   :  { %6270 = vst [vmem:[#allocation12_spill] sm:$0xff] %v5926_v63  ;;  %v5941_v46 = vadd.f32 %v3079_v4, %v1967_v13  ;;  %v1942_v43 = vpop.f32.mrf.mxu3  ;;  %v1882_v19 = vperm.slane %v5873_v30, 3  ;;  %v2306_v54 = vperm.slane %v5867_v28, 1  ;;  %v2435_v1 = vperm.slane %v5867_v28, 2 }
 0x29e   :  { %6271 = vst [vmem:[#allocation13_spill] sm:$0xff] %v5928_v0  ;;  %4296 = vpow2.f32 %v4054_v59  ;;  %v1968_v6 = vpop.f32.mrf.mxu2  ;;  %v1988_v22 = vadd.f32 %v1984_v62, %v1954_v52  ;;  %v2564_v59 = vperm.slane %v5867_v28, 3  ;;  %v2693_v52 = vperm.slane %v5867_v28, 4 }
 0x29f   :  { %6272 = vst [vmem:[#allocation14_spill] sm:$0xff] %v5930_v23  ;;  %v2205_v55 = vpop.f32.mrf.mxu1  ;;  %v2822_v62 = vperm.slane %v5867_v28, 5  ;;  %v1985_v6 = vperm.slane %v5863_v17, 0 }
 0x2a0   :  { %6273 = vst [vmem:[#allocation15_spill] sm:$0xff] %v5932_v11  ;;  %v2236_v36 = vadd.f32 %v2205_v55, %v1988_v22 }
 0x2a1   :  { %6274 = vst [vmem:[#allocation16_spill] sm:$0xff] %v5934_v26 }
 0x2a2   :  { %6275 = vst [vmem:[#allocation17_spill] sm:$0xff] %v5936_v16  ;;  %v4055_v23 = vmul.f32 -1.442695, %v2236_v36 }
 0x2a3   :  { %6276 = vst [vmem:[#allocation18_spill] sm:$0xff] %v5938_v58 }
 0x2a4   :  { %6277 = vst [vmem:[#allocation19_spill] sm:$0xff] %v5941_v46  ;;  %v4297_v37 = vpop.eup %4296  ;;  %4298 = vpow2.f32 %v4055_v23  ;;  %v2951_v23 = vperm.slane %v5867_v28, 6 }
 0x2a5   :  { %v2242_v9 = vadd.f32 1.0, %v4297_v37  ;;  %v1979_v16 = vpop.f32.mrf.mxu3 }
 0x2a6   :  { %v1980_v25 = vadd.f32 %v1979_v16, %v1882_v19  ;;  %v2218_v12 = vpop.f32.mrf.mxu2  ;;  %v3080_v16 = vperm.slane %v5867_v28, 7 }
 0x2a7   :  { %4300 = vrcp.f32 %v2242_v9  ;;  %v2207_v4 = vpop.f32.mrf.mxu1  ;;  %vm2248_vm9 = vweird.f32 %v2242_v9 }
 0x2a8   :  { %v5949_v43 = vadd.f32 %v2306_v54, %v1980_v25  ;;  %v5951_v30 = vadd.f32 %v2435_v1, %v1980_v25  ;;  %v5956_v22 = vadd.f32 %v2564_v59, %v1980_v25  ;;  %v5958_v55 = vadd.f32 %v2693_v52, %v1980_v25 }
 0x2a9   :  { %v5960_v19 = vadd.f32 %v2822_v62, %v1980_v25  ;;  %v5962_v37 = vadd.f32 %v2951_v23, %v1980_v25  ;;  %v5964_v4 = vadd.f32 %v3080_v16, %v1980_v25  ;;  %v1989_v1 = vadd.f32 %v1985_v6, %v1967_v13 }
 0x2aa   :  { %6278 = vst [vmem:[#allocation20_spill] sm:$0xff] %v5958_v55  ;;  %v4299_v36 = vpop.eup %4298  ;;  %v2254_v59 = vand.u32 2147483648, %v2242_v9  ;;  %v2252_v55 = vand.u32 2147483647, %v2242_v9  ;;  %v1986_v62 = vperm.slane %v5867_v28, 0 }
 0x2ab   :  { %6279 = vst [vmem:[#allocation21_spill] sm:$0xff] %v5960_v19  ;;  %v2261_v54 = vadd.f32 1.0, %v4299_v36  ;;  %v2237_v58 = vadd.f32 %v2218_v12, %v1989_v1 }
 0x2ac   :  { %6280 = vst [vmem:[#allocation22_spill] sm:$0xff] %v5962_v37  ;;  %v1990_v36 = vadd.f32 %v1986_v62, %v1980_v25  ;;  %v2255_v13 = vor.u32 1.1754944e-38, %v2254_v59  ;;  %vm2253_vm11 = vcmp.eq.f32.partialorder %v2252_v55, 8.507059e+37 }
 0x2ad   :  { %6281 = vst [vmem:[#allocation23_spill] sm:$0xff] %v5964_v4  ;;  %v4301_v46 = vpop.eup %4300  ;;  %4302 = vrcp.f32 %v2261_v54  ;;  %v1981_v26 = vpop.f32.mrf.mxu3  ;;  %v2273_v1 = vand.u32 2147483648, %v2261_v54  ;;  %vm2267_vm13 = vweird.f32 %v2261_v54 }
 0x2ae   :  { %v2244_v11 = vmul.f32 %v4301_v46, %v2242_v9  ;;  %v2220_v0 = vpop.f32.mrf.mxu2  ;;  %4304 = vtanh.f32 %v2237_v58  ;;  %vm2249_vm8 = vweird.f32 %v4301_v46 }
 0x2af   :  { %vm2250_vm10 = vmor %vm2248_vm9, %vm2249_vm8  ;;  %v2274_v9 = vor.u32 1.1754944e-38, %v2273_v1  ;;  %v6282_v1 = vld [vmem:[#allocation3_spill] sm:$0xff] }
 0x2b0   :  { %v2245_v17 = vsub.f32 1.0, %v2244_v11 }
 0x2b2   :  { %v2246_v52 = vmul.f32 %v4301_v46, %v2245_v17  ;;  %v2271_v17 = vand.u32 2147483647, %v2261_v54 }
 0x2b3   :  { %v4303_v23 = vpop.eup %4302 }
 0x2b4   :  { %v2263_v37 = vmul.f32 %v4303_v23, %v2261_v54  ;;  %v2247_v16 = vadd.f32 %v4301_v46, %v2246_v52  ;;  %v4305_v11 = vpop.eup %4304  ;;  %vm2268_vm12 = vweird.f32 %v4303_v23  ;;  %vm2272_vm15 = vcmp.eq.f32.partialorder %v2271_v17, 8.507059e+37 }
 0x2b5   :  { %v2231_v6 = vpop.f32.mrf.mxu3  ;;  %vm2269_vm14 = vmor %vm2267_vm13, %vm2268_vm12 }
 0x2b6   :  { %v2264_v12 = vsub.f32 1.0, %v2263_v37  ;;  %v2251_v26 = vsel %vm2250_vm10, %v4301_v46, %v2247_v16  ;;  %v2238_v0 = vadd.f32 %v2231_v6, %v1990_v36 }
 0x2b7   :  { %v2256_v58 = vsel %vm2253_vm11, %v2255_v13, %v2251_v26 }
 0x2b8   :  { %v2265_v4 = vmul.f32 %v4303_v23, %v2264_v12  ;;  %v2298_v19 = vmul.f32 %v4305_v11, %v2256_v58  ;;  %v4056_v28 = vmul.f32 -1.442695, %v2238_v0 }
 0x2ba   :  { %v2266_v63 = vadd.f32 %v4303_v23, %v2265_v4  ;;  %4306 = vpow2.f32 %v4056_v28 }
 0x2bc   :  { %v2270_v25 = vsel %vm2269_vm14, %v4303_v23, %v2266_v63 }
 0x2bd   :  { %v2275_v59 = vsel %vm2272_vm15, %v2274_v9, %v2270_v25  ;;  %v2233_v37 = vpop.f32.mrf.mxu3  ;;  %v6283_v9 = vld [vmem:[#allocation4_spill] sm:$0xff] }
 0x2be   :  { %v2297_v46 = vmul.f32 0.0, %v2275_v59 }
 0x2c0   :  { %v4307_v55 = vpop.eup %4306  ;;  %v5967_v52 = vadd.f32 %v2298_v19, %v2297_v46 }
 0x2c1   :  { %v2281_v62 = vadd.f32 1.0, %v4307_v55 }
 0x2c3   :  { %4308 = vrcp.f32 %v2281_v62  ;;  %v2293_v54 = vand.u32 2147483648, %v2281_v62  ;;  %v2291_v6 = vand.u32 2147483647, %v2281_v62  ;;  %vm2287_vm1 = vweird.f32 %v2281_v62 }
 0x2c4   :  { %4310 = vtanh.f32 %v5967_v52 }
 0x2c5   :  { %v2294_v63 = vor.u32 1.1754944e-38, %v2293_v54  ;;  %vm2292_vm3 = vcmp.eq.f32.partialorder %v2291_v6, 8.507059e+37 }
 0x2c9   :  { %v4309_v16 = vpop.eup %4308 }
 0x2ca   :  { %v2283_v36 = vmul.f32 %v4309_v16, %v2281_v62  ;;  %vm2288_vm0 = vweird.f32 %v4309_v16  ;;  %v4311_v26 = vpop.eup %4310 }
 0x2cb   :  { %vm2289_vm2 = vmor %vm2287_vm1, %vm2288_vm0 }
 0x2cc   :  { %v2284_v13 = vsub.f32 1.0, %v2283_v36 }
 0x2ce   :  { %v2285_v4 = vmul.f32 %v4309_v16, %v2284_v13 }
 0x2d0   :  { %v2286_v12 = vadd.f32 %v4309_v16, %v2285_v4 }
 0x2d2   :  { %v2290_v23 = vsel %vm2289_vm2, %v4309_v16, %v2286_v12 }
 0x2d3   :  { %v2295_v19 = vsel %vm2292_vm3, %v2294_v63, %v2290_v23 }
 0x2d4   :  { %v5970_v0 = vmul.f32 %v4311_v26, %v2295_v19 }
 0x2d6   :  { %v2311_v11 = vpack.c.bf16 %v5970_v0, %v5970_v0 }
 0x2d8   :  { %2320 = vmatmul.bf16.vlgmr.msrb.gmra.mxu0 %v2311_v11  ;;  %2333 = vmatmul.bf16.vlgmr.msra.gmra.mxu1 %v2311_v11 }
 0x2d9   :  { %2346 = vmatmul.bf16.vlgmr.msrb.gmra.mxu2 %v2311_v11  ;;  %2359 = vmatmul.bf16.vlgmr.msrb.gmra.mxu3 %v2311_v11 }
 0x2da   :  { %2570 = vmatpush.bf16.msrb.mxu0 %v5462_v39  ;;  %2583 = vmatpush.bf16.msra.mxu1 %v5506_v32 }
 0x2db   :  { %2596 = vmatpush.bf16.msrb.mxu2 %v5504_v31  ;;  %2609 = vmatpush.bf16.msrb.mxu3 %v5730_v47 }
 0x2de   :  { %2571 = vmatpush.bf16.msrb.mxu0 %v5495_v45  ;;  %2584 = vmatpush.bf16.msra.mxu1 %v5531_v35 }
 0x2df   :  { %2597 = vmatpush.bf16.msrb.mxu2 %v5537_v15  ;;  %2610 = vmatpush.bf16.msrb.mxu3 %v5743_v8 }
 0x2e2   :  { %2572 = vmatpush.bf16.msrb.mxu0 %v5518_v53  ;;  %2585 = vmatpush.bf16.msra.mxu1 %v5558_v7 }
 0x2e3   :  { %2598 = vmatpush.bf16.msrb.mxu2 %v5572_v51  ;;  %2611 = vmatpush.bf16.msrb.mxu3 %v5755_v18 }
 0x2e6   :  { %2573 = vmatpush.bf16.msrb.mxu0 %v5545_v40  ;;  %2586 = vmatpush.bf16.msra.mxu1 %v5599_v49 }
 0x2e7   :  { %2599 = vmatpush.bf16.msrb.mxu2 %v5605_v42  ;;  %2612 = vmatpush.bf16.msrb.mxu3 %v5768_v29 }
 0x2ea   :  { %2574 = vmatpush.bf16.msrb.mxu0 %v5587_v60  ;;  %2587 = vmatpush.bf16.msra.mxu1 %v5629_v14 }
 0x2eb   :  { %2600 = vmatpush.bf16.msrb.mxu2 %v5638_v38  ;;  %2613 = vmatpush.bf16.msrb.mxu3 %v5782_v61 }
 0x2ee   :  { %2575 = vmatpush.bf16.msrb.mxu0 %v5613_v48  ;;  %2588 = vmatpush.bf16.msra.mxu1 %v5662_v21 }
 0x2ef   :  { %2601 = vmatpush.bf16.msrb.mxu2 %v5664_v44  ;;  %2614 = vmatpush.bf16.msrb.mxu3 %v5796_v50 }
 0x2f2   :  { %2576 = vmatpush.bf16.msrb.mxu0 %v5646_v24  ;;  %2589 = vmatpush.bf16.msra.mxu1 %v5691_v34 }
 0x2f3   :  { %2602 = vmatpush.bf16.msrb.mxu2 %v5688_v20  ;;  %2615 = vmatpush.bf16.msrb.mxu3 %v5808_v57 }
 0x2f6   :  { %2577 = vmatpush.bf16.msrb.mxu0 %v5676_v56  ;;  %2590 = vmatpush.bf16.msra.mxu1 %v5712_v41 }
 0x2f7   :  { %2603 = vmatpush.bf16.msrb.mxu2 %v5708_v3  ;;  %2616 = vmatpush.bf16.msrb.mxu3 %v6282_v1 }
 0x355   :  { %v2321_v58 = vpop.f32.mrf.mxu0  ;;  %v2334_v17 = vpop.f32.mrf.mxu1 }
 0x356   :  { %v2364_v28 = vadd.f32 %v2321_v58, %v5913_v2  ;;  %v2365_v25 = vadd.f32 %v2334_v17, %v6283_v9 }
 0x358   :  { %v4057_v59 = vmul.f32 -1.442695, %v2364_v28  ;;  %v4058_v37 = vmul.f32 -1.442695, %v2365_v25 }
 0x35a   :  { %4312 = vpow2.f32 %v4057_v59 }
 0x35b   :  { %4314 = vpow2.f32 %v4058_v37 }
 0x35c   :  { %v2347_v46 = vpop.f32.mrf.mxu2  ;;  %v2360_v55 = vpop.f32.mrf.mxu3 }
 0x35d   :  { %v2367_v62 = vadd.f32 %v2360_v55, %v5949_v43  ;;  %v2323_v16 = vpop.f32.mrf.mxu0  ;;  %v2336_v36 = vpop.f32.mrf.mxu1  ;;  %v2366_v11 = vadd.f32 %v2347_v46, %v5919_v27 }
 0x35f   :  { %v4059_v13 = vmul.f32 -1.442695, %v2367_v62 }
 0x360   :  { %v4313_v54 = vpop.eup %4312 }
 0x361   :  { %v4315_v4 = vpop.eup %4314  ;;  %v2371_v6 = vadd.f32 1.0, %v4313_v54  ;;  %4316 = vpow2.f32 %v4059_v13 }
 0x362   :  { %v2390_v12 = vadd.f32 1.0, %v4315_v4 }
 0x363   :  { %4318 = vrcp.f32 %v2371_v6  ;;  %v2383_v25 = vand.u32 2147483648, %v2371_v6  ;;  %v2381_v55 = vand.u32 2147483647, %v2371_v6  ;;  %vm2377_vm6 = vweird.f32 %v2371_v6 }
 0x364   :  { %4320 = vrcp.f32 %v2390_v12  ;;  %v2349_v2 = vpop.f32.mrf.mxu2  ;;  %v2362_v63 = vpop.f32.mrf.mxu3  ;;  %v2402_v59 = vand.u32 2147483648, %v2390_v12  ;;  %v2400_v16 = vand.u32 2147483647, %v2390_v12  ;;  %vm2396_vm7 = vweird.f32 %v2390_v12 }
 0x365   :  { %v2384_v27 = vor.u32 1.1754944e-38, %v2383_v25  ;;  %vm2382_vm10 = vcmp.eq.f32.partialorder %v2381_v55, 8.507059e+37 }
 0x366   :  { %v2403_v4 = vor.u32 1.1754944e-38, %v2402_v59  ;;  %vm2401_vm11 = vcmp.eq.f32.partialorder %v2400_v16, 8.507059e+37 }
 0x367   :  { %v4317_v23 = vpop.eup %4316 }
 0x368   :  { %v2410_v26 = vadd.f32 1.0, %v4317_v23 }
 0x369   :  { %v4319_v19 = vpop.eup %4318 }
 0x36a   :  { %v4321_v58 = vpop.eup %4320  ;;  %v2373_v17 = vmul.f32 %v4319_v19, %v2371_v6  ;;  %4322 = vrcp.f32 %v2410_v26  ;;  %vm2378_vm4 = vweird.f32 %v4319_v19  ;;  %v2422_v25 = vand.u32 2147483648, %v2410_v26 }
 0x36b   :  { %v2392_v43 = vmul.f32 %v4321_v58, %v2390_v12  ;;  %4324 = vtanh.f32 %v2366_v11  ;;  %vm2397_vm5 = vweird.f32 %v4321_v58  ;;  %vm2379_vm8 = vmor %vm2377_vm6, %vm2378_vm4  ;;  %vm2416_vm13 = vweird.f32 %v2410_v26 }
 0x36c   :  { %v2374_v28 = vsub.f32 1.0, %v2373_v17  ;;  %vm2398_vm9 = vmor %vm2396_vm7, %vm2397_vm5  ;;  %v2423_v55 = vor.u32 1.1754944e-38, %v2422_v25 }
 0x36d   :  { %v2393_v9 = vsub.f32 1.0, %v2392_v43 }
 0x36e   :  { %v2375_v37 = vmul.f32 %v4319_v19, %v2374_v28 }
 0x36f   :  { %v2394_v62 = vmul.f32 %v4321_v58, %v2393_v9 }
 0x370   :  { %v4323_v36 = vpop.eup %4322  ;;  %v2376_v13 = vadd.f32 %v4319_v19, %v2375_v37 }
 0x371   :  { %v2395_v46 = vadd.f32 %v4321_v58, %v2394_v62  ;;  %v2412_v54 = vmul.f32 %v4323_v36, %v2410_v26  ;;  %v4325_v63 = vpop.eup %4324  ;;  %vm2417_vm12 = vweird.f32 %v4323_v36 }
 0x372   :  { %v2380_v2 = vsel %vm2379_vm8, %v4319_v19, %v2376_v13  ;;  %v2420_v19 = vand.u32 2147483647, %v2410_v26  ;;  %vm2418_vm14 = vmor %vm2416_vm13, %vm2417_vm12 }
 0x373   :  { %v2385_v23 = vsel %vm2382_vm10, %v2384_v27, %v2380_v2  ;;  %v2399_v11 = vsel %vm2398_vm9, %v4321_v58, %v2395_v46  ;;  %v2413_v17 = vsub.f32 1.0, %v2412_v54  ;;  %v6284_v27 = vld [vmem:[#allocation5_spill] sm:$0xff] }
 0x374   :  { %v2404_v43 = vsel %vm2401_vm11, %v2403_v4, %v2399_v11  ;;  %v2427_v28 = vmul.f32 %v4325_v63, %v2385_v23  ;;  %vm2421_vm15 = vcmp.eq.f32.partialorder %v2420_v19, 8.507059e+37 }
 0x375   :  { %v2426_v9 = vmul.f32 %v2404_v43, %v5967_v52  ;;  %v2414_v37 = vmul.f32 %v4323_v36, %v2413_v17 }
 0x377   :  { %v6011_v6 = vadd.f32 %v2427_v28, %v2426_v9  ;;  %v2415_v12 = vadd.f32 %v4323_v36, %v2414_v37 }
 0x379   :  { %4326 = vtanh.f32 %v6011_v6  ;;  %v2419_v59 = vsel %vm2418_vm14, %v4323_v36, %v2415_v12 }
 0x37a   :  { %v2424_v62 = vsel %vm2421_vm15, %v2423_v55, %v2419_v59 }
 0x37f   :  { %v4327_v58 = vpop.eup %4326 }
 0x380   :  { %v6014_v16 = vmul.f32 %v4327_v58, %v2424_v62 }
 0x382   :  { %v2440_v52 = vpack.c.bf16 %v6014_v16, %v6014_v16 }
 0x384   :  { %2449 = vmatmul.bf16.vlgmr.msra.gmra.mxu0 %v2440_v52  ;;  %2462 = vmatmul.bf16.vlgmr.msrb.gmra.mxu1 %v2440_v52 }
 0x385   :  { %2475 = vmatmul.bf16.vlgmr.msra.gmra.mxu2 %v2440_v52  ;;  %2488 = vmatmul.bf16.vlgmr.msra.gmra.mxu3 %v2440_v52 }
 0x386   :  { %2699 = vmatpush.bf16.msra.mxu0 %v5462_v39  ;;  %2712 = vmatpush.bf16.msrb.mxu1 %v5506_v32 }
 0x387   :  { %2725 = vmatpush.bf16.msra.mxu2 %v5504_v31  ;;  %2738 = vmatpush.bf16.msra.mxu3 %v5730_v47 }
 0x38a   :  { %2700 = vmatpush.bf16.msra.mxu0 %v5495_v45  ;;  %2713 = vmatpush.bf16.msrb.mxu1 %v5531_v35 }
 0x38b   :  { %2726 = vmatpush.bf16.msra.mxu2 %v5537_v15  ;;  %2739 = vmatpush.bf16.msra.mxu3 %v5743_v8 }
 0x38e   :  { %2701 = vmatpush.bf16.msra.mxu0 %v5518_v53  ;;  %2714 = vmatpush.bf16.msrb.mxu1 %v5558_v7 }
 0x38f   :  { %2727 = vmatpush.bf16.msra.mxu2 %v5572_v51  ;;  %2740 = vmatpush.bf16.msra.mxu3 %v5755_v18 }
 0x392   :  { %2702 = vmatpush.bf16.msra.mxu0 %v5545_v40  ;;  %2715 = vmatpush.bf16.msrb.mxu1 %v5599_v49 }
 0x393   :  { %2728 = vmatpush.bf16.msra.mxu2 %v5605_v42  ;;  %2741 = vmatpush.bf16.msra.mxu3 %v5768_v29 }
 0x396   :  { %2703 = vmatpush.bf16.msra.mxu0 %v5587_v60  ;;  %2716 = vmatpush.bf16.msrb.mxu1 %v5629_v14 }
 0x397   :  { %2729 = vmatpush.bf16.msra.mxu2 %v5638_v38  ;;  %2742 = vmatpush.bf16.msra.mxu3 %v5782_v61 }
 0x39a   :  { %2704 = vmatpush.bf16.msra.mxu0 %v5613_v48  ;;  %2717 = vmatpush.bf16.msrb.mxu1 %v5662_v21 }
 0x39b   :  { %2730 = vmatpush.bf16.msra.mxu2 %v5664_v44  ;;  %2743 = vmatpush.bf16.msra.mxu3 %v5796_v50 }
 0x39e   :  { %2705 = vmatpush.bf16.msra.mxu0 %v5646_v24  ;;  %2718 = vmatpush.bf16.msrb.mxu1 %v5691_v34 }
 0x39f   :  { %2731 = vmatpush.bf16.msra.mxu2 %v5688_v20  ;;  %2744 = vmatpush.bf16.msra.mxu3 %v5808_v57 }
 0x3a2   :  { %2706 = vmatpush.bf16.msra.mxu0 %v5676_v56  ;;  %2719 = vmatpush.bf16.msrb.mxu1 %v5712_v41 }
 0x3a3   :  { %2732 = vmatpush.bf16.msra.mxu2 %v5708_v3  ;;  %2745 = vmatpush.bf16.msra.mxu3 %v6282_v1 }
 0x401   :  { %v2450_v26 = vpop.f32.mrf.mxu0  ;;  %v2463_v36 = vpop.f32.mrf.mxu1 }
 0x402   :  { %v2493_v13 = vadd.f32 %v2450_v26, %v5915_v33  ;;  %v2494_v46 = vadd.f32 %v2463_v36, %v6284_v27 }
 0x404   :  { %v4060_v54 = vmul.f32 -1.442695, %v2493_v13  ;;  %v4061_v4 = vmul.f32 -1.442695, %v2494_v46 }
 0x406   :  { %4328 = vpow2.f32 %v4060_v54 }
 0x407   :  { %4330 = vpow2.f32 %v4061_v4 }
 0x408   :  { %v2476_v2 = vpop.f32.mrf.mxu2  ;;  %v2489_v63 = vpop.f32.mrf.mxu3 }
 0x409   :  { %v2496_v23 = vadd.f32 %v2489_v63, %v5951_v30  ;;  %v2452_v11 = vpop.f32.mrf.mxu0  ;;  %v2465_v17 = vpop.f32.mrf.mxu1  ;;  %v2495_v58 = vadd.f32 %v2476_v2, %v5921_v5 }
 0x40b   :  { %v4062_v43 = vmul.f32 -1.442695, %v2496_v23 }
 0x40c   :  { %v4329_v28 = vpop.eup %4328 }
 0x40d   :  { %v4331_v9 = vpop.eup %4330  ;;  %v2500_v37 = vadd.f32 1.0, %v4329_v28  ;;  %4332 = vpow2.f32 %v4062_v43 }
 0x40e   :  { %v2519_v12 = vadd.f32 1.0, %v4331_v9 }
 0x40f   :  { %4334 = vrcp.f32 %v2500_v37  ;;  %v2512_v13 = vand.u32 2147483648, %v2500_v37  ;;  %v2510_v54 = vand.u32 2147483647, %v2500_v37  ;;  %vm2506_vm2 = vweird.f32 %v2500_v37 }
 0x410   :  { %4336 = vrcp.f32 %v2519_v12  ;;  %v2478_v33 = vpop.f32.mrf.mxu2  ;;  %v2491_v25 = vpop.f32.mrf.mxu3  ;;  %v2531_v27 = vand.u32 2147483648, %v2519_v12  ;;  %v2529_v63 = vand.u32 2147483647, %v2519_v12  ;;  %vm2525_vm3 = vweird.f32 %v2519_v12 }
 0x411   :  { %v2513_v5 = vor.u32 1.1754944e-38, %v2512_v13  ;;  %vm2511_vm6 = vcmp.eq.f32.partialorder %v2510_v54, 8.507059e+37  ;;  %v2431_v54 = vadd.f32 %v6014_v16, %v5970_v0 }
 0x412   :  { %v2532_v43 = vor.u32 1.1754944e-38, %v2531_v27  ;;  %vm2530_vm7 = vcmp.eq.f32.partialorder %v2529_v63, 8.507059e+37 }
 0x413   :  { %v4333_v19 = vpop.eup %4332 }
 0x414   :  { %v2539_v59 = vadd.f32 1.0, %v4333_v19 }
 0x415   :  { %v4335_v55 = vpop.eup %4334 }
 0x416   :  { %v4337_v62 = vpop.eup %4336  ;;  %v2502_v52 = vmul.f32 %v4335_v55, %v2500_v37  ;;  %4338 = vrcp.f32 %v2539_v59  ;;  %vm2507_vm0 = vweird.f32 %v4335_v55  ;;  %vm2545_vm9 = vweird.f32 %v2539_v59 }
 0x417   :  { %v2521_v30 = vmul.f32 %v4337_v62, %v2519_v12  ;;  %4340 = vtanh.f32 %v2495_v58  ;;  %vm2526_vm1 = vweird.f32 %v4337_v62  ;;  %vm2508_vm4 = vmor %vm2506_vm2, %vm2507_vm0 }
 0x418   :  { %v2503_v26 = vsub.f32 1.0, %v2502_v52  ;;  %vm2527_vm5 = vmor %vm2525_vm3, %vm2526_vm1 }
 0x419   :  { %v2522_v36 = vsub.f32 1.0, %v2521_v30 }
 0x41a   :  { %v2504_v46 = vmul.f32 %v4335_v55, %v2503_v26 }
 0x41b   :  { %v2523_v4 = vmul.f32 %v4337_v62, %v2522_v36  ;;  %v2551_v36 = vand.u32 2147483648, %v2539_v59 }
 0x41c   :  { %v4339_v23 = vpop.eup %4338  ;;  %v2505_v11 = vadd.f32 %v4335_v55, %v2504_v46 }
 0x41d   :  { %v2524_v2 = vadd.f32 %v4337_v62, %v2523_v4  ;;  %v2541_v17 = vmul.f32 %v4339_v23, %v2539_v59  ;;  %v4341_v9 = vpop.eup %4340  ;;  %vm2546_vm8 = vweird.f32 %v4339_v23  ;;  %v2552_v27 = vor.u32 1.1754944e-38, %v2551_v36 }
 0x41e   :  { %v2509_v28 = vsel %vm2508_vm4, %v4335_v55, %v2505_v11  ;;  %v2549_v55 = vand.u32 2147483647, %v2539_v59  ;;  %vm2547_vm10 = vmor %vm2545_vm9, %vm2546_vm8 }
 0x41f   :  { %v2514_v33 = vsel %vm2511_vm6, %v2513_v5, %v2509_v28  ;;  %v2528_v25 = vsel %vm2527_vm5, %v4337_v62, %v2524_v2  ;;  %v2542_v19 = vsub.f32 1.0, %v2541_v17 }
 0x420   :  { %v2533_v58 = vsel %vm2530_vm7, %v2532_v43, %v2528_v25  ;;  %v2556_v52 = vmul.f32 %v4341_v9, %v2514_v33  ;;  %vm2550_vm11 = vcmp.eq.f32.partialorder %v2549_v55, 8.507059e+37 }
 0x421   :  { %v2555_v30 = vmul.f32 %v2533_v58, %v6011_v6  ;;  %v2543_v26 = vmul.f32 %v4339_v23, %v2542_v19 }
 0x423   :  { %v6055_v37 = vadd.f32 %v2556_v52, %v2555_v30  ;;  %v2544_v12 = vadd.f32 %v4339_v23, %v2543_v26 }
 0x425   :  { %4342 = vtanh.f32 %v6055_v37  ;;  %v2548_v13 = vsel %vm2547_vm10, %v4339_v23, %v2544_v12  ;;  %v6285_v23 = vld [vmem:[#allocation6_spill] sm:$0xff] }
 0x426   :  { %v2553_v46 = vsel %vm2550_vm11, %v2552_v27, %v2548_v13  ;;  %v6286_v13 = vld [vmem:[#allocation11_spill] sm:$0xff] }
 0x42b   :  { %v4343_v62 = vpop.eup %4342 }
 0x42c   :  { %v2559_v6 = vmul.f32 %v4343_v62, %v2553_v46 }
 0x42e   :  { %v6060_v4 = vadd.f32 %v2559_v6, %v2431_v54  ;;  %v2569_v63 = vpack.c.bf16 %v2559_v6, %v2559_v6 }
 0x430   :  { %2578 = vmatmul.bf16.vlgmr.msrb.gmra.mxu0 %v2569_v63  ;;  %2591 = vmatmul.bf16.vlgmr.msra.gmra.mxu1 %v2569_v63 }
 0x431   :  { %2604 = vmatmul.bf16.vlgmr.msrb.gmra.mxu2 %v2569_v63  ;;  %2617 = vmatmul.bf16.vlgmr.msrb.gmra.mxu3 %v2569_v63 }
 0x432   :  { %2828 = vmatpush.bf16.msrb.mxu0 %v5462_v39  ;;  %2841 = vmatpush.bf16.msra.mxu1 %v5506_v32 }
 0x433   :  { %2854 = vmatpush.bf16.msrb.mxu2 %v5504_v31  ;;  %2867 = vmatpush.bf16.msrb.mxu3 %v5730_v47 }
 0x436   :  { %2829 = vmatpush.bf16.msrb.mxu0 %v5495_v45  ;;  %2842 = vmatpush.bf16.msra.mxu1 %v5531_v35 }
 0x437   :  { %2855 = vmatpush.bf16.msrb.mxu2 %v5537_v15  ;;  %2868 = vmatpush.bf16.msrb.mxu3 %v5743_v8 }
 0x43a   :  { %2830 = vmatpush.bf16.msrb.mxu0 %v5518_v53  ;;  %2843 = vmatpush.bf16.msra.mxu1 %v5558_v7 }
 0x43b   :  { %2856 = vmatpush.bf16.msrb.mxu2 %v5572_v51  ;;  %2869 = vmatpush.bf16.msrb.mxu3 %v5755_v18 }
 0x43e   :  { %2831 = vmatpush.bf16.msrb.mxu0 %v5545_v40  ;;  %2844 = vmatpush.bf16.msra.mxu1 %v5599_v49 }
 0x43f   :  { %2857 = vmatpush.bf16.msrb.mxu2 %v5605_v42  ;;  %2870 = vmatpush.bf16.msrb.mxu3 %v5768_v29 }
 0x442   :  { %2832 = vmatpush.bf16.msrb.mxu0 %v5587_v60  ;;  %2845 = vmatpush.bf16.msra.mxu1 %v5629_v14 }
 0x443   :  { %2858 = vmatpush.bf16.msrb.mxu2 %v5638_v38  ;;  %2871 = vmatpush.bf16.msrb.mxu3 %v5782_v61 }
 0x446   :  { %2833 = vmatpush.bf16.msrb.mxu0 %v5613_v48  ;;  %2846 = vmatpush.bf16.msra.mxu1 %v5662_v21 }
 0x447   :  { %2859 = vmatpush.bf16.msrb.mxu2 %v5664_v44  ;;  %2872 = vmatpush.bf16.msrb.mxu3 %v5796_v50 }
 0x44a   :  { %2834 = vmatpush.bf16.msrb.mxu0 %v5646_v24  ;;  %2847 = vmatpush.bf16.msra.mxu1 %v5691_v34 }
 0x44b   :  { %2860 = vmatpush.bf16.msrb.mxu2 %v5688_v20  ;;  %2873 = vmatpush.bf16.msrb.mxu3 %v5808_v57 }
 0x44e   :  { %2835 = vmatpush.bf16.msrb.mxu0 %v5676_v56  ;;  %2848 = vmatpush.bf16.msra.mxu1 %v5712_v41 }
 0x44f   :  { %2861 = vmatpush.bf16.msrb.mxu2 %v5708_v3  ;;  %2874 = vmatpush.bf16.msrb.mxu3 %v6282_v1 }
 0x4ad   :  { %v2579_v0 = vpop.f32.mrf.mxu0  ;;  %v2592_v16 = vpop.f32.mrf.mxu1 }
 0x4ae   :  { %v2622_v59 = vadd.f32 %v2579_v0, %v5917_v10  ;;  %v2623_v11 = vadd.f32 %v2592_v16, %v6285_v23 }
 0x4b0   :  { %v4063_v5 = vmul.f32 -1.442695, %v2622_v59  ;;  %v4064_v2 = vmul.f32 -1.442695, %v2623_v11 }
 0x4b2   :  { %4344 = vpow2.f32 %v4063_v5 }
 0x4b3   :  { %4346 = vpow2.f32 %v4064_v2 }
 0x4b4   :  { %v2605_v17 = vpop.f32.mrf.mxu2  ;;  %v2618_v43 = vpop.f32.mrf.mxu3 }
 0x4b5   :  { %v2625_v28 = vadd.f32 %v2618_v43, %v5956_v22  ;;  %v2581_v9 = vpop.f32.mrf.mxu0  ;;  %v2594_v33 = vpop.f32.mrf.mxu1  ;;  %v2624_v27 = vadd.f32 %v2605_v17, %v6286_v13 }
 0x4b7   :  { %v4065_v25 = vmul.f32 -1.442695, %v2625_v28 }
 0x4b8   :  { %v4345_v19 = vpop.eup %4344 }
 0x4b9   :  { %v4347_v58 = vpop.eup %4346  ;;  %v2629_v52 = vadd.f32 1.0, %v4345_v19  ;;  %4348 = vpow2.f32 %v4065_v25 }
 0x4ba   :  { %v2648_v30 = vadd.f32 1.0, %v4347_v58 }
 0x4bb   :  { %4350 = vrcp.f32 %v2629_v52  ;;  %v2641_v63 = vand.u32 2147483648, %v2629_v52  ;;  %v2639_v59 = vand.u32 2147483647, %v2629_v52  ;;  %vm2635_vm14 = vweird.f32 %v2629_v52 }
 0x4bc   :  { %4352 = vrcp.f32 %v2648_v30  ;;  %v2607_v10 = vpop.f32.mrf.mxu2  ;;  %v2620_v26 = vpop.f32.mrf.mxu3  ;;  %v2660_v0 = vand.u32 2147483648, %v2648_v30  ;;  %v2658_v11 = vand.u32 2147483647, %v2648_v30  ;;  %vm2654_vm15 = vweird.f32 %v2648_v30 }
 0x4bd   :  { %v2642_v17 = vor.u32 1.1754944e-38, %v2641_v63  ;;  %vm2640_vm2 = vcmp.eq.f32.partialorder %v2639_v59, 8.507059e+37 }
 0x4be   :  { %v2661_v9 = vor.u32 1.1754944e-38, %v2660_v0  ;;  %vm2659_vm3 = vcmp.eq.f32.partialorder %v2658_v11, 8.507059e+37 }
 0x4bf   :  { %v4349_v12 = vpop.eup %4348 }
 0x4c0   :  { %v2668_v36 = vadd.f32 1.0, %v4349_v12 }
 0x4c1   :  { %v4351_v55 = vpop.eup %4350 }
 0x4c2   :  { %v4353_v62 = vpop.eup %4352  ;;  %v2631_v46 = vmul.f32 %v4351_v55, %v2629_v52  ;;  %4354 = vrcp.f32 %v2668_v36  ;;  %vm2636_vm12 = vweird.f32 %v4351_v55  ;;  %vm2674_vm5 = vweird.f32 %v2668_v36 }
 0x4c3   :  { %v2650_v22 = vmul.f32 %v4353_v62, %v2648_v30  ;;  %4356 = vtanh.f32 %v2624_v27  ;;  %vm2655_vm13 = vweird.f32 %v4353_v62  ;;  %vm2637_vm0 = vmor %vm2635_vm14, %vm2636_vm12 }
 0x4c4   :  { %v2632_v54 = vsub.f32 1.0, %v2631_v46  ;;  %vm2656_vm1 = vmor %vm2654_vm15, %vm2655_vm13  ;;  %v2680_v46 = vand.u32 2147483648, %v2668_v36 }
 0x4c5   :  { %v2651_v6 = vsub.f32 1.0, %v2650_v22 }
 0x4c6   :  { %v2633_v16 = vmul.f32 %v4351_v55, %v2632_v54  ;;  %v2681_v54 = vor.u32 1.1754944e-38, %v2680_v46 }
 0x4c7   :  { %v2652_v23 = vmul.f32 %v4353_v62, %v2651_v6 }
 0x4c8   :  { %v4355_v5 = vpop.eup %4354  ;;  %v2634_v2 = vadd.f32 %v4351_v55, %v2633_v16  ;;  %v6287_v16 = vld [vmem:[#allocation12_spill] sm:$0xff] }
 0x4c9   :  { %v2653_v43 = vadd.f32 %v4353_v62, %v2652_v23  ;;  %v2670_v28 = vmul.f32 %v4355_v5, %v2668_v36  ;;  %v4357_v25 = vpop.eup %4356  ;;  %vm2675_vm4 = vweird.f32 %v4355_v5  ;;  %v6288_v23 = vld [vmem:[#allocation7_spill] sm:$0xff] }
 0x4ca   :  { %v2638_v33 = vsel %vm2637_vm0, %v4351_v55, %v2634_v2  ;;  %v2678_v55 = vand.u32 2147483647, %v2668_v36  ;;  %vm2676_vm6 = vmor %vm2674_vm5, %vm2675_vm4 }
 0x4cb   :  { %v2643_v19 = vsel %vm2640_vm2, %v2642_v17, %v2638_v33  ;;  %v2657_v58 = vsel %vm2656_vm1, %v4353_v62, %v2653_v43  ;;  %v2671_v10 = vsub.f32 1.0, %v2670_v28  ;;  %v6289_v28 = vld [vmem:[#allocation20_spill] sm:$0xff] }
 0x4cc   :  { %v2662_v26 = vsel %vm2659_vm3, %v2661_v9, %v2657_v58  ;;  %v2685_v12 = vmul.f32 %v4357_v25, %v2643_v19  ;;  %vm2679_vm7 = vcmp.eq.f32.partialorder %v2678_v55, 8.507059e+37 }
 0x4cd   :  { %v2684_v13 = vmul.f32 %v2662_v26, %v6055_v37  ;;  %v2672_v27 = vmul.f32 %v4355_v5, %v2671_v10 }
 0x4cf   :  { %v6099_v52 = vadd.f32 %v2685_v12, %v2684_v13  ;;  %v2673_v30 = vadd.f32 %v4355_v5, %v2672_v27 }
 0x4d1   :  { %4358 = vtanh.f32 %v6099_v52  ;;  %v2677_v22 = vsel %vm2676_vm6, %v4355_v5, %v2673_v30 }
 0x4d2   :  { %v2682_v6 = vsel %vm2679_vm7, %v2681_v54, %v2677_v22  ;;  %v6290_v22 = vld [vmem:[#allocation13_spill] sm:$0xff] }
 0x4d7   :  { %v4359_v62 = vpop.eup %4358 }
 0x4d8   :  { %v2688_v63 = vmul.f32 %v4359_v62, %v2682_v6 }
 0x4da   :  { %v6103_v0 = vadd.f32 %v2688_v63, %v6060_v4  ;;  %v2698_v37 = vpack.c.bf16 %v2688_v63, %v2688_v63 }
 0x4dc   :  { %2707 = vmatmul.bf16.vlgmr.msra.gmra.mxu0 %v2698_v37  ;;  %2720 = vmatmul.bf16.vlgmr.msrb.gmra.mxu1 %v2698_v37 }
 0x4dd   :  { %2733 = vmatmul.bf16.vlgmr.msra.gmra.mxu2 %v2698_v37  ;;  %2746 = vmatmul.bf16.vlgmr.msra.gmra.mxu3 %v2698_v37 }
 0x4de   :  { %2957 = vmatpush.bf16.msra.mxu0 %v5462_v39  ;;  %2970 = vmatpush.bf16.msrb.mxu1 %v5506_v32 }
 0x4df   :  { %2983 = vmatpush.bf16.msra.mxu2 %v5504_v31  ;;  %2996 = vmatpush.bf16.msra.mxu3 %v5730_v47 }
 0x4e2   :  { %2958 = vmatpush.bf16.msra.mxu0 %v5495_v45  ;;  %2971 = vmatpush.bf16.msrb.mxu1 %v5531_v35 }
 0x4e3   :  { %2984 = vmatpush.bf16.msra.mxu2 %v5537_v15  ;;  %2997 = vmatpush.bf16.msra.mxu3 %v5743_v8 }
 0x4e6   :  { %2959 = vmatpush.bf16.msra.mxu0 %v5518_v53  ;;  %2972 = vmatpush.bf16.msrb.mxu1 %v5558_v7 }
 0x4e7   :  { %2985 = vmatpush.bf16.msra.mxu2 %v5572_v51  ;;  %2998 = vmatpush.bf16.msra.mxu3 %v5755_v18 }
 0x4ea   :  { %2960 = vmatpush.bf16.msra.mxu0 %v5545_v40  ;;  %2973 = vmatpush.bf16.msrb.mxu1 %v5599_v49 }
 0x4eb   :  { %2986 = vmatpush.bf16.msra.mxu2 %v5605_v42  ;;  %2999 = vmatpush.bf16.msra.mxu3 %v5768_v29 }
 0x4ee   :  { %2961 = vmatpush.bf16.msra.mxu0 %v5587_v60  ;;  %2974 = vmatpush.bf16.msrb.mxu1 %v5629_v14 }
 0x4ef   :  { %2987 = vmatpush.bf16.msra.mxu2 %v5638_v38  ;;  %3000 = vmatpush.bf16.msra.mxu3 %v5782_v61 }
 0x4f2   :  { %2962 = vmatpush.bf16.msra.mxu0 %v5613_v48  ;;  %2975 = vmatpush.bf16.msrb.mxu1 %v5662_v21 }
 0x4f3   :  { %2988 = vmatpush.bf16.msra.mxu2 %v5664_v44  ;;  %3001 = vmatpush.bf16.msra.mxu3 %v5796_v50 }
 0x4f6   :  { %2963 = vmatpush.bf16.msra.mxu0 %v5646_v24  ;;  %2976 = vmatpush.bf16.msrb.mxu1 %v5691_v34 }
 0x4f7   :  { %2989 = vmatpush.bf16.msra.mxu2 %v5688_v20  ;;  %3002 = vmatpush.bf16.msra.mxu3 %v5808_v57 }
 0x4fa   :  { %2964 = vmatpush.bf16.msra.mxu0 %v5676_v56  ;;  %2977 = vmatpush.bf16.msrb.mxu1 %v5712_v41 }
 0x4fb   :  { %2990 = vmatpush.bf16.msra.mxu2 %v5708_v3  ;;  %3003 = vmatpush.bf16.msra.mxu3 %v6282_v1 }
 0x559   :  { %v2708_v4 = vpop.f32.mrf.mxu0  ;;  %v2721_v36 = vpop.f32.mrf.mxu1 }
 0x55a   :  { %v2751_v59 = vadd.f32 %v2708_v4, %v6287_v16  ;;  %v2752_v11 = vadd.f32 %v2721_v36, %v6288_v23 }
 0x55c   :  { %v4066_v5 = vmul.f32 -1.442695, %v2751_v59  ;;  %v4067_v2 = vmul.f32 -1.442695, %v2752_v11 }
 0x55e   :  { %4360 = vpow2.f32 %v4066_v5 }
 0x55f   :  { %4362 = vpow2.f32 %v4067_v2 }
 0x560   :  { %v2734_v17 = vpop.f32.mrf.mxu2  ;;  %v2747_v43 = vpop.f32.mrf.mxu3 }
 0x561   :  { %v2754_v9 = vadd.f32 %v2747_v43, %v6289_v28  ;;  %v2710_v33 = vpop.f32.mrf.mxu0  ;;  %v2723_v25 = vpop.f32.mrf.mxu1  ;;  %v2753_v54 = vadd.f32 %v2734_v17, %v6290_v22 }
 0x563   :  { %v4068_v19 = vmul.f32 -1.442695, %v2754_v9 }
 0x564   :  { %v4361_v58 = vpop.eup %4360 }
 0x565   :  { %v4363_v10 = vpop.eup %4362  ;;  %v2758_v26 = vadd.f32 1.0, %v4361_v58  ;;  %4364 = vpow2.f32 %v4068_v19 }
 0x566   :  { %v2777_v12 = vadd.f32 1.0, %v4363_v10 }
 0x567   :  { %4366 = vrcp.f32 %v2758_v26  ;;  %v2770_v36 = vand.u32 2147483648, %v2758_v26  ;;  %v2768_v23 = vand.u32 2147483647, %v2758_v26  ;;  %vm2764_vm10 = vweird.f32 %v2758_v26 }
 0x568   :  { %4368 = vrcp.f32 %v2777_v12  ;;  %v2736_v13 = vpop.f32.mrf.mxu2  ;;  %v2749_v27 = vpop.f32.mrf.mxu3  ;;  %v2789_v16 = vand.u32 2147483648, %v2777_v12  ;;  %v2787_v5 = vand.u32 2147483647, %v2777_v12  ;;  %vm2783_vm11 = vweird.f32 %v2777_v12 }
 0x569   :  { %v2771_v17 = vor.u32 1.1754944e-38, %v2770_v36  ;;  %vm2769_vm14 = vcmp.eq.f32.partialorder %v2768_v23, 8.507059e+37 }
 0x56a   :  { %v2790_v33 = vor.u32 1.1754944e-38, %v2789_v16  ;;  %vm2788_vm15 = vcmp.eq.f32.partialorder %v2787_v5, 8.507059e+37 }
 0x56b   :  { %v4365_v30 = vpop.eup %4364 }
 0x56c   :  { %v2797_v46 = vadd.f32 1.0, %v4365_v30 }
 0x56d   :  { %v4367_v55 = vpop.eup %4366 }
 0x56e   :  { %v4369_v62 = vpop.eup %4368  ;;  %v2760_v6 = vmul.f32 %v4367_v55, %v2758_v26  ;;  %4370 = vrcp.f32 %v2797_v46  ;;  %vm2765_vm8 = vweird.f32 %v4367_v55  ;;  %vm2803_vm1 = vweird.f32 %v2797_v46 }
 0x56f   :  { %v2779_v63 = vmul.f32 %v4369_v62, %v2777_v12  ;;  %4372 = vtanh.f32 %v2753_v54  ;;  %vm2784_vm9 = vweird.f32 %v4369_v62  ;;  %vm2766_vm12 = vmor %vm2764_vm10, %vm2765_vm8 }
 0x570   :  { %v2761_v37 = vsub.f32 1.0, %v2760_v6  ;;  %vm2785_vm13 = vmor %vm2783_vm11, %vm2784_vm9  ;;  %v2809_v6 = vand.u32 2147483648, %v2797_v46 }
 0x571   :  { %v2780_v4 = vsub.f32 1.0, %v2779_v63 }
 0x572   :  { %v2762_v59 = vmul.f32 %v4367_v55, %v2761_v37  ;;  %v2810_v37 = vor.u32 1.1754944e-38, %v2809_v6 }
 0x573   :  { %v2781_v11 = vmul.f32 %v4369_v62, %v2780_v4 }
 0x574   :  { %v4371_v2 = vpop.eup %4370  ;;  %v2763_v43 = vadd.f32 %v4367_v55, %v2762_v59 }
 0x575   :  { %v2782_v28 = vadd.f32 %v4369_v62, %v2781_v11  ;;  %v2799_v9 = vmul.f32 %v4371_v2, %v2797_v46  ;;  %v4373_v19 = vpop.eup %4372  ;;  %vm2804_vm0 = vweird.f32 %v4371_v2 }
 0x576   :  { %v2767_v25 = vsel %vm2766_vm12, %v4367_v55, %v2763_v43  ;;  %v2807_v55 = vand.u32 2147483647, %v2797_v46  ;;  %vm2805_vm2 = vmor %vm2803_vm1, %vm2804_vm0 }
 0x577   :  { %v2772_v58 = vsel %vm2769_vm14, %v2771_v17, %v2767_v25  ;;  %v2786_v10 = vsel %vm2785_vm13, %v4369_v62, %v2782_v28  ;;  %v2800_v13 = vsub.f32 1.0, %v2799_v9 }
 0x578   :  { %v2791_v27 = vsel %vm2788_vm15, %v2790_v33, %v2786_v10  ;;  %v2814_v30 = vmul.f32 %v4373_v19, %v2772_v58  ;;  %vm2808_vm3 = vcmp.eq.f32.partialorder %v2807_v55, 8.507059e+37 }
 0x579   :  { %v2813_v22 = vmul.f32 %v2791_v27, %v6099_v52  ;;  %v2801_v54 = vmul.f32 %v4371_v2, %v2800_v13 }
 0x57b   :  { %v6142_v26 = vadd.f32 %v2814_v30, %v2813_v22  ;;  %v2802_v12 = vadd.f32 %v4371_v2, %v2801_v54 }
 0x57d   :  { %4374 = vtanh.f32 %v6142_v26  ;;  %v2806_v63 = vsel %vm2805_vm2, %v4371_v2, %v2802_v12 }
 0x57e   :  { %v2811_v4 = vsel %vm2808_vm3, %v2810_v37, %v2806_v63 }
 0x583   :  { %v4375_v62 = vpop.eup %4374 }
 0x584   :  { %v2817_v36 = vmul.f32 %v4375_v62, %v2811_v4 }
 0x586   :  { %v6146_v16 = vadd.f32 %v2817_v36, %v6103_v0  ;;  %v2827_v52 = vpack.c.bf16 %v2817_v36, %v2817_v36 }
 0x588   :  { %2836 = vmatmul.bf16.vlgmr.msrb.gmra.mxu0 %v2827_v52  ;;  %2849 = vmatmul.bf16.vlgmr.msra.gmra.mxu1 %v2827_v52 }
 0x589   :  { %2862 = vmatmul.bf16.vlgmr.msrb.gmra.mxu2 %v2827_v52  ;;  %2875 = vmatmul.bf16.vlgmr.msrb.gmra.mxu3 %v2827_v52 }
 0x58a   :  { %3086 = vmatpush.bf16.msrb.mxu0 %v5462_v39  ;;  %3099 = vmatpush.bf16.msra.mxu1 %v5506_v32 }
 0x58b   :  { %3112 = vmatpush.bf16.msrb.mxu2 %v5504_v31  ;;  %3125 = vmatpush.bf16.msrb.mxu3 %v5730_v47  ;;  %v6291_v31 = vld [vmem:[#allocation14_spill] sm:$0xff]  ;;  %v6294_v47 = vld [vmem:[#allocation15_spill] sm:$0xff] }
 0x58e   :  { %3087 = vmatpush.bf16.msrb.mxu0 %v5495_v45  ;;  %3100 = vmatpush.bf16.msra.mxu1 %v5531_v35 }
 0x58f   :  { %3113 = vmatpush.bf16.msrb.mxu2 %v5537_v15  ;;  %3126 = vmatpush.bf16.msrb.mxu3 %v5743_v8 }
 0x592   :  { %3088 = vmatpush.bf16.msrb.mxu0 %v5518_v53  ;;  %3101 = vmatpush.bf16.msra.mxu1 %v5558_v7  ;;  %v6292_v53 = vld [vmem:[#allocation8_spill] sm:$0xff] }
 0x593   :  { %3114 = vmatpush.bf16.msrb.mxu2 %v5572_v51  ;;  %3127 = vmatpush.bf16.msrb.mxu3 %v5755_v18 }
 0x596   :  { %3089 = vmatpush.bf16.msrb.mxu0 %v5545_v40  ;;  %3102 = vmatpush.bf16.msra.mxu1 %v5599_v49 }
 0x597   :  { %3115 = vmatpush.bf16.msrb.mxu2 %v5605_v42  ;;  %3128 = vmatpush.bf16.msrb.mxu3 %v5768_v29 }
 0x59a   :  { %3090 = vmatpush.bf16.msrb.mxu0 %v5587_v60  ;;  %3103 = vmatpush.bf16.msra.mxu1 %v5629_v14  ;;  %v6293_v60 = vld [vmem:[#allocation21_spill] sm:$0xff] }
 0x59b   :  { %3116 = vmatpush.bf16.msrb.mxu2 %v5638_v38  ;;  %3129 = vmatpush.bf16.msrb.mxu3 %v5782_v61 }
 0x59e   :  { %3091 = vmatpush.bf16.msrb.mxu0 %v5613_v48  ;;  %3104 = vmatpush.bf16.msra.mxu1 %v5662_v21 }
 0x59f   :  { %3117 = vmatpush.bf16.msrb.mxu2 %v5664_v44  ;;  %3130 = vmatpush.bf16.msrb.mxu3 %v5796_v50 }
 0x5a2   :  { %3092 = vmatpush.bf16.msrb.mxu0 %v5646_v24  ;;  %3105 = vmatpush.bf16.msra.mxu1 %v5691_v34 }
 0x5a3   :  { %3118 = vmatpush.bf16.msrb.mxu2 %v5688_v20  ;;  %3131 = vmatpush.bf16.msrb.mxu3 %v5808_v57 }
 0x5a6   :  { %3093 = vmatpush.bf16.msrb.mxu0 %v5676_v56  ;;  %3106 = vmatpush.bf16.msra.mxu1 %v5712_v41 }
 0x5a7   :  { %3119 = vmatpush.bf16.msrb.mxu2 %v5708_v3  ;;  %3132 = vmatpush.bf16.msrb.mxu3 %v6282_v1 }
 0x605   :  { %v2837_v39 = vpop.f32.mrf.mxu0  ;;  %v2850_v45 = vpop.f32.mrf.mxu1 }
 0x606   :  { %v2880_v32 = vadd.f32 %v2837_v39, %v6291_v31  ;;  %v2881_v35 = vadd.f32 %v2850_v45, %v6292_v53  ;;  %v6295_v31 = vld [vmem:[#allocation16_spill] sm:$0xff]  ;;  %v6296_v53 = vld [vmem:[#allocation9_spill] sm:$0xff] }
 0x608   :  { %v4069_v15 = vmul.f32 -1.442695, %v2880_v32  ;;  %v4070_v40 = vmul.f32 -1.442695, %v2881_v35 }
 0x60a   :  { %4376 = vpow2.f32 %v4069_v15 }
 0x60b   :  { %4378 = vpow2.f32 %v4070_v40 }
 0x60c   :  { %v2863_v7 = vpop.f32.mrf.mxu2  ;;  %v2876_v51 = vpop.f32.mrf.mxu3 }
 0x60d   :  { %v2883_v49 = vadd.f32 %v2876_v51, %v6293_v60  ;;  %v2839_v42 = vpop.f32.mrf.mxu0  ;;  %v2852_v48 = vpop.f32.mrf.mxu1  ;;  %v2882_v8 = vadd.f32 %v2863_v7, %v6294_v47  ;;  %v6297_v60 = vld [vmem:[#allocation22_spill] sm:$0xff] }
 0x60f   :  { %v4071_v14 = vmul.f32 -1.442695, %v2883_v49 }
 0x610   :  { %v4377_v38 = vpop.eup %4376 }
 0x611   :  { %v4379_v24 = vpop.eup %4378  ;;  %v2887_v21 = vadd.f32 1.0, %v4377_v38  ;;  %4380 = vpow2.f32 %v4071_v14 }
 0x612   :  { %v2906_v44 = vadd.f32 1.0, %v4379_v24 }
 0x613   :  { %4382 = vrcp.f32 %v2887_v21  ;;  %v2899_v1 = vand.u32 2147483648, %v2887_v21  ;;  %v2897_v59 = vand.u32 2147483647, %v2887_v21  ;;  %vm2893_vm6 = vweird.f32 %v2887_v21 }
 0x614   :  { %4384 = vrcp.f32 %v2906_v44  ;;  %v2865_v56 = vpop.f32.mrf.mxu2  ;;  %v2878_v20 = vpop.f32.mrf.mxu3  ;;  %v2918_v0 = vand.u32 2147483648, %v2906_v44  ;;  %v2916_v11 = vand.u32 2147483647, %v2906_v44  ;;  %vm2912_vm7 = vweird.f32 %v2906_v44 }
 0x615   :  { %v2900_v43 = vor.u32 1.1754944e-38, %v2899_v1  ;;  %vm2898_vm10 = vcmp.eq.f32.partialorder %v2897_v59, 8.507059e+37 }
 0x616   :  { %v2919_v9 = vor.u32 1.1754944e-38, %v2918_v0  ;;  %vm2917_vm11 = vcmp.eq.f32.partialorder %v2916_v11, 8.507059e+37 }
 0x617   :  { %v4381_v34 = vpop.eup %4380 }
 0x618   :  { %v2926_v3 = vadd.f32 1.0, %v4381_v34 }
 0x619   :  { %v4383_v41 = vpop.eup %4382 }
 0x61a   :  { %v4385_v18 = vpop.eup %4384  ;;  %v2889_v29 = vmul.f32 %v4383_v41, %v2887_v21  ;;  %4386 = vrcp.f32 %v2926_v3  ;;  %vm2894_vm4 = vweird.f32 %v4383_v41  ;;  %v2938_v6 = vand.u32 2147483648, %v2926_v3 }
 0x61b   :  { %v2908_v61 = vmul.f32 %v4385_v18, %v2906_v44  ;;  %4388 = vtanh.f32 %v2882_v8  ;;  %vm2913_vm5 = vweird.f32 %v4385_v18  ;;  %vm2895_vm8 = vmor %vm2893_vm6, %vm2894_vm4  ;;  %vm2932_vm13 = vweird.f32 %v2926_v3 }
 0x61c   :  { %v2890_v50 = vsub.f32 1.0, %v2889_v29  ;;  %vm2914_vm9 = vmor %vm2912_vm7, %vm2913_vm5  ;;  %v2936_v55 = vand.u32 2147483647, %v2926_v3  ;;  %v2939_v37 = vor.u32 1.1754944e-38, %v2938_v6 }
 0x61d   :  { %v2909_v57 = vsub.f32 1.0, %v2908_v61 }
 0x61e   :  { %v2891_v46 = vmul.f32 %v4383_v41, %v2890_v50  ;;  %vm2937_vm15 = vcmp.eq.f32.partialorder %v2936_v55, 8.507059e+37 }
 0x61f   :  { %v2910_v23 = vmul.f32 %v4385_v18, %v2909_v57 }
 0x620   :  { %v4387_v5 = vpop.eup %4386  ;;  %v2892_v2 = vadd.f32 %v4383_v41, %v2891_v46 }
 0x621   :  { %v2911_v17 = vadd.f32 %v4385_v18, %v2910_v23  ;;  %v2928_v28 = vmul.f32 %v4387_v5, %v2926_v3  ;;  %v4389_v25 = vpop.eup %4388  ;;  %vm2933_vm12 = vweird.f32 %v4387_v5 }
 0x622   :  { %v2896_v33 = vsel %vm2895_vm8, %v4383_v41, %v2892_v2  ;;  %vm2934_vm14 = vmor %vm2932_vm13, %vm2933_vm12  ;;  %v6298_v41 = vld [vmem:[#allocation17_spill] sm:$0xff] }
 0x623   :  { %v2901_v19 = vsel %vm2898_vm10, %v2900_v43, %v2896_v33  ;;  %v2915_v58 = vsel %vm2914_vm9, %v4385_v18, %v2911_v17  ;;  %v2929_v10 = vsub.f32 1.0, %v2928_v28 }
 0x624   :  { %v2920_v13 = vsel %vm2917_vm11, %v2919_v9, %v2915_v58  ;;  %v2943_v27 = vmul.f32 %v4389_v25, %v2901_v19 }
 0x625   :  { %v2942_v30 = vmul.f32 %v2920_v13, %v6142_v26  ;;  %v2930_v22 = vmul.f32 %v4387_v5, %v2929_v10 }
 0x627   :  { %v6185_v54 = vadd.f32 %v2943_v27, %v2942_v30  ;;  %v2931_v12 = vadd.f32 %v4387_v5, %v2930_v22 }
 0x629   :  { %4390 = vtanh.f32 %v6185_v54  ;;  %v2935_v63 = vsel %vm2934_vm14, %v4387_v5, %v2931_v12 }
 0x62a   :  { %v2940_v4 = vsel %vm2937_vm15, %v2939_v37, %v2935_v63 }
 0x62f   :  { %v4391_v62 = vpop.eup %4390 }
 0x630   :  { %v2946_v36 = vmul.f32 %v4391_v62, %v2940_v4 }
 0x632   :  { %v6189_v52 = vadd.f32 %v2946_v36, %v6146_v16  ;;  %v2956_v26 = vpack.c.bf16 %v2946_v36, %v2946_v36 }
 0x634   :  { %2965 = vmatmul.bf16.vlgmr.msra.gmra.mxu0 %v2956_v26  ;;  %2978 = vmatmul.bf16.vlgmr.msrb.gmra.mxu1 %v2956_v26 }
 0x635   :  { %2991 = vmatmul.bf16.vlgmr.msra.gmra.mxu2 %v2956_v26  ;;  %3004 = vmatmul.bf16.vlgmr.msra.gmra.mxu3 %v2956_v26 }
 0x6b1   :  { %v2966_v39 = vpop.f32.mrf.mxu0  ;;  %v2979_v45 = vpop.f32.mrf.mxu1 }
 0x6b2   :  { %v3009_v32 = vadd.f32 %v2966_v39, %v6295_v31  ;;  %v3010_v35 = vadd.f32 %v2979_v45, %v6296_v53  ;;  %v4287_v39 = vld [vmem:[%s6255_s10 + $0x38] sm:$0xff]  ;;  %v4286_v45 = vld [vmem:[%s6255_s10 + $0x30] sm:$0xff]  ;;  %v4285_v31 = vld [vmem:[%s6255_s10 + $0x28] sm:$0xff] }
 0x6b3   :  { %3275 = vmatpush.bf16.msra.mxu0 %v4287_v39 }
 0x6b4   :  { %v4072_v15 = vmul.f32 -1.442695, %v3009_v32  ;;  %v4073_v40 = vmul.f32 -1.442695, %v3010_v35  ;;  %v6299_v35 = vld [vmem:[#allocation18_spill] sm:$0xff] }
 0x6b6   :  { %4392 = vpow2.f32 %v4072_v15 }
 0x6b7   :  { %4394 = vpow2.f32 %v4073_v40  ;;  %3276 = vmatpush.bf16.msra.mxu0 %v4286_v45  ;;  %v6300_v40 = vld [vmem:[#allocation10_spill] sm:$0xff] }
 0x6b8   :  { %v2992_v7 = vpop.f32.mrf.mxu2  ;;  %v3005_v51 = vpop.f32.mrf.mxu3 }
 0x6b9   :  { %v3012_v16 = vadd.f32 %v3005_v51, %v6297_v60  ;;  %v2968_v49 = vpop.f32.mrf.mxu0  ;;  %v2981_v42 = vpop.f32.mrf.mxu1  ;;  %v3011_v47 = vadd.f32 %v2992_v7, %v6298_v41  ;;  %v4283_v51 = vld [vmem:[%s6255_s10 + $0x18] sm:$0xff] }
 0x6ba   :  { %v4282_v49 = vld [vmem:[%s6255_s10 + $0x10] sm:$0xff] }
 0x6bb   :  { %v4074_v48 = vmul.f32 -1.442695, %v3012_v16  ;;  %3277 = vmatpush.bf16.msra.mxu0 %v4285_v31 }
 0x6bc   :  { %v4393_v14 = vpop.eup %4392 }
 0x6bd   :  { %v4395_v38 = vpop.eup %4394  ;;  %v3016_v24 = vadd.f32 1.0, %v4393_v14  ;;  %4396 = vpow2.f32 %v4074_v48  ;;  %v4281_v14 = vld [vmem:[%s6255_s10 + $0x8] sm:$0xff] }
 0x6be   :  { %v3035_v21 = vadd.f32 1.0, %v4395_v38  ;;  %v6301_v38 = vld [vmem:[#allocation23_spill] sm:$0xff] }
 0x6bf   :  { %4398 = vrcp.f32 %v3016_v24  ;;  %v3028_v57 = vand.u32 2147483648, %v3016_v24  ;;  %v3026_v46 = vand.u32 2147483647, %v3016_v24  ;;  %vm3022_vm2 = vweird.f32 %v3016_v24 }
 0x6c0   :  { %4400 = vrcp.f32 %v3035_v21  ;;  %v2994_v44 = vpop.f32.mrf.mxu2  ;;  %v3007_v56 = vpop.f32.mrf.mxu3  ;;  %v3047_v1 = vand.u32 2147483648, %v3035_v21  ;;  %v3045_v23 = vand.u32 2147483647, %v3035_v21  ;;  %vm3041_vm3 = vweird.f32 %v3035_v21 }
 0x6c1   :  { %v3029_v2 = vor.u32 1.1754944e-38, %v3028_v57  ;;  %vm3027_vm6 = vcmp.eq.f32.partialorder %v3026_v46, 8.507059e+37  ;;  %v6302_v57 = vld [vmem:[#allocation19_spill] sm:$0xff] }
 0x6c2   :  { %v3048_v28 = vor.u32 1.1754944e-38, %v3047_v1  ;;  %vm3046_vm7 = vcmp.eq.f32.partialorder %v3045_v23, 8.507059e+37 }
 0x6c3   :  { %v4397_v20 = vpop.eup %4396 }
 0x6c4   :  { %v3055_v34 = vadd.f32 1.0, %v4397_v20 }
 0x6c5   :  { %v4399_v3 = vpop.eup %4398 }
 0x6c6   :  { %v4401_v8 = vpop.eup %4400  ;;  %v3018_v18 = vmul.f32 %v4399_v3, %v3016_v24  ;;  %4402 = vrcp.f32 %v3055_v34  ;;  %vm3023_vm0 = vweird.f32 %v4399_v3  ;;  %v3067_v6 = vand.u32 2147483648, %v3055_v34 }
 0x6c7   :  { %v3037_v29 = vmul.f32 %v4401_v8, %v3035_v21  ;;  %4404 = vtanh.f32 %v3011_v47  ;;  %vm3042_vm1 = vweird.f32 %v4401_v8  ;;  %vm3024_vm4 = vmor %vm3022_vm2, %vm3023_vm0  ;;  %vm3061_vm9 = vweird.f32 %v3055_v34 }
 0x6c8   :  { %v3019_v61 = vsub.f32 1.0, %v3018_v18  ;;  %vm3043_vm5 = vmor %vm3041_vm3, %vm3042_vm1  ;;  %v3065_v55 = vand.u32 2147483647, %v3055_v34  ;;  %v3068_v37 = vor.u32 1.1754944e-38, %v3067_v6 }
 0x6c9   :  { %v3038_v50 = vsub.f32 1.0, %v3037_v29 }
 0x6ca   :  { %v3020_v0 = vmul.f32 %v4399_v3, %v3019_v61  ;;  %vm3066_vm11 = vcmp.eq.f32.partialorder %v3065_v55, 8.507059e+37 }
 0x6cb   :  { %v3039_v59 = vmul.f32 %v4401_v8, %v3038_v50 }
 0x6cc   :  { %v4403_v11 = vpop.eup %4402  ;;  %v3021_v5 = vadd.f32 %v4399_v3, %v3020_v0 }
 0x6cd   :  { %v3040_v43 = vadd.f32 %v4401_v8, %v3039_v59  ;;  %v3057_v17 = vmul.f32 %v4403_v11, %v3055_v34  ;;  %v4405_v33 = vpop.eup %4404  ;;  %vm3062_vm8 = vweird.f32 %v4403_v11  ;;  %v4280_v34 = vld [vmem:[%s6255_s10] sm:$0xff] }
 0x6ce   :  { %v3025_v9 = vsel %vm3024_vm4, %v4399_v3, %v3021_v5  ;;  %vm3063_vm10 = vmor %vm3061_vm9, %vm3062_vm8  ;;  %vm3294_vm8 = vcmask 257024   ;;  %vm3304_vm9 = vcmask 3072  }
 0x6cf   :  { %v3030_v25 = vsel %vm3027_vm6, %v3029_v2, %v3025_v9  ;;  %v3044_v19 = vsel %vm3043_vm5, %v4401_v8, %v3040_v43  ;;  %v3058_v58 = vsub.f32 1.0, %v3057_v17 }
 0x6d0   :  { %v3049_v10 = vsel %vm3046_vm7, %v3048_v28, %v3044_v19  ;;  %v3072_v13 = vmul.f32 %v4405_v33, %v3030_v25 }
 0x6d1   :  { %v3071_v27 = vmul.f32 %v3049_v10, %v6185_v54  ;;  %v3059_v30 = vmul.f32 %v4403_v11, %v3058_v58 }
 0x6d3   :  { %v6196_v22 = vadd.f32 %v3072_v13, %v3071_v27  ;;  %v3060_v12 = vadd.f32 %v4403_v11, %v3059_v30 }
 0x6d5   :  { %4406 = vtanh.f32 %v6196_v22  ;;  %v3064_v63 = vsel %vm3063_vm10, %v4403_v11, %v3060_v12 }
 0x6d6   :  { %v3069_v4 = vsel %vm3066_vm11, %v3068_v37, %v3064_v63 }
 0x6db   :  { %v4407_v62 = vpop.eup %4406 }
 0x6dc   :  { %v3075_v36 = vmul.f32 %v4407_v62, %v3069_v4 }
 0x6de   :  { %v3085_v26 = vpack.c.bf16 %v3075_v36, %v3075_v36  ;;  %v6200_v54 = vadd.f32 %v3075_v36, %v6189_v52  ;;  %v4284_v52 = vld [vmem:[%s6255_s10 + $0x20] sm:$0xff] }
 0x6df   :  { %3278 = vmatpush.bf16.msra.mxu0 %v4284_v52 }
 0x6e0   :  { %3094 = vmatmul.bf16.vlgmr.msrb.gmra.mxu0 %v3085_v26  ;;  %3107 = vmatmul.bf16.vlgmr.msra.gmra.mxu1 %v3085_v26 }
 0x6e1   :  { %3120 = vmatmul.bf16.vlgmr.msrb.gmra.mxu2 %v3085_v26  ;;  %3133 = vmatmul.bf16.vlgmr.msrb.gmra.mxu3 %v3085_v26 }
 0x6e3   :  { %3279 = vmatpush.bf16.msra.mxu0 %v4283_v51 }
 0x6e7   :  { %3280 = vmatpush.bf16.msra.mxu0 %v4282_v49 }
 0x6eb   :  { %3281 = vmatpush.bf16.msra.mxu0 %v4281_v14 }
 0x6ef   :  { %3282 = vmatpush.bf16.msra.mxu0 %v4280_v34 }
 0x75d   :  { %v3095_v32 = vpop.f32.mrf.mxu0  ;;  %v3108_v53 = vpop.f32.mrf.mxu1 }
 0x75e   :  { %v3138_v15 = vadd.f32 %v3095_v32, %v6299_v35  ;;  %v3139_v7 = vadd.f32 %v3108_v53, %v6300_v40 }
 0x760   :  { %v4075_v60 = vmul.f32 -1.442695, %v3138_v15  ;;  %v4076_v16 = vmul.f32 -1.442695, %v3139_v7  ;;  %v4293_v7 = vld [vmem:[%s6254_s11] ss:$0 sm:$0xff] }
 0x762   :  { %4408 = vpow2.f32 %v4075_v60 }
 0x763   :  { %4410 = vpow2.f32 %v4076_v16  ;;  %v4294_v16 = vld [vmem:[%s6256_s12] ss:$0 sm:$0xff] }
 0x764   :  { %v3121_v42 = vpop.f32.mrf.mxu2  ;;  %v3134_v48 = vpop.f32.mrf.mxu3 }
 0x765   :  { %v3141_v24 = vadd.f32 %v3134_v48, %v6301_v38  ;;  %v3097_v21 = vpop.f32.mrf.mxu0  ;;  %v3110_v44 = vpop.f32.mrf.mxu1  ;;  %v3140_v1 = vadd.f32 %v3121_v42, %v6302_v57 }
 0x767   :  { %v4077_v56 = vmul.f32 -1.442695, %v3141_v24 }
 0x768   :  { %v4409_v20 = vpop.eup %4408 }
 0x769   :  { %v4411_v3 = vpop.eup %4410  ;;  %v3145_v41 = vadd.f32 1.0, %v4409_v20  ;;  %4412 = vpow2.f32 %v4077_v56 }
 0x76a   :  { %v3164_v47 = vadd.f32 1.0, %v4411_v3 }
 0x76b   :  { %4414 = vrcp.f32 %v3145_v41  ;;  %v3157_v5 = vand.u32 2147483648, %v3145_v41  ;;  %v3155_v17 = vand.u32 2147483647, %v3145_v41  ;;  %vm3151_vm14 = vweird.f32 %v3145_v41 }
 0x76c   :  { %4416 = vrcp.f32 %v3164_v47  ;;  %v3123_v8 = vpop.f32.mrf.mxu2  ;;  %v3136_v18 = vpop.f32.mrf.mxu3  ;;  %v3176_v2 = vand.u32 2147483648, %v3164_v47  ;;  %v3174_v9 = vand.u32 2147483647, %v3164_v47  ;;  %vm3170_vm15 = vweird.f32 %v3164_v47 }
 0x76d   :  { %v3158_v19 = vor.u32 1.1754944e-38, %v3157_v5  ;;  %vm3156_vm2 = vcmp.eq.f32.partialorder %v3155_v17, 8.507059e+37 }
 0x76e   :  { %v3177_v13 = vor.u32 1.1754944e-38, %v3176_v2  ;;  %vm3175_vm3 = vcmp.eq.f32.partialorder %v3174_v9, 8.507059e+37 }
 0x76f   :  { %v4413_v29 = vpop.eup %4412 }
 0x770   :  { %v3184_v61 = vadd.f32 1.0, %v4413_v29 }
 0x771   :  { %v4415_v50 = vpop.eup %4414 }
 0x772   :  { %v4417_v0 = vpop.eup %4416  ;;  %v3147_v46 = vmul.f32 %v4415_v50, %v3145_v41  ;;  %4418 = vrcp.f32 %v3184_v61  ;;  %vm3152_vm12 = vweird.f32 %v4415_v50  ;;  %v3196_v39 = vand.u32 2147483648, %v3184_v61 }
 0x773   :  { %v3166_v59 = vmul.f32 %v4417_v0, %v3164_v47  ;;  %4420 = vtanh.f32 %v3140_v1  ;;  %vm3171_vm13 = vweird.f32 %v4417_v0  ;;  %vm3153_vm0 = vmor %vm3151_vm14, %vm3152_vm12  ;;  %vm3190_vm5 = vweird.f32 %v3184_v61 }
 0x774   :  { %v3148_v23 = vsub.f32 1.0, %v3147_v46  ;;  %vm3172_vm1 = vmor %vm3170_vm15, %vm3171_vm13  ;;  %v3194_v45 = vand.u32 2147483647, %v3184_v61  ;;  %v3197_v52 = vor.u32 1.1754944e-38, %v3196_v39 }
 0x775   :  { %v3167_v11 = vsub.f32 1.0, %v3166_v59 }
 0x776   :  { %v3149_v43 = vmul.f32 %v4415_v50, %v3148_v23  ;;  %vm3195_vm7 = vcmp.eq.f32.partialorder %v3194_v45, 8.507059e+37 }
 0x777   :  { %v3168_v28 = vmul.f32 %v4417_v0, %v3167_v11 }
 0x778   :  { %v4419_v33 = vpop.eup %4418  ;;  %v3150_v25 = vadd.f32 %v4415_v50, %v3149_v43 }
 0x779   :  { %v3169_v58 = vadd.f32 %v4417_v0, %v3168_v28  ;;  %v3186_v10 = vmul.f32 %v4419_v33, %v3184_v61  ;;  %v4421_v30 = vpop.eup %4420  ;;  %vm3191_vm4 = vweird.f32 %v4419_v33 }
 0x77a   :  { %v3154_v27 = vsel %vm3153_vm0, %v4415_v50, %v3150_v25  ;;  %vm3192_vm6 = vmor %vm3190_vm5, %vm3191_vm4 }
 0x77b   :  { %v3159_v12 = vsel %vm3156_vm2, %v3158_v19, %v3154_v27  ;;  %v3173_v6 = vsel %vm3172_vm1, %v4417_v0, %v3169_v58  ;;  %v3187_v55 = vsub.f32 1.0, %v3186_v10 }
 0x77c   :  { %v3178_v63 = vsel %vm3175_vm3, %v3177_v13, %v3173_v6  ;;  %v3201_v37 = vmul.f32 %v4421_v30, %v3159_v12 }
 0x77d   :  { %v3200_v62 = vmul.f32 %v3178_v63, %v6196_v22  ;;  %v3188_v4 = vmul.f32 %v4419_v33, %v3187_v55  ;;  %v19_v22 = vstv %s6257_s13 }
 0x77e   :  { %20 = vst [vmem:[#allocation2] sm:$0x1] %v19_v22 }
 0x77f   :  { %v3202_v36 = vadd.f32 %v3201_v37, %v3200_v62  ;;  %v3189_v26 = vadd.f32 %v4419_v33, %v3188_v4 }
 0x781   :  { %4422 = vtanh.f32 %v3202_v36  ;;  %v3193_v31 = vsel %vm3192_vm6, %v4419_v33, %v3189_v26 }
 0x782   :  { %v3198_v53 = vsel %vm3195_vm7, %v3197_v52, %v3193_v31 }
 0x785   :  { %v4295_v14 = vld [vmem:[#allocation2] ss:$0 sm:$0xff] }
 0x787   :  { %v4423_v32 = vpop.eup %4422 }
 0x788   :  { %v3204_v35 = vmul.f32 %v4423_v32, %v3198_v53 }
 0x78a   :  { %v3205_v15 = vadd.f32 %v3204_v35, %v6200_v54 }
 0x78c   :  { %v3206_v40 = vpack.c.bf16 %v3205_v15, %v3205_v15 }
 0x78e   :  { %3283 = vmatmul.bf16.vlgmr.msra.gmra.mxu0 %v3206_v40 }
 0x80b   :  { %v3284_v51 = vpop.f32.mrf.mxu0 }
 0x80c   :  { %v3285_v60 = vadd.f32 %v4293_v7, %v3284_v51 }
 0x80e   :  { %v3288_v49 = vmax.f32 %v3285_v60, 0.0 }
 0x810   :  { %v3293_v54 = vmul.f32 %v4294_v16, %v3288_v49 }
 0x812   :  { %v3295_v42 = vsel %vm3294_vm8, %v3293_v54, 0.0 }
 0x813   :  { %v3286_v48 = vpop.f32.mrf.mxu0  ;;  %3296 = vadd.xlane.f32.xlu0 %v3295_v42 }
 0x886   :  { %v3297_v38 = vpop.xlane.xlu0 %3296 }
 0x887   :  { %v3302_v24 = vadd.f32 %v4295_v14, %v3297_v38 }
 0x889   :  { %v3303_v21 = vmax.f32 %v3302_v24, 0.0 }
 0x88b   :  { %3305 = vst.msk [vmem:[%s6258_s14] sm:$0xf] %vm3304_vm9, %v3303_v21 }

</bundles_post_ra>
